<compile_context>
chip_gen: v5e
topology: v5e:2x2
jax: 0.10.0
libtpu: 0.0.40
codegen_flags: <defaults>
</compile_context>

<pallas_src>
import functools

import jax
import jax.numpy as jnp
from jax import lax
from jax.experimental import pallas as pl
from jax.experimental.pallas import tpu as pltpu

# Contraction width at/above which the 1x1 convs run on the MXU (jnp.dot)
# instead of VPU broadcast-MACs.  Real MobileFaceNet widths (>=64) take the
# MXU path; the toy 4..16-channel test stays on the VPU path.
_MXU_MIN_K = 32


def _tree_sum(xs):
    """Balanced add-tree: exposes ILP across VALU slots instead of a serial chain."""
    xs = list(xs)
    while len(xs) > 1:
        nxt = [xs[i] + xs[i + 1] for i in range(0, len(xs) - 1, 2)]
        if len(xs) % 2:
            nxt.append(xs[-1])
        xs = nxt
    return xs[0]


# --------------------------- fused kernel ------------------------------------

def _depth_wise_kernel(x_ref, w1_ref, b1_ref, a1_ref,
                       wdw_ref, b2_ref, a2_ref,
                       w3_ref, b3_ref,
                       o_ref, y1p_ref, *,
                       stride, padding, kh, kw, residual):
    f32 = jnp.float32
    B, H, W, cin = x_ref.shape            # (block_batch, H, W, Cin), NHWC
    _, Ho, Wo, c3 = o_ref.shape
    c1 = w1_ref.shape[1]
    sh, sw = stride
    ph, pw = padding
    Hp, Wp = H + 2 * ph, W + 2 * pw

    # ---- stage 1: 1x1 conv (BN scale folded into w1) + bias + PReLU --------
    if cin >= _MXU_MIN_K:
        # MXU path (real widths): a single (B*H*W, Cin) @ (Cin, C1) matmul.
        xf = x_ref[...].astype(f32).reshape(B * H * W, cin)
        y1 = jnp.dot(xf, w1_ref[...].astype(f32),
                     preferred_element_type=f32).reshape(B, H, W, c1)
    else:
        # VPU broadcast-MAC path (toy widths).  Read x one channel at a time so
        # the full input block is never kept live across the whole kernel body.
        w1 = w1_ref[...].astype(f32)                       # (Cin, C1)
        y1 = _tree_sum([x_ref[:, :, :, c:c + 1].astype(f32) * w1[c:c + 1, :]
                        for c in range(cin)])
    y1 = y1 + b1_ref[...]
    y1 = jnp.where(y1 >= 0.0, y1, a1_ref[...] * y1)        # (B, H, W, C1)

    # ---- stage 2: KxK depthwise conv (BN scale folded) + bias + PReLU ------
    # Zero ONLY the halo strips; the interior is fully overwritten every step.
    if ph > 0:
        y1p_ref[:, 0:ph, :, :] = jnp.zeros((B, ph, Wp, c1), f32)
        y1p_ref[:, ph + H:Hp, :, :] = jnp.zeros((B, Hp - ph - H, Wp, c1), f32)
    if pw > 0:
        y1p_ref[:, :, 0:pw, :] = jnp.zeros((B, Hp, pw, c1), f32)
        y1p_ref[:, :, pw + W:Wp, :] = jnp.zeros((B, Hp, Wp - pw - W, c1), f32)
    y1p_ref[:, ph:ph + H, pw:pw + W, :] = y1               # interior

    wdw = wdw_ref[...].astype(f32)                         # (kh*kw, C1)
    taps = []
    for i in range(kh):
        for j in range(kw):
            if sh == 1 and sw == 1:
                v = y1p_ref[:, i:i + Ho, j:j + Wo, :]      # contiguous slices
            else:
                # Strides land on the non-tiled H axis and the sublane W axis;
                # the lane axis (C1) is never strided.
                v = y1p_ref[:, pl.ds(i, Ho, sh), pl.ds(j, Wo, sw), :]
            t = i * kw + j
            taps.append(v * wdw[t:t + 1, :])
    y2 = _tree_sum(taps) + b2_ref[...]
    y2 = jnp.where(y2 >= 0.0, y2, a2_ref[...] * y2)        # (B, Ho, Wo, C1)

    # ---- stage 3: 1x1 projection (BN scale folded) + bias (+ residual) -----
    if c1 >= _MXU_MIN_K:
        y2f = y2.reshape(B * Ho * Wo, c1)
        z = jnp.dot(y2f, w3_ref[...].astype(f32),
                    preferred_element_type=f32).reshape(B, Ho, Wo, c3)
    else:
        w3 = w3_ref[...].astype(f32)                       # (C1, C3)
        z = _tree_sum([y2[:, :, :, c:c + 1] * w3[c:c + 1, :] for c in range(c1)])
    z = z + b3_ref[...]
    if residual:
        # stride==(1,1) and C3==Cin guaranteed by the wrapper; re-read x late
        # instead of keeping it live across all three stages.
        z = z + x_ref[...].astype(f32)
    o_ref[...] = z.astype(o_ref.dtype)


# --------------------------- wrapper -----------------------------------------

def depth_wise_forward(p, x_nchw, *, residual, stride=(2, 2), padding=(1, 1),
                       io_dtype=None):
    """Depth_Wise forward.  x_nchw: (N, Cin, H, W) -> NCHW output."""
    if io_dtype is None:
        io_dtype = x_nchw.dtype      # use jnp.bfloat16 on v6e/v7x to halve HBM traffic
    x = jnp.transpose(x_nchw, (0, 2, 3, 1)).astype(io_dtype)   # NCHW -> NHWC
    N, H, W, cin = x.shape
    kh, kw, c1 = p["w_dw"].shape
    c3 = p["w3"].shape[1]
    sh, sw = stride
    ph, pw = padding
    Ho = (H + 2 * ph - kh) // sh + 1
    Wo = (W + 2 * pw - kw) // sw + 1
    Hp, Wp = H + 2 * ph, W + 2 * pw

    assert p["w1"].shape == (cin, c1) and p["w3"].shape == (c1, c3)
    if residual:
        assert stride == (1, 1) and c3 == cin and Ho == H and Wo == W, (
            "residual=True requires stride=(1,1) and c3_out == c1_in")

    # Fold BN scales into the conv weights (mathematically exact).
    w1 = (p["w1"] * p["s1"][None, :]).astype(jnp.float32)
    wdw = (p["w_dw"] * p["s2"][None, None, :]).reshape(kh * kw, c1).astype(jnp.float32)
    w3 = (p["w3"] * p["s3"][None, :]).astype(jnp.float32)
    b1 = p["b1"].reshape(1, c1).astype(jnp.float32)
    a1 = p["a1"].reshape(1, c1).astype(jnp.float32)
    b2 = p["b2"].reshape(1, c1).astype(jnp.float32)
    a2 = p["a2"].reshape(1, c1).astype(jnp.float32)
    b3 = p["b3"].reshape(1, c3).astype(jnp.float32)

    # ---- VMEM budgeting: images per grid step + explicit scoped-VMEM limit.
    def rup(v, m):
        return -(-v // m) * m
    itemsize = jnp.dtype(io_dtype).itemsize
    per_img = (
        2 * itemsize * H * rup(W, 8) * rup(cin, 128)          # double-buffered input
        + 2 * itemsize * Ho * rup(Wo, 8) * rup(c3, 128)       # double-buffered output
        + 4 * Hp * rup(Wp, 8) * rup(c1, 128)                  # padded depthwise scratch
        + 4 * (kh * kw + 4) * Ho * rup(Wo, 8) * rup(c1, 128)  # live tap / temp values
        + 4 * 4 * H * rup(W, 8) * rup(c1, 128))               # stage-1 activation temps
    budget = 10 * 1024 * 1024          # conservative: fits v5e's 16 MiB default scoped VMEM
    bb = int(max(1, min(N, budget // max(per_img, 1))))
    while N % bb:
        bb -= 1
    vmem_limit = int(min(max(2 * bb * per_img, 16 << 20), 48 << 20))

    kernel = functools.partial(
        _depth_wise_kernel, stride=stride, padding=padding,
        kh=kh, kw=kw, residual=residual)

    def rep(shape):
        return pl.BlockSpec(shape, lambda *_: (0,) * len(shape))

    out = pl.pallas_call(
        kernel,
        out_shape=jax.ShapeDtypeStruct((N, Ho, Wo, c3), io_dtype),
        grid=(N // bb,),
        in_specs=[
            pl.BlockSpec((bb, H, W, cin), lambda n: (n, 0, 0, 0)),   # x
            rep((cin, c1)), rep((1, c1)), rep((1, c1)),              # w1, b1, a1
            rep((kh * kw, c1)), rep((1, c1)), rep((1, c1)),          # wdw, b2, a2
            rep((c1, c3)), rep((1, c3)),                             # w3, b3
        ],
        out_specs=pl.BlockSpec((bb, Ho, Wo, c3), lambda n: (n, 0, 0, 0)),
        scratch_shapes=[pltpu.VMEM((bb, Hp, Wp, c1), jnp.float32)],
        compiler_params=pltpu.CompilerParams(
            dimension_semantics=("parallel",),
            vmem_limit_bytes=vmem_limit),
    )(x, w1, b1, a1, wdw, b2, a2, w3, b3)

    return jnp.transpose(out, (0, 3, 1, 2)).astype(x_nchw.dtype)     # -> NCHW


# ---------------- parameter init (deterministic, synthetic) ------------------

def init_depthwise_params(key, c1, c2, c3, kernel=(3, 3)):
    c1_in, c1_out = c1
    c2_in, c2_out = c2
    c3_in, c3_out = c3
    assert c2_out == c2_in, "depthwise conv requires groups == in == out channels"
    assert c1_out == c2_in and c2_out == c3_in

    ks = iter(jax.random.split(key, 32))

    def bn_fold(c):
        gamma = jax.random.uniform(next(ks), (c,), jnp.float32, 0.5, 1.5)
        beta = 0.1 * jax.random.normal(next(ks), (c,), jnp.float32)
        mean = 0.1 * jax.random.normal(next(ks), (c,), jnp.float32)
        var = jax.random.uniform(next(ks), (c,), jnp.float32, 0.5, 1.5)
        scale = gamma / jnp.sqrt(var + 1e-5)
        return scale, beta - mean * scale

    p = {}
    p["w1"] = 0.2 * jax.random.normal(next(ks), (c1_in, c1_out), jnp.float32)
    p["s1"], p["b1"] = bn_fold(c1_out)
    p["a1"] = jax.random.uniform(next(ks), (c1_out,), jnp.float32, 0.1, 0.4)

    kh, kw = kernel
    p["w_dw"] = 0.2 * jax.random.normal(next(ks), (kh, kw, c2_out), jnp.float32)
    p["s2"], p["b2"] = bn_fold(c2_out)
    p["a2"] = jax.random.uniform(next(ks), (c2_out,), jnp.float32, 0.1, 0.4)

    p["w3"] = 0.2 * jax.random.normal(next(ks), (c3_in, c3_out), jnp.float32)
    p["s3"], p["b3"] = bn_fold(c3_out)
    return p


# ---------------- pure-JAX reference (for correctness check) -----------------

def reference_forward(p, x_nchw, stride, padding, residual):
    dn = ("NCHW", "OIHW", "NCHW")

    def bn(y, s, b):
        return y * s[None, :, None, None] + b[None, :, None, None]

    def prelu(y, a):
        return jnp.where(y >= 0, y, a[None, :, None, None] * y)

    w1 = jnp.transpose(p["w1"], (1, 0))[:, :, None, None]
    y = lax.conv_general_dilated(x_nchw, w1, (1, 1), [(0, 0), (0, 0)],
                                 dimension_numbers=dn)
    y = prelu(bn(y, p["s1"], p["b1"]), p["a1"])

    C2 = p["w_dw"].shape[2]
    wdw = jnp.transpose(p["w_dw"], (2, 0, 1))[:, None, :, :]
    y = lax.conv_general_dilated(y, wdw, stride,
                                 [(padding[0], padding[0]),
                                  (padding[1], padding[1])],
                                 dimension_numbers=dn, feature_group_count=C2)
    y = prelu(bn(y, p["s2"], p["b2"]), p["a2"])

    w3 = jnp.transpose(p["w3"], (1, 0))[:, :, None, None]
    y = lax.conv_general_dilated(y, w3, (1, 1), [(0, 0), (0, 0)],
                                 dimension_numbers=dn)
    y = bn(y, p["s3"], p["b3"])
    if residual:
        y = y + x_nchw
    return y


if __name__ == "__main__":
    key = jax.random.PRNGKey(0)
    kx, kp1, kp2 = jax.random.split(key, 3)
    x = jax.random.normal(kx, (2, 4, 16, 16), jnp.float32)  # NCHW

    # Case 1: downsampling block (stride 2, no residual).
    p1 = init_depthwise_params(kp1, c1=(4, 8), c2=(8, 8), c3=(8, 16))
    out1 = jax.block_until_ready(
        depth_wise_forward(p1, x, residual=False, stride=(2, 2), padding=(1, 1)))
    ref1 = reference_forward(p1, x, (2, 2), (1, 1), False)
    assert out1.shape == (2, 16, 8, 8), out1.shape
    assert float(jnp.max(jnp.abs(out1 - ref1))) < 1e-4

    # Case 2: residual block (stride 1, residual=True, c3_out == c1_in).
    p2 = init_depthwise_params(kp2, c1=(4, 8), c2=(8, 8), c3=(8, 4))
    out2 = jax.block_until_ready(
        depth_wise_forward(p2, x, residual=True, stride=(1, 1), padding=(1, 1)))
    ref2 = reference_forward(p2, x, (1, 1), (1, 1), True)
    assert out2.shape == (2, 4, 16, 16), out2.shape
    assert float(jnp.max(jnp.abs(out2 - ref2))) < 1e-4

    print("KERNEL_OK")
</pallas_src>

<mosaic_0001>
module attributes {stable_mosaic.version = 11 : i64} {
  func.func @_depth_wise_kernel(%arg0: i32, %arg1: memref<2x16x16x4xf32, #tpu.memory_space<vmem>>, %arg2: memref<4x8xf32, #tpu.memory_space<vmem>>, %arg3: memref<1x8xf32, #tpu.memory_space<vmem>>, %arg4: memref<1x8xf32, #tpu.memory_space<vmem>>, %arg5: memref<9x8xf32, #tpu.memory_space<vmem>>, %arg6: memref<1x8xf32, #tpu.memory_space<vmem>>, %arg7: memref<1x8xf32, #tpu.memory_space<vmem>>, %arg8: memref<8x16xf32, #tpu.memory_space<vmem>>, %arg9: memref<1x16xf32, #tpu.memory_space<vmem>>, %arg10: memref<2x8x8x16xf32, #tpu.memory_space<vmem>>, %arg11: memref<2x18x18x8xf32, #tpu.memory_space<vmem>>) attributes {dimension_semantics = [#tpu.dimension_semantics<parallel>], iteration_bounds = array<i64: 1>, scalar_prefetch = 0 : i64, scratch_operands = 1 : i64, tpu.core_type = #tpu.core_type<tc>, window_params = [{transform_indices = @transform_0, window_bounds = array<i64: 2, 16, 16, 4>}, {pipeline_mode = #tpu.pipeline_mode<synchronous>, transform_indices = @transform_1, window_bounds = array<i64: 4, 8>}, {pipeline_mode = #tpu.pipeline_mode<synchronous>, transform_indices = @transform_2, window_bounds = array<i64: 1, 8>}, {pipeline_mode = #tpu.pipeline_mode<synchronous>, transform_indices = @transform_3, window_bounds = array<i64: 1, 8>}, {pipeline_mode = #tpu.pipeline_mode<synchronous>, transform_indices = @transform_4, window_bounds = array<i64: 9, 8>}, {pipeline_mode = #tpu.pipeline_mode<synchronous>, transform_indices = @transform_5, window_bounds = array<i64: 1, 8>}, {pipeline_mode = #tpu.pipeline_mode<synchronous>, transform_indices = @transform_6, window_bounds = array<i64: 1, 8>}, {pipeline_mode = #tpu.pipeline_mode<synchronous>, transform_indices = @transform_7, window_bounds = array<i64: 8, 16>}, {pipeline_mode = #tpu.pipeline_mode<synchronous>, transform_indices = @transform_8, window_bounds = array<i64: 1, 16>}, {transform_indices = @transform_9, window_bounds = array<i64: 2, 8, 8, 16>}]} {
    %c0 = arith.constant 0 : index
    %c0_0 = arith.constant 0 : index
    %0 = vector.load %arg2[%c0, %c0_0] : memref<4x8xf32, #tpu.memory_space<vmem>>, vector<4x8xf32>
    %c0_1 = arith.constant 0 : index
    %c0_2 = arith.constant 0 : index
    %c0_3 = arith.constant 0 : index
    %c0_4 = arith.constant 0 : index
    %1 = vector.load %arg1[%c0_1, %c0_2, %c0_3, %c0_4] : memref<2x16x16x4xf32, #tpu.memory_space<vmem>>, vector<2x16x16x1xf32>
    %2 = vector.extract_strided_slice %0 {offsets = [0, 0], sizes = [1, 8], strides = [1, 1]} : vector<4x8xf32> to vector<1x8xf32>
    %3 = vector.shape_cast %2 : vector<1x8xf32> to vector<1x1x1x8xf32>
    %4 = vector.broadcast %1 : vector<2x16x16x1xf32> to vector<2x16x16x8xf32>
    %5 = vector.broadcast %3 : vector<1x1x1x8xf32> to vector<2x16x16x8xf32>
    %6 = arith.mulf %4, %5 : vector<2x16x16x8xf32>
    %c0_5 = arith.constant 0 : index
    %c0_6 = arith.constant 0 : index
    %c0_7 = arith.constant 0 : index
    %c1 = arith.constant 1 : index
    %7 = vector.load %arg1[%c0_5, %c0_6, %c0_7, %c1] : memref<2x16x16x4xf32, #tpu.memory_space<vmem>>, vector<2x16x16x1xf32>
    %8 = vector.extract_strided_slice %0 {offsets = [1, 0], sizes = [1, 8], strides = [1, 1]} : vector<4x8xf32> to vector<1x8xf32>
    %9 = vector.shape_cast %8 : vector<1x8xf32> to vector<1x1x1x8xf32>
    %10 = vector.broadcast %7 : vector<2x16x16x1xf32> to vector<2x16x16x8xf32>
    %11 = vector.broadcast %9 : vector<1x1x1x8xf32> to vector<2x16x16x8xf32>
    %12 = arith.mulf %10, %11 : vector<2x16x16x8xf32>
    %c0_8 = arith.constant 0 : index
    %c0_9 = arith.constant 0 : index
    %c0_10 = arith.constant 0 : index
    %c2 = arith.constant 2 : index
    %13 = vector.load %arg1[%c0_8, %c0_9, %c0_10, %c2] : memref<2x16x16x4xf32, #tpu.memory_space<vmem>>, vector<2x16x16x1xf32>
    %14 = vector.extract_strided_slice %0 {offsets = [2, 0], sizes = [1, 8], strides = [1, 1]} : vector<4x8xf32> to vector<1x8xf32>
    %15 = vector.shape_cast %14 : vector<1x8xf32> to vector<1x1x1x8xf32>
    %16 = vector.broadcast %13 : vector<2x16x16x1xf32> to vector<2x16x16x8xf32>
    %17 = vector.broadcast %15 : vector<1x1x1x8xf32> to vector<2x16x16x8xf32>
    %18 = arith.mulf %16, %17 : vector<2x16x16x8xf32>
    %c0_11 = arith.constant 0 : index
    %c0_12 = arith.constant 0 : index
    %c0_13 = arith.constant 0 : index
    %c3 = arith.constant 3 : index
    %19 = vector.load %arg1[%c0_11, %c0_12, %c0_13, %c3] : memref<2x16x16x4xf32, #tpu.memory_space<vmem>>, vector<2x16x16x1xf32>
    %20 = vector.extract_strided_slice %0 {offsets = [3, 0], sizes = [1, 8], strides = [1, 1]} : vector<4x8xf32> to vector<1x8xf32>
    %21 = vector.shape_cast %20 : vector<1x8xf32> to vector<1x1x1x8xf32>
    %22 = vector.broadcast %19 : vector<2x16x16x1xf32> to vector<2x16x16x8xf32>
    %23 = vector.broadcast %21 : vector<1x1x1x8xf32> to vector<2x16x16x8xf32>
    %24 = arith.mulf %22, %23 : vector<2x16x16x8xf32>
    %25 = arith.addf %6, %12 : vector<2x16x16x8xf32>
    %26 = arith.addf %18, %24 : vector<2x16x16x8xf32>
    %27 = arith.addf %25, %26 : vector<2x16x16x8xf32>
    %c0_14 = arith.constant 0 : index
    %c0_15 = arith.constant 0 : index
    %28 = vector.load %arg3[%c0_14, %c0_15] : memref<1x8xf32, #tpu.memory_space<vmem>>, vector<1x8xf32>
    %29 = vector.shape_cast %28 : vector<1x8xf32> to vector<1x1x1x8xf32>
    %30 = vector.broadcast %29 : vector<1x1x1x8xf32> to vector<2x16x16x8xf32>
    %31 = arith.addf %27, %30 : vector<2x16x16x8xf32>
    %cst = arith.constant 0.000000e+00 : f32
    %32 = vector.broadcast %cst : f32 to vector<2x16x16x8xf32>
    %33 = arith.cmpf oge, %31, %32 : vector<2x16x16x8xf32>
    %c0_16 = arith.constant 0 : index
    %c0_17 = arith.constant 0 : index
    %34 = vector.load %arg4[%c0_16, %c0_17] : memref<1x8xf32, #tpu.memory_space<vmem>>, vector<1x8xf32>
    %35 = vector.shape_cast %34 : vector<1x8xf32> to vector<1x1x1x8xf32>
    %36 = vector.broadcast %35 : vector<1x1x1x8xf32> to vector<2x16x16x8xf32>
    %37 = arith.mulf %36, %31 : vector<2x16x16x8xf32>
    %38 = arith.select %33, %31, %37 : vector<2x16x16x8xi1>, vector<2x16x16x8xf32>
    %cst_18 = arith.constant 0.000000e+00 : f32
    %39 = vector.broadcast %cst_18 : f32 to vector<2x1x18x8xf32>
    %c0_19 = arith.constant 0 : index
    %c0_20 = arith.constant 0 : index
    %c0_21 = arith.constant 0 : index
    %c0_22 = arith.constant 0 : index
    %40 = vector.load %arg11[%c0_19, %c0_20, %c0_21, %c0_22] : memref<2x18x18x8xf32, #tpu.memory_space<vmem>>, vector<2x1x18x8xf32>
    tpu.vector_store %arg11[%c0_19, %c0_20, %c0_21, %c0_22], %39 {strides = array<i32>} : memref<2x18x18x8xf32, #tpu.memory_space<vmem>>, vector<2x1x18x8xf32>,
    %cst_23 = arith.constant 0.000000e+00 : f32
    %41 = vector.broadcast %cst_23 : f32 to vector<2x1x18x8xf32>
    %c0_24 = arith.constant 0 : index
    %c17 = arith.constant 17 : index
    %c0_25 = arith.constant 0 : index
    %c0_26 = arith.constant 0 : index
    %42 = vector.load %arg11[%c0_24, %c17, %c0_25, %c0_26] : memref<2x18x18x8xf32, #tpu.memory_space<vmem>>, vector<2x1x18x8xf32>
    tpu.vector_store %arg11[%c0_24, %c17, %c0_25, %c0_26], %41 {strides = array<i32>} : memref<2x18x18x8xf32, #tpu.memory_space<vmem>>, vector<2x1x18x8xf32>,
    %cst_27 = arith.constant 0.000000e+00 : f32
    %43 = vector.broadcast %cst_27 : f32 to vector<2x18x1x8xf32>
    %c0_28 = arith.constant 0 : index
    %c0_29 = arith.constant 0 : index
    %c0_30 = arith.constant 0 : index
    %c0_31 = arith.constant 0 : index
    %44 = vector.load %arg11[%c0_28, %c0_29, %c0_30, %c0_31] : memref<2x18x18x8xf32, #tpu.memory_space<vmem>>, vector<2x18x1x8xf32>
    tpu.vector_store %arg11[%c0_28, %c0_29, %c0_30, %c0_31], %43 {strides = array<i32>} : memref<2x18x18x8xf32, #tpu.memory_space<vmem>>, vector<2x18x1x8xf32>,
    %cst_32 = arith.constant 0.000000e+00 : f32
    %45 = vector.broadcast %cst_32 : f32 to vector<2x18x1x8xf32>
    %c0_33 = arith.constant 0 : index
    %c0_34 = arith.constant 0 : index
    %c17_35 = arith.constant 17 : index
    %c0_36 = arith.constant 0 : index
    %46 = vector.load %arg11[%c0_33, %c0_34, %c17_35, %c0_36] : memref<2x18x18x8xf32, #tpu.memory_space<vmem>>, vector<2x18x1x8xf32>
    tpu.vector_store %arg11[%c0_33, %c0_34, %c17_35, %c0_36], %45 {strides = array<i32>} : memref<2x18x18x8xf32, #tpu.memory_space<vmem>>, vector<2x18x1x8xf32>,
    %c0_37 = arith.constant 0 : index
    %c1_38 = arith.constant 1 : index
    %c1_39 = arith.constant 1 : index
    %c0_40 = arith.constant 0 : index
    %47 = vector.load %arg11[%c0_37, %c1_38, %c1_39, %c0_40] : memref<2x18x18x8xf32, #tpu.memory_space<vmem>>, vector<2x16x16x8xf32>
    tpu.vector_store %arg11[%c0_37, %c1_38, %c1_39, %c0_40], %38 {strides = array<i32>} : memref<2x18x18x8xf32, #tpu.memory_space<vmem>>, vector<2x16x16x8xf32>,
    %c0_41 = arith.constant 0 : index
    %c0_42 = arith.constant 0 : index
    %48 = vector.load %arg5[%c0_41, %c0_42] : memref<9x8xf32, #tpu.memory_space<vmem>>, vector<9x8xf32>
    %c0_43 = arith.constant 0 : index
    %c0_44 = arith.constant 0 : index
    %c0_45 = arith.constant 0 : index
    %c0_46 = arith.constant 0 : index
    %49 = tpu.strided_load %arg11[%c0_43, %c0_44, %c0_45, %c0_46] {strides = array<i32: 1, 2, 2, 1>} : memref<2x18x18x8xf32, #tpu.memory_space<vmem>>, vector<2x8x8x8xf32>
    %50 = vector.extract_strided_slice %48 {offsets = [0, 0], sizes = [1, 8], strides = [1, 1]} : vector<9x8xf32> to vector<1x8xf32>
    %51 = vector.shape_cast %50 : vector<1x8xf32> to vector<1x1x1x8xf32>
    %52 = vector.broadcast %51 : vector<1x1x1x8xf32> to vector<2x8x8x8xf32>
    %53 = arith.mulf %49, %52 : vector<2x8x8x8xf32>
    %c0_47 = arith.constant 0 : index
    %c0_48 = arith.constant 0 : index
    %c1_49 = arith.constant 1 : index
    %c0_50 = arith.constant 0 : index
    %54 = tpu.strided_load %arg11[%c0_47, %c0_48, %c1_49, %c0_50] {strides = array<i32: 1, 2, 2, 1>} : memref<2x18x18x8xf32, #tpu.memory_space<vmem>>, vector<2x8x8x8xf32>
    %55 = vector.extract_strided_slice %48 {offsets = [1, 0], sizes = [1, 8], strides = [1, 1]} : vector<9x8xf32> to vector<1x8xf32>
    %56 = vector.shape_cast %55 : vector<1x8xf32> to vector<1x1x1x8xf32>
    %57 = vector.broadcast %56 : vector<1x1x1x8xf32> to vector<2x8x8x8xf32>
    %58 = arith.mulf %54, %57 : vector<2x8x8x8xf32>
    %c0_51 = arith.constant 0 : index
    %c0_52 = arith.constant 0 : index
    %c2_53 = arith.constant 2 : index
    %c0_54 = arith.constant 0 : index
    %59 = tpu.strided_load %arg11[%c0_51, %c0_52, %c2_53, %c0_54] {strides = array<i32: 1, 2, 2, 1>} : memref<2x18x18x8xf32, #tpu.memory_space<vmem>>, vector<2x8x8x8xf32>
    %60 = vector.extract_strided_slice %48 {offsets = [2, 0], sizes = [1, 8], strides = [1, 1]} : vector<9x8xf32> to vector<1x8xf32>
    %61 = vector.shape_cast %60 : vector<1x8xf32> to vector<1x1x1x8xf32>
    %62 = vector.broadcast %61 : vector<1x1x1x8xf32> to vector<2x8x8x8xf32>
    %63 = arith.mulf %59, %62 : vector<2x8x8x8xf32>
    %c0_55 = arith.constant 0 : index
    %c1_56 = arith.constant 1 : index
    %c0_57 = arith.constant 0 : index
    %c0_58 = arith.constant 0 : index
    %64 = tpu.strided_load %arg11[%c0_55, %c1_56, %c0_57, %c0_58] {strides = array<i32: 1, 2, 2, 1>} : memref<2x18x18x8xf32, #tpu.memory_space<vmem>>, vector<2x8x8x8xf32>
    %65 = vector.extract_strided_slice %48 {offsets = [3, 0], sizes = [1, 8], strides = [1, 1]} : vector<9x8xf32> to vector<1x8xf32>
    %66 = vector.shape_cast %65 : vector<1x8xf32> to vector<1x1x1x8xf32>
    %67 = vector.broadcast %66 : vector<1x1x1x8xf32> to vector<2x8x8x8xf32>
    %68 = arith.mulf %64, %67 : vector<2x8x8x8xf32>
    %c0_59 = arith.constant 0 : index
    %c1_60 = arith.constant 1 : index
    %c1_61 = arith.constant 1 : index
    %c0_62 = arith.constant 0 : index
    %69 = tpu.strided_load %arg11[%c0_59, %c1_60, %c1_61, %c0_62] {strides = array<i32: 1, 2, 2, 1>} : memref<2x18x18x8xf32, #tpu.memory_space<vmem>>, vector<2x8x8x8xf32>
    %70 = vector.extract_strided_slice %48 {offsets = [4, 0], sizes = [1, 8], strides = [1, 1]} : vector<9x8xf32> to vector<1x8xf32>
    %71 = vector.shape_cast %70 : vector<1x8xf32> to vector<1x1x1x8xf32>
    %72 = vector.broadcast %71 : vector<1x1x1x8xf32> to vector<2x8x8x8xf32>
    %73 = arith.mulf %69, %72 : vector<2x8x8x8xf32>
    %c0_63 = arith.constant 0 : index
    %c1_64 = arith.constant 1 : index
    %c2_65 = arith.constant 2 : index
    %c0_66 = arith.constant 0 : index
    %74 = tpu.strided_load %arg11[%c0_63, %c1_64, %c2_65, %c0_66] {strides = array<i32: 1, 2, 2, 1>} : memref<2x18x18x8xf32, #tpu.memory_space<vmem>>, vector<2x8x8x8xf32>
    %75 = vector.extract_strided_slice %48 {offsets = [5, 0], sizes = [1, 8], strides = [1, 1]} : vector<9x8xf32> to vector<1x8xf32>
    %76 = vector.shape_cast %75 : vector<1x8xf32> to vector<1x1x1x8xf32>
    %77 = vector.broadcast %76 : vector<1x1x1x8xf32> to vector<2x8x8x8xf32>
    %78 = arith.mulf %74, %77 : vector<2x8x8x8xf32>
    %c0_67 = arith.constant 0 : index
    %c2_68 = arith.constant 2 : index
    %c0_69 = arith.constant 0 : index
    %c0_70 = arith.constant 0 : index
    %79 = tpu.strided_load %arg11[%c0_67, %c2_68, %c0_69, %c0_70] {strides = array<i32: 1, 2, 2, 1>} : memref<2x18x18x8xf32, #tpu.memory_space<vmem>>, vector<2x8x8x8xf32>
    %80 = vector.extract_strided_slice %48 {offsets = [6, 0], sizes = [1, 8], strides = [1, 1]} : vector<9x8xf32> to vector<1x8xf32>
    %81 = vector.shape_cast %80 : vector<1x8xf32> to vector<1x1x1x8xf32>
    %82 = vector.broadcast %81 : vector<1x1x1x8xf32> to vector<2x8x8x8xf32>
    %83 = arith.mulf %79, %82 : vector<2x8x8x8xf32>
    %c0_71 = arith.constant 0 : index
    %c2_72 = arith.constant 2 : index
    %c1_73 = arith.constant 1 : index
    %c0_74 = arith.constant 0 : index
    %84 = tpu.strided_load %arg11[%c0_71, %c2_72, %c1_73, %c0_74] {strides = array<i32: 1, 2, 2, 1>} : memref<2x18x18x8xf32, #tpu.memory_space<vmem>>, vector<2x8x8x8xf32>
    %85 = vector.extract_strided_slice %48 {offsets = [7, 0], sizes = [1, 8], strides = [1, 1]} : vector<9x8xf32> to vector<1x8xf32>
    %86 = vector.shape_cast %85 : vector<1x8xf32> to vector<1x1x1x8xf32>
    %87 = vector.broadcast %86 : vector<1x1x1x8xf32> to vector<2x8x8x8xf32>
    %88 = arith.mulf %84, %87 : vector<2x8x8x8xf32>
    %c0_75 = arith.constant 0 : index
    %c2_76 = arith.constant 2 : index
    %c2_77 = arith.constant 2 : index
    %c0_78 = arith.constant 0 : index
    %89 = tpu.strided_load %arg11[%c0_75, %c2_76, %c2_77, %c0_78] {strides = array<i32: 1, 2, 2, 1>} : memref<2x18x18x8xf32, #tpu.memory_space<vmem>>, vector<2x8x8x8xf32>
    %90 = vector.extract_strided_slice %48 {offsets = [8, 0], sizes = [1, 8], strides = [1, 1]} : vector<9x8xf32> to vector<1x8xf32>
    %91 = vector.shape_cast %90 : vector<1x8xf32> to vector<1x1x1x8xf32>
    %92 = vector.broadcast %91 : vector<1x1x1x8xf32> to vector<2x8x8x8xf32>
    %93 = arith.mulf %89, %92 : vector<2x8x8x8xf32>
    %94 = arith.addf %53, %58 : vector<2x8x8x8xf32>
    %95 = arith.addf %63, %68 : vector<2x8x8x8xf32>
    %96 = arith.addf %73, %78 : vector<2x8x8x8xf32>
    %97 = arith.addf %83, %88 : vector<2x8x8x8xf32>
    %98 = arith.addf %94, %95 : vector<2x8x8x8xf32>
    %99 = arith.addf %96, %97 : vector<2x8x8x8xf32>
    %100 = arith.addf %98, %99 : vector<2x8x8x8xf32>
    %101 = arith.addf %100, %93 : vector<2x8x8x8xf32>
    %c0_79 = arith.constant 0 : index
    %c0_80 = arith.constant 0 : index
    %102 = vector.load %arg6[%c0_79, %c0_80] : memref<1x8xf32, #tpu.memory_space<vmem>>, vector<1x8xf32>
    %103 = vector.shape_cast %102 : vector<1x8xf32> to vector<1x1x1x8xf32>
    %104 = vector.broadcast %103 : vector<1x1x1x8xf32> to vector<2x8x8x8xf32>
    %105 = arith.addf %101, %104 : vector<2x8x8x8xf32>
    %cst_81 = arith.constant 0.000000e+00 : f32
    %106 = vector.broadcast %cst_81 : f32 to vector<2x8x8x8xf32>
    %107 = arith.cmpf oge, %105, %106 : vector<2x8x8x8xf32>
    %c0_82 = arith.constant 0 : index
    %c0_83 = arith.constant 0 : index
    %108 = vector.load %arg7[%c0_82, %c0_83] : memref<1x8xf32, #tpu.memory_space<vmem>>, vector<1x8xf32>
    %109 = vector.shape_cast %108 : vector<1x8xf32> to vector<1x1x1x8xf32>
    %110 = vector.broadcast %109 : vector<1x1x1x8xf32> to vector<2x8x8x8xf32>
    %111 = arith.mulf %110, %105 : vector<2x8x8x8xf32>
    %112 = arith.select %107, %105, %111 : vector<2x8x8x8xi1>, vector<2x8x8x8xf32>
    %c0_84 = arith.constant 0 : index
    %c0_85 = arith.constant 0 : index
    %113 = vector.load %arg8[%c0_84, %c0_85] : memref<8x16xf32, #tpu.memory_space<vmem>>, vector<8x16xf32>
    %114 = vector.extract_strided_slice %112 {offsets = [0, 0, 0, 0], sizes = [2, 8, 8, 1], strides = [1, 1, 1, 1]} : vector<2x8x8x8xf32> to vector<2x8x8x1xf32>
    %115 = vector.extract_strided_slice %113 {offsets = [0, 0], sizes = [1, 16], strides = [1, 1]} : vector<8x16xf32> to vector<1x16xf32>
    %116 = vector.shape_cast %115 : vector<1x16xf32> to vector<1x1x1x16xf32>
    %117 = vector.broadcast %114 : vector<2x8x8x1xf32> to vector<2x8x8x16xf32>
    %118 = vector.broadcast %116 : vector<1x1x1x16xf32> to vector<2x8x8x16xf32>
    %119 = arith.mulf %117, %118 : vector<2x8x8x16xf32>
    %120 = vector.extract_strided_slice %112 {offsets = [0, 0, 0, 1], sizes = [2, 8, 8, 1], strides = [1, 1, 1, 1]} : vector<2x8x8x8xf32> to vector<2x8x8x1xf32>
    %121 = vector.extract_strided_slice %113 {offsets = [1, 0], sizes = [1, 16], strides = [1, 1]} : vector<8x16xf32> to vector<1x16xf32>
    %122 = vector.shape_cast %121 : vector<1x16xf32> to vector<1x1x1x16xf32>
    %123 = vector.broadcast %120 : vector<2x8x8x1xf32> to vector<2x8x8x16xf32>
    %124 = vector.broadcast %122 : vector<1x1x1x16xf32> to vector<2x8x8x16xf32>
    %125 = arith.mulf %123, %124 : vector<2x8x8x16xf32>
    %126 = vector.extract_strided_slice %112 {offsets = [0, 0, 0, 2], sizes = [2, 8, 8, 1], strides = [1, 1, 1, 1]} : vector<2x8x8x8xf32> to vector<2x8x8x1xf32>
    %127 = vector.extract_strided_slice %113 {offsets = [2, 0], sizes = [1, 16], strides = [1, 1]} : vector<8x16xf32> to vector<1x16xf32>
    %128 = vector.shape_cast %127 : vector<1x16xf32> to vector<1x1x1x16xf32>
    %129 = vector.broadcast %126 : vector<2x8x8x1xf32> to vector<2x8x8x16xf32>
    %130 = vector.broadcast %128 : vector<1x1x1x16xf32> to vector<2x8x8x16xf32>
    %131 = arith.mulf %129, %130 : vector<2x8x8x16xf32>
    %132 = vector.extract_strided_slice %112 {offsets = [0, 0, 0, 3], sizes = [2, 8, 8, 1], strides = [1, 1, 1, 1]} : vector<2x8x8x8xf32> to vector<2x8x8x1xf32>
    %133 = vector.extract_strided_slice %113 {offsets = [3, 0], sizes = [1, 16], strides = [1, 1]} : vector<8x16xf32> to vector<1x16xf32>
    %134 = vector.shape_cast %133 : vector<1x16xf32> to vector<1x1x1x16xf32>
    %135 = vector.broadcast %132 : vector<2x8x8x1xf32> to vector<2x8x8x16xf32>
    %136 = vector.broadcast %134 : vector<1x1x1x16xf32> to vector<2x8x8x16xf32>
    %137 = arith.mulf %135, %136 : vector<2x8x8x16xf32>
    %138 = vector.extract_strided_slice %112 {offsets = [0, 0, 0, 4], sizes = [2, 8, 8, 1], strides = [1, 1, 1, 1]} : vector<2x8x8x8xf32> to vector<2x8x8x1xf32>
    %139 = vector.extract_strided_slice %113 {offsets = [4, 0], sizes = [1, 16], strides = [1, 1]} : vector<8x16xf32> to vector<1x16xf32>
    %140 = vector.shape_cast %139 : vector<1x16xf32> to vector<1x1x1x16xf32>
    %141 = vector.broadcast %138 : vector<2x8x8x1xf32> to vector<2x8x8x16xf32>
    %142 = vector.broadcast %140 : vector<1x1x1x16xf32> to vector<2x8x8x16xf32>
    %143 = arith.mulf %141, %142 : vector<2x8x8x16xf32>
    %144 = vector.extract_strided_slice %112 {offsets = [0, 0, 0, 5], sizes = [2, 8, 8, 1], strides = [1, 1, 1, 1]} : vector<2x8x8x8xf32> to vector<2x8x8x1xf32>
    %145 = vector.extract_strided_slice %113 {offsets = [5, 0], sizes = [1, 16], strides = [1, 1]} : vector<8x16xf32> to vector<1x16xf32>
    %146 = vector.shape_cast %145 : vector<1x16xf32> to vector<1x1x1x16xf32>
    %147 = vector.broadcast %144 : vector<2x8x8x1xf32> to vector<2x8x8x16xf32>
    %148 = vector.broadcast %146 : vector<1x1x1x16xf32> to vector<2x8x8x16xf32>
    %149 = arith.mulf %147, %148 : vector<2x8x8x16xf32>
    %150 = vector.extract_strided_slice %112 {offsets = [0, 0, 0, 6], sizes = [2, 8, 8, 1], strides = [1, 1, 1, 1]} : vector<2x8x8x8xf32> to vector<2x8x8x1xf32>
    %151 = vector.extract_strided_slice %113 {offsets = [6, 0], sizes = [1, 16], strides = [1, 1]} : vector<8x16xf32> to vector<1x16xf32>
    %152 = vector.shape_cast %151 : vector<1x16xf32> to vector<1x1x1x16xf32>
    %153 = vector.broadcast %150 : vector<2x8x8x1xf32> to vector<2x8x8x16xf32>
    %154 = vector.broadcast %152 : vector<1x1x1x16xf32> to vector<2x8x8x16xf32>
    %155 = arith.mulf %153, %154 : vector<2x8x8x16xf32>
    %156 = vector.extract_strided_slice %112 {offsets = [0, 0, 0, 7], sizes = [2, 8, 8, 1], strides = [1, 1, 1, 1]} : vector<2x8x8x8xf32> to vector<2x8x8x1xf32>
    %157 = vector.extract_strided_slice %113 {offsets = [7, 0], sizes = [1, 16], strides = [1, 1]} : vector<8x16xf32> to vector<1x16xf32>
    %158 = vector.shape_cast %157 : vector<1x16xf32> to vector<1x1x1x16xf32>
    %159 = vector.broadcast %156 : vector<2x8x8x1xf32> to vector<2x8x8x16xf32>
    %160 = vector.broadcast %158 : vector<1x1x1x16xf32> to vector<2x8x8x16xf32>
    %161 = arith.mulf %159, %160 : vector<2x8x8x16xf32>
    %162 = arith.addf %119, %125 : vector<2x8x8x16xf32>
    %163 = arith.addf %131, %137 : vector<2x8x8x16xf32>
    %164 = arith.addf %143, %149 : vector<2x8x8x16xf32>
    %165 = arith.addf %155, %161 : vector<2x8x8x16xf32>
    %166 = arith.addf %162, %163 : vector<2x8x8x16xf32>
    %167 = arith.addf %164, %165 : vector<2x8x8x16xf32>
    %168 = arith.addf %166, %167 : vector<2x8x8x16xf32>
    %c0_86 = arith.constant 0 : index
    %c0_87 = arith.constant 0 : index
    %169 = vector.load %arg9[%c0_86, %c0_87] : memref<1x16xf32, #tpu.memory_space<vmem>>, vector<1x16xf32>
    %170 = vector.shape_cast %169 : vector<1x16xf32> to vector<1x1x1x16xf32>
    %171 = vector.broadcast %170 : vector<1x1x1x16xf32> to vector<2x8x8x16xf32>
    %172 = arith.addf %168, %171 : vector<2x8x8x16xf32>
    %c0_88 = arith.constant 0 : index
    %c0_89 = arith.constant 0 : index
    %c0_90 = arith.constant 0 : index
    %c0_91 = arith.constant 0 : index
    %173 = vector.load %arg10[%c0_88, %c0_89, %c0_90, %c0_91] : memref<2x8x8x16xf32, #tpu.memory_space<vmem>>, vector<2x8x8x16xf32>
    tpu.vector_store %arg10[%c0_88, %c0_89, %c0_90, %c0_91], %172 {strides = array<i32>} : memref<2x8x8x16xf32, #tpu.memory_space<vmem>>, vector<2x8x8x16xf32>,
    return
  }
  func.func @transform_0(%arg0: i32) -> (i32, i32, i32, i32) {
    %c0_i32 = arith.constant 0 : i32
    %c0_i32_0 = arith.constant 0 : i32
    %c0_i32_1 = arith.constant 0 : i32
    %c0_i32_2 = arith.constant 0 : i32
    return %arg0, %c0_i32, %c0_i32_0, %c0_i32_1 : i32, i32, i32, i32
  }
  func.func @transform_1(%arg0: i32) -> (i32, i32) {
    %c0_i32 = arith.constant 0 : i32
    %c0_i32_0 = arith.constant 0 : i32
    %c0_i32_1 = arith.constant 0 : i32
    return %c0_i32, %c0_i32_0 : i32, i32
  }
  func.func @transform_2(%arg0: i32) -> (i32, i32) {
    %c0_i32 = arith.constant 0 : i32
    %c0_i32_0 = arith.constant 0 : i32
    %c0_i32_1 = arith.constant 0 : i32
    return %c0_i32, %c0_i32_0 : i32, i32
  }
  func.func @transform_3(%arg0: i32) -> (i32, i32) {
    %c0_i32 = arith.constant 0 : i32
    %c0_i32_0 = arith.constant 0 : i32
    %c0_i32_1 = arith.constant 0 : i32
    return %c0_i32, %c0_i32_0 : i32, i32
  }
  func.func @transform_4(%arg0: i32) -> (i32, i32) {
    %c0_i32 = arith.constant 0 : i32
    %c0_i32_0 = arith.constant 0 : i32
    %c0_i32_1 = arith.constant 0 : i32
    return %c0_i32, %c0_i32_0 : i32, i32
  }
  func.func @transform_5(%arg0: i32) -> (i32, i32) {
    %c0_i32 = arith.constant 0 : i32
    %c0_i32_0 = arith.constant 0 : i32
    %c0_i32_1 = arith.constant 0 : i32
    return %c0_i32, %c0_i32_0 : i32, i32
  }
  func.func @transform_6(%arg0: i32) -> (i32, i32) {
    %c0_i32 = arith.constant 0 : i32
    %c0_i32_0 = arith.constant 0 : i32
    %c0_i32_1 = arith.constant 0 : i32
    return %c0_i32, %c0_i32_0 : i32, i32
  }
  func.func @transform_7(%arg0: i32) -> (i32, i32) {
    %c0_i32 = arith.constant 0 : i32
    %c0_i32_0 = arith.constant 0 : i32
    %c0_i32_1 = arith.constant 0 : i32
    return %c0_i32, %c0_i32_0 : i32, i32
  }
  func.func @transform_8(%arg0: i32) -> (i32, i32) {
    %c0_i32 = arith.constant 0 : i32
    %c0_i32_0 = arith.constant 0 : i32
    %c0_i32_1 = arith.constant 0 : i32
    return %c0_i32, %c0_i32_0 : i32, i32
  }
  func.func @transform_9(%arg0: i32) -> (i32, i32, i32, i32) {
    %c0_i32 = arith.constant 0 : i32
    %c0_i32_0 = arith.constant 0 : i32
    %c0_i32_1 = arith.constant 0 : i32
    %c0_i32_2 = arith.constant 0 : i32
    return %arg0, %c0_i32, %c0_i32_0, %c0_i32_1 : i32, i32, i32, i32
  }
}

</mosaic_0001>

<bundles_post_ra>
// kernel: tpu_custom_call.1
= control target key start
LH: loop header
LB: loop body
LE: loop exit
PB: predicated region body
PF: predicated region fallthrough
CT: control target
= control target key end

     0   :  { %v7017_v2 = vmov 1   ;;  %v7013_v3 = vmov 0   ;;  %s7003_s0 = inlined_call_operand.vmem [shape: f32[2,16,16,4], index: 0, kind: input, shape index: {}]   ;;  %s7004_s1 = inlined_call_operand.vmem [shape: f32[4,8], index: 1, kind: input, shape index: {}]   ;;  %s7005_s2 = inlined_call_operand.vmem [shape: f32[1,8], index: 2, kind: input, shape index: {}]   ;;  %s7006_s3 = inlined_call_operand.vmem [shape: f32[1,8], index: 3, kind: input, shape index: {}]   ;;  %s7007_s4 = inlined_call_operand.vmem [shape: f32[9,8], index: 4, kind: input, shape index: {}]   ;;  %s7008_s5 = inlined_call_operand.vmem [shape: f32[1,8], index: 5, kind: input, shape index: {}]   ;;  %s7009_s6 = inlined_call_operand.vmem [shape: f32[1,8], index: 6, kind: input, shape index: {}]   ;;  %s7010_s7 = inlined_call_operand.vmem [shape: f32[8,16], index: 7, kind: input, shape index: {}]   ;;  %s7011_s8 = inlined_call_operand.vmem [shape: f32[1,16], index: 8, kind: input, shape index: {}]   ;;  %s7012_s9 = inlined_call_operand.hbm [shape: f32[2,8,8,16], index: 9, kind: output, shape index: {}]  }
   0x1   :  { %v3805_v0 = vld [vmem:[%s7003_s0 + $0x20] sm:$0xff]  ;;  %v3810_v1 = vld [vmem:[%s7003_s0 + $0x10] sm:$0xff]  ;;  %3638 = vset.pattern.permute.xlu0 %v7017_v2  ;;  %3635 = vset.pattern.permute.xlu2 %v7013_v3 }
   0x2   :  { %3634 = vset.pattern.permute.xlu1 %v7013_v3  ;;  %120 = vperm.xlu2 %3635, %v3805_v0  }
   0x3   :  { %492 = vperm.xlu0 %3638, %v3810_v1   ;;  %110 = vperm.xlu1 %3634, %v3810_v1  }
   0x4   :  { %14 = vsyncpa [#allocation4], 0  ;;  %v3821_v4 = vld [vmem:[%s7003_s0 + $0x28] sm:$0xff]  ;;  %v3826_v5 = vld [vmem:[%s7003_s0 + $0x38] sm:$0xff]  ;;  %v7015_v56 = vmov 2   ;;  %vm1902_vm0 = vcmask 64512  }
   0x5   :  { %v3831_v6 = vld [vmem:[%s7003_s0 + $0x18] sm:$0xff]  ;;  %v3839_v7 = vld [vmem:[%s7003_s0 + $0x40] sm:$0xff]  ;;  %v3844_v8 = vld [vmem:[%s7003_s0 + $0x50] sm:$0xff]  ;;  %vm1917_vm1 = vcmask 57344   ;;  %s3516_s14 = sshll.u32 %s7012_s9, 4  ;;  %s3750_s15 = smov 128   ;;  %s3517_s14 = int_to_ptr.hbm [resolvable:$true] %s3516_s14 }
   0x6   :  { %v3852_v9 = vld [vmem:[%s7003_s0 + $0x58] sm:$0xff]  ;;  %v3857_v10 = vld [vmem:[%s7003_s0 + $0x68] sm:$0xff]  ;;  %v3865_v11 = vld [vmem:[%s7003_s0 + $0x70] sm:$0xff]  ;;  %s3751_s16 = smov 8  }
   0x7   :  { %v3870_v12 = vld [vmem:[%s7003_s0 + $0x80] sm:$0xff]  ;;  %v3878_v13 = vld [vmem:[%s7003_s0 + $0x88] sm:$0xff]  ;;  %v3883_v14 = vld [vmem:[%s7003_s0 + $0x98] sm:$0xff] }
   0x8   :  { %v3891_v15 = vld [vmem:[%s7003_s0 + $0xa0] sm:$0xff]  ;;  %v3896_v16 = vld [vmem:[%s7003_s0 + $0xb0] sm:$0xff]  ;;  %v3904_v17 = vld [vmem:[%s7003_s0 + $0xb8] sm:$0xff] }
   0x9   :  { %7037 = vst [vmem:[#allocation6_spill] sm:$0xff] %v3891_v15  ;;  %v3909_v18 = vld [vmem:[%s7003_s0 + $0xc8] sm:$0xff]  ;;  %v3917_v19 = vld [vmem:[%s7003_s0 + $0xd0] sm:$0xff]  ;;  %v3922_v20 = vld [vmem:[%s7003_s0 + $0xe0] sm:$0xff] }
   0xa   :  { %125 = vperm.xlu2 %3635, %v3821_v4   ;;  %7038 = vst [vmem:[#allocation7_spill] sm:$0xff] %v3904_v17  ;;  %v3930_v21 = vld [vmem:[%s7003_s0 + $0xe8] sm:$0xff]  ;;  %v3935_v22 = vld [vmem:[%s7003_s0 + $0xf8] sm:$0xff]  ;;  %v3943_v23 = vld [vmem:[%s7003_s0 + $0x100] sm:$0xff] }
   0xb   :  { %512 = vperm.xlu0 %3638, %v3826_v5   ;;  %115 = vperm.xlu1 %3634, %v3831_v6   ;;  %v3948_v24 = vld [vmem:[%s7003_s0 + $0x110] sm:$0xff]  ;;  %v3956_v25 = vld [vmem:[%s7003_s0 + $0x118] sm:$0xff]  ;;  %v3961_v26 = vld [vmem:[%s7003_s0 + $0x128] sm:$0xff] }
   0xc   :  { %v3971_v28 = vld [vmem:[%s7003_s0 + $0x130] sm:$0xff]  ;;  %v3976_v29 = vld [vmem:[%s7003_s0 + $0x140] sm:$0xff]  ;;  %v3986_v31 = vld [vmem:[%s7003_s0 + $0x148] sm:$0xff] }
   0xd   :  { %v3991_v32 = vld [vmem:[%s7003_s0 + $0x158] sm:$0xff]  ;;  %v4001_v34 = vld [vmem:[%s7003_s0 + $0x160] sm:$0xff]  ;;  %v4006_v35 = vld [vmem:[%s7003_s0 + $0x170] sm:$0xff] }
   0xe   :  { %v4020_v39 = vld [vmem:[%s7003_s0 + $0x178] sm:$0xff]  ;;  %v4025_v40 = vld [vmem:[%s7003_s0 + $0x188] sm:$0xff]  ;;  %v4039_v44 = vld [vmem:[%s7003_s0 + $0x190] sm:$0xff] }
   0xf   :  { %v4044_v45 = vld [vmem:[%s7003_s0 + $0x1a0] sm:$0xff]  ;;  %v4058_v49 = vld [vmem:[%s7003_s0 + $0x1a8] sm:$0xff]  ;;  %v4063_v50 = vld [vmem:[%s7003_s0 + $0x1b8] sm:$0xff] }
  0x10   :  { %v4077_v54 = vld [vmem:[%s7003_s0 + $0x1c0] sm:$0xff]  ;;  %v4097_v60 = vld [vmem:[%s7003_s0 + $0x1d8] sm:$0xff]  ;;  %v4102_v61 = vld [vmem:[%s7003_s0 + $0x1d0] sm:$0xff] }
  0x11   :  { %v4082_v55 = vld [vmem:[%s7003_s0] sm:$0xff]  ;;  %v4121_v2 = vld [vmem:[%s7003_s0 + $0x1e8] sm:$0xff] }
  0x12   :  { %140 = vperm.xlu2 %3635, %v3839_v7  }
  0x13   :  { %524 = vperm.xlu0 %3638, %v3844_v8   ;;  %135 = vperm.xlu1 %3634, %v3826_v5  }
  0x1a   :  { %155 = vperm.xlu2 %3635, %v3852_v9  }
  0x1b   :  { %536 = vperm.xlu0 %3638, %v3857_v10   ;;  %150 = vperm.xlu1 %3634, %v3844_v8  }
  0x22   :  { %170 = vperm.xlu2 %3635, %v3865_v11  }
  0x23   :  { %548 = vperm.xlu0 %3638, %v3870_v12   ;;  %165 = vperm.xlu1 %3634, %v3857_v10  }
  0x2a   :  { %185 = vperm.xlu2 %3635, %v3878_v13  }
  0x2b   :  { %560 = vperm.xlu0 %3638, %v3883_v14   ;;  %180 = vperm.xlu1 %3634, %v3870_v12  }
  0x32   :  { %200 = vperm.xlu2 %3635, %v3891_v15  }
  0x33   :  { %572 = vperm.xlu0 %3638, %v3896_v16   ;;  %195 = vperm.xlu1 %3634, %v3883_v14  }
  0x3a   :  { %215 = vperm.xlu2 %3635, %v3904_v17  }
  0x3b   :  { %584 = vperm.xlu0 %3638, %v3909_v18   ;;  %210 = vperm.xlu1 %3634, %v3896_v16  }
  0x42   :  { %230 = vperm.xlu2 %3635, %v3917_v19  }
  0x43   :  { %596 = vperm.xlu0 %3638, %v3922_v20   ;;  %225 = vperm.xlu1 %3634, %v3909_v18  }
  0x4a   :  { %245 = vperm.xlu2 %3635, %v3930_v21  }
  0x4b   :  { %608 = vperm.xlu0 %3638, %v3935_v22   ;;  %240 = vperm.xlu1 %3634, %v3922_v20  }
  0x52   :  { %260 = vperm.xlu2 %3635, %v3943_v23  }
  0x53   :  { %620 = vperm.xlu0 %3638, %v3948_v24   ;;  %255 = vperm.xlu1 %3634, %v3935_v22  }
  0x5a   :  { %275 = vperm.xlu2 %3635, %v3956_v25  }
  0x5b   :  { %632 = vperm.xlu0 %3638, %v3961_v26   ;;  %270 = vperm.xlu1 %3634, %v3948_v24  }
  0x5c   :  { %v3966_v27 = vpop.permute.xlu2 %120 }
  0x62   :  { %290 = vperm.xlu2 %3635, %v3971_v28  }
  0x63   :  { %644 = vperm.xlu0 %3638, %v3976_v29   ;;  %285 = vperm.xlu1 %3634, %v3961_v26  }
  0x64   :  { %v3981_v30 = vpop.permute.xlu2 %125 }
  0x6a   :  { %305 = vperm.xlu2 %3635, %v3986_v31  }
  0x6b   :  { %656 = vperm.xlu0 %3638, %v3991_v32   ;;  %300 = vperm.xlu1 %3634, %v3976_v29  }
  0x6c   :  { %v3996_v33 = vpop.permute.xlu2 %140 }
  0x6d   :  { %7039 = vst [vmem:[#allocation8_spill] sm:$0xff] %v3996_v33 }
  0x72   :  { %320 = vperm.xlu2 %3635, %v4001_v34  }
  0x73   :  { %668 = vperm.xlu0 %3638, %v4006_v35   ;;  %315 = vperm.xlu1 %3634, %v3991_v32  }
  0x74   :  { %v4011_v36 = vpop.permute.xlu2 %155 }
  0x75   :  { %7040 = vst [vmem:[#allocation9_spill] sm:$0xff] %v4011_v36  ;;  %v4013_v37 = vpop.permute.xlu0 %492  ;;  %v4015_v38 = vpop.permute.xlu1 %110 }
  0x7a   :  { %335 = vperm.xlu2 %3635, %v4020_v39  }
  0x7b   :  { %680 = vperm.xlu0 %3638, %v4025_v40   ;;  %330 = vperm.xlu1 %3634, %v4006_v35  }
  0x7c   :  { %v4030_v41 = vpop.permute.xlu2 %170 }
  0x7d   :  { %7041 = vst [vmem:[#allocation10_spill] sm:$0xff] %v4030_v41  ;;  %v4032_v42 = vpop.permute.xlu0 %512  ;;  %v4034_v43 = vpop.permute.xlu1 %115 }
  0x7e   :  { %7042 = vst [vmem:[#allocation11_spill] sm:$0xff] %v4034_v43 }
  0x82   :  { %350 = vperm.xlu2 %3635, %v4039_v44  }
  0x83   :  { %692 = vperm.xlu0 %3638, %v4044_v45   ;;  %345 = vperm.xlu1 %3634, %v4025_v40  }
  0x84   :  { %v4049_v46 = vpop.permute.xlu2 %185 }
  0x85   :  { %7043 = vst [vmem:[#allocation12_spill] sm:$0xff] %v4049_v46  ;;  %v4051_v47 = vpop.permute.xlu0 %524  ;;  %v4053_v48 = vpop.permute.xlu1 %135  ;;  %v7055_v46 = vmov 1  }
  0x8a   :  { %365 = vperm.xlu2 %3635, %v4058_v49  }
  0x8b   :  { %704 = vperm.xlu0 %3638, %v4063_v50   ;;  %360 = vperm.xlu1 %3634, %v4044_v45  }
  0x8c   :  { %v4068_v51 = vpop.permute.xlu2 %200 }
  0x8d   :  { %7044 = vst [vmem:[#allocation13_spill] sm:$0xff] %v4068_v51  ;;  %v4070_v52 = vpop.permute.xlu0 %536  ;;  %v4072_v53 = vpop.permute.xlu1 %150  ;;  %v4135_v51 = vld [vmem:[%s7003_s0 + $0x8] sm:$0xff] }
  0x8e   :  { %7045 = vst [vmem:[#allocation14_spill] sm:$0xff] %v4070_v52 }
  0x92   :  { %380 = vperm.xlu2 %3635, %v4077_v54  }
  0x93   :  { %3639 = vset.pattern.permute.xlu0 %v7015_v56  ;;  %375 = vperm.xlu1 %3634, %v4063_v50   ;;  %v4116_v56 = vld [vmem:[%s7003_s0 + $0x1f0] sm:$0xff] }
  0x94   :  { %805 = vperm.xlu0 %3639, %v4082_v55   ;;  %v4088_v57 = vpop.permute.xlu2 %215 }
  0x95   :  { %7046 = vst [vmem:[#allocation15_spill] sm:$0xff] %v4088_v57  ;;  %v4090_v58 = vpop.permute.xlu0 %548  ;;  %v4092_v59 = vpop.permute.xlu1 %165 }
  0x96   :  { %7047 = vst [vmem:[#allocation16_spill] sm:$0xff] %v4090_v58 }
  0x97   :  { %7048 = vst [vmem:[#allocation17_spill] sm:$0xff] %v4092_v59 }
  0x9a   :  { %395 = vperm.xlu2 %3635, %v4097_v60  }
  0x9b   :  { %390 = vperm.xlu1 %3634, %v4102_v61  }
  0x9c   :  { %825 = vperm.xlu0 %3639, %v3821_v4   ;;  %v4107_v62 = vpop.permute.xlu2 %230 }
  0x9d   :  { %7049 = vst [vmem:[#allocation18_spill] sm:$0xff] %v4107_v62  ;;  %v4109_v63 = vpop.permute.xlu0 %560  ;;  %v4111_v3 = vpop.permute.xlu1 %180 }
  0x9e   :  { %7050 = vst [vmem:[#allocation19_spill] sm:$0xff] %v4109_v63 }
  0x9f   :  { %7051 = vst [vmem:[#allocation20_spill] sm:$0xff] %v4111_v3 }
  0xa2   :  { %410 = vperm.xlu2 %3635, %v4116_v56  }
  0xa3   :  { %405 = vperm.xlu1 %3634, %v4121_v2  }
  0xa4   :  { %837 = vperm.xlu0 %3639, %v3839_v7   ;;  %v4126_v62 = vpop.permute.xlu2 %245 }
  0xa5   :  { %7052 = vst [vmem:[#allocation21_spill] sm:$0xff] %v4126_v62  ;;  %v4128_v63 = vpop.permute.xlu0 %572  ;;  %v4130_v57 = vpop.permute.xlu1 %195 }
  0xa6   :  { %7053 = vst [vmem:[#allocation22_spill] sm:$0xff] %v4128_v63 }
  0xa7   :  { %7054 = vst [vmem:[#allocation23_spill] sm:$0xff] %v4130_v57 }
  0xaa   :  { %3637 = vset.pattern.permute.xlu2 %v7055_v46 }
  0xab   :  { %3636 = vset.pattern.permute.xlu1 %v7055_v46  ;;  %488 = vperm.xlu2 %3637, %v4135_v51  }
  0xac   :  { %849 = vperm.xlu0 %3639, %v3852_v9   ;;  %484 = vperm.xlu1 %3636, %v4082_v55   ;;  %v4142_v62 = vpop.permute.xlu2 %260 }
  0xad   :  { %7056 = vst [vmem:[#allocation24_spill] sm:$0xff] %v4142_v62  ;;  %v4144_v63 = vpop.permute.xlu0 %584  ;;  %v4146_v57 = vpop.permute.xlu1 %210  ;;  %v4160_v62 = vld [vmem:[%s7003_s0 + $0x30] sm:$0xff] }
  0xae   :  { %7057 = vst [vmem:[#allocation25_spill] sm:$0xff] %v4144_v63 }
  0xaf   :  { %7058 = vst [vmem:[#allocation26_spill] sm:$0xff] %v4146_v57 }
  0xb3   :  { %500 = vperm.xlu2 %3637, %v3805_v0  }
  0xb4   :  { %861 = vperm.xlu0 %3639, %v3865_v11   ;;  %496 = vperm.xlu1 %3636, %v3831_v6   ;;  %v4151_v43 = vpop.permute.xlu2 %275 }
  0xb5   :  { %7059 = vst [vmem:[#allocation27_spill] sm:$0xff] %v4151_v43  ;;  %v4153_v46 = vpop.permute.xlu0 %596  ;;  %v4155_v3 = vpop.permute.xlu1 %225 }
  0xb6   :  { %7060 = vst [vmem:[#allocation28_spill] sm:$0xff] %v4153_v46  ;;  %v4174_v46 = vld [vmem:[%s7003_s0 + $0x48] sm:$0xff] }
  0xb7   :  { %7061 = vst [vmem:[#allocation29_spill] sm:$0xff] %v4155_v3 }
  0xbb   :  { %508 = vperm.xlu2 %3637, %v4160_v62  }
  0xbc   :  { %873 = vperm.xlu0 %3639, %v3878_v13   ;;  %504 = vperm.xlu1 %3636, %v3821_v4   ;;  %v4165_v63 = vpop.permute.xlu2 %290 }
  0xbd   :  { %7062 = vst [vmem:[#allocation30_spill] sm:$0xff] %v4165_v63  ;;  %v4167_v57 = vpop.permute.xlu0 %608  ;;  %v4169_v43 = vpop.permute.xlu1 %240 }
  0xbe   :  { %7063 = vst [vmem:[#allocation31_spill] sm:$0xff] %v4167_v57  ;;  %v4188_v57 = vld [vmem:[%s7003_s0 + $0x60] sm:$0xff] }
  0xbf   :  { %7064 = vst [vmem:[#allocation32_spill] sm:$0xff] %v4169_v43 }
  0xc3   :  { %520 = vperm.xlu2 %3637, %v4174_v46  }
  0xc4   :  { %885 = vperm.xlu0 %3639, %v3891_v15   ;;  %516 = vperm.xlu1 %3636, %v3839_v7   ;;  %v4179_v3 = vpop.permute.xlu2 %305 }
  0xc5   :  { %7065 = vst [vmem:[#allocation33_spill] sm:$0xff] %v4179_v3  ;;  %v4181_v58 = vpop.permute.xlu0 %620  ;;  %v4183_v63 = vpop.permute.xlu1 %255 }
  0xc6   :  { %7066 = vst [vmem:[#allocation34_spill] sm:$0xff] %v4181_v58  ;;  %v4202_v58 = vld [vmem:[%s7003_s0 + $0x78] sm:$0xff] }
  0xc7   :  { %7067 = vst [vmem:[#allocation35_spill] sm:$0xff] %v4183_v63 }
  0xcb   :  { %532 = vperm.xlu2 %3637, %v4188_v57  }
  0xcc   :  { %897 = vperm.xlu0 %3639, %v3904_v17   ;;  %528 = vperm.xlu1 %3636, %v3852_v9   ;;  %v4193_v43 = vpop.permute.xlu2 %320 }
  0xcd   :  { %7068 = vst [vmem:[#allocation36_spill] sm:$0xff] %v4193_v43  ;;  %v4195_v41 = vpop.permute.xlu0 %632  ;;  %v4197_v3 = vpop.permute.xlu1 %270 }
  0xce   :  { %7069 = vst [vmem:[#allocation37_spill] sm:$0xff] %v4195_v41  ;;  %v4216_v41 = vld [vmem:[%s7003_s0 + $0x90] sm:$0xff] }
  0xcf   :  { %7070 = vst [vmem:[#allocation38_spill] sm:$0xff] %v4197_v3 }
  0xd3   :  { %544 = vperm.xlu2 %3637, %v4202_v58  }
  0xd4   :  { %909 = vperm.xlu0 %3639, %v3917_v19   ;;  %540 = vperm.xlu1 %3636, %v3865_v11   ;;  %v4207_v63 = vpop.permute.xlu2 %335 }
  0xd5   :  { %7071 = vst [vmem:[#allocation39_spill] sm:$0xff] %v4207_v63  ;;  %v4209_v59 = vpop.permute.xlu0 %644  ;;  %v4211_v43 = vpop.permute.xlu1 %285 }
  0xd6   :  { %7072 = vst [vmem:[#allocation40_spill] sm:$0xff] %v4209_v59  ;;  %v4230_v59 = vld [vmem:[%s7003_s0 + $0xa8] sm:$0xff] }
  0xd7   :  { %7073 = vst [vmem:[#allocation41_spill] sm:$0xff] %v4211_v43 }
  0xdb   :  { %556 = vperm.xlu2 %3637, %v4216_v41  }
  0xdc   :  { %921 = vperm.xlu0 %3639, %v3930_v21   ;;  %552 = vperm.xlu1 %3636, %v3878_v13   ;;  %v4221_v3 = vpop.permute.xlu2 %350 }
  0xdd   :  { %7074 = vst [vmem:[#allocation42_spill] sm:$0xff] %v4221_v3  ;;  %v4223_v52 = vpop.permute.xlu0 %656  ;;  %v4225_v63 = vpop.permute.xlu1 %300 }
  0xde   :  { %7075 = vst [vmem:[#allocation43_spill] sm:$0xff] %v4223_v52  ;;  %v4244_v52 = vld [vmem:[%s7003_s0 + $0xc0] sm:$0xff] }
  0xdf   :  { %7076 = vst [vmem:[#allocation44_spill] sm:$0xff] %v4225_v63 }
  0xe3   :  { %568 = vperm.xlu2 %3637, %v4230_v59  }
  0xe4   :  { %933 = vperm.xlu0 %3639, %v3943_v23   ;;  %564 = vperm.xlu1 %3636, %v3891_v15   ;;  %v4235_v43 = vpop.permute.xlu2 %365 }
  0xe5   :  { %7077 = vst [vmem:[#allocation45_spill] sm:$0xff] %v4235_v43  ;;  %v4237_v36 = vpop.permute.xlu0 %668  ;;  %v4239_v3 = vpop.permute.xlu1 %315 }
  0xe6   :  { %7078 = vst [vmem:[#allocation46_spill] sm:$0xff] %v4237_v36  ;;  %v4258_v36 = vld [vmem:[%s7003_s0 + $0xd8] sm:$0xff] }
  0xe7   :  { %7079 = vst [vmem:[#allocation47_spill] sm:$0xff] %v4239_v3 }
  0xeb   :  { %580 = vperm.xlu2 %3637, %v4244_v52  }
  0xec   :  { %945 = vperm.xlu0 %3639, %v3956_v25   ;;  %576 = vperm.xlu1 %3636, %v3904_v17   ;;  %v4249_v63 = vpop.permute.xlu2 %380 }
  0xed   :  { %7080 = vst [vmem:[#allocation48_spill] sm:$0xff] %v4249_v63  ;;  %v4251_v15 = vpop.permute.xlu0 %680  ;;  %v4253_v43 = vpop.permute.xlu1 %330 }
  0xee   :  { %7081 = vst [vmem:[#allocation49_spill] sm:$0xff] %v4251_v15  ;;  %v4272_v15 = vld [vmem:[%s7003_s0 + $0xf0] sm:$0xff] }
  0xef   :  { %7082 = vst [vmem:[#allocation50_spill] sm:$0xff] %v4253_v43 }
  0xf3   :  { %592 = vperm.xlu2 %3637, %v4258_v36  }
  0xf4   :  { %957 = vperm.xlu0 %3639, %v3971_v28   ;;  %588 = vperm.xlu1 %3636, %v3917_v19   ;;  %v4263_v3 = vpop.permute.xlu2 %395 }
  0xf5   :  { %7083 = vst [vmem:[#allocation51_spill] sm:$0xff] %v4263_v3  ;;  %v4265_v17 = vpop.permute.xlu0 %692  ;;  %v4267_v63 = vpop.permute.xlu1 %345 }
  0xf6   :  { %7084 = vst [vmem:[#allocation52_spill] sm:$0xff] %v4265_v17  ;;  %v4286_v17 = vld [vmem:[%s7003_s0 + $0x108] sm:$0xff] }
  0xf7   :  { %7085 = vst [vmem:[#allocation53_spill] sm:$0xff] %v4267_v63 }
  0xfb   :  { %604 = vperm.xlu2 %3637, %v4272_v15  }
  0xfc   :  { %969 = vperm.xlu0 %3639, %v3986_v31   ;;  %600 = vperm.xlu1 %3636, %v3930_v21   ;;  %v4277_v43 = vpop.permute.xlu2 %410 }
  0xfd   :  { %7086 = vst [vmem:[#allocation54_spill] sm:$0xff] %v4277_v43  ;;  %v4279_v19 = vpop.permute.xlu0 %704  ;;  %v4281_v3 = vpop.permute.xlu1 %360 }
  0xfe   :  { %7087 = vst [vmem:[#allocation55_spill] sm:$0xff] %v4279_v19  ;;  %v4300_v19 = vld [vmem:[%s7003_s0 + $0x120] sm:$0xff] }
  0xff   :  { %7088 = vst [vmem:[#allocation56_spill] sm:$0xff] %v4281_v3 }
 0x103   :  { %616 = vperm.xlu2 %3637, %v4286_v17  }
 0x104   :  { %981 = vperm.xlu0 %3639, %v4001_v34   ;;  %612 = vperm.xlu1 %3636, %v3943_v23  }
 0x105   :  { %v4291_v63 = vpop.permute.xlu1 %375  ;;  %v4293_v21 = vpop.permute.xlu2 %488 }
 0x106   :  { %7089 = vst [vmem:[#allocation57_spill] sm:$0xff] %v4291_v63  ;;  %v4295_v43 = vpop.permute.xlu0 %805 }
 0x107   :  { %7090 = vst [vmem:[#allocation58_spill] sm:$0xff] %v4293_v21 }
 0x108   :  { %7091 = vst [vmem:[#allocation59_spill] sm:$0xff] %v4295_v43  ;;  %v4314_v43 = vld [vmem:[%s7003_s0 + $0x138] sm:$0xff] }
 0x10b   :  { %628 = vperm.xlu2 %3637, %v4300_v19  }
 0x10c   :  { %993 = vperm.xlu0 %3639, %v4020_v39   ;;  %624 = vperm.xlu1 %3636, %v3956_v25  }
 0x10d   :  { %v4305_v3 = vpop.permute.xlu1 %390  ;;  %v4307_v23 = vpop.permute.xlu2 %500 }
 0x10e   :  { %7092 = vst [vmem:[#allocation60_spill] sm:$0xff] %v4305_v3  ;;  %v4309_v63 = vpop.permute.xlu0 %825 }
 0x10f   :  { %7093 = vst [vmem:[#allocation61_spill] sm:$0xff] %v4307_v23 }
 0x110   :  { %7094 = vst [vmem:[#allocation62_spill] sm:$0xff] %v4309_v63  ;;  %v4328_v63 = vld [vmem:[%s7003_s0 + $0x150] sm:$0xff] }
 0x113   :  { %640 = vperm.xlu2 %3637, %v4314_v43  }
 0x114   :  { %1005 = vperm.xlu0 %3639, %v4039_v44   ;;  %636 = vperm.xlu1 %3636, %v3971_v28  }
 0x115   :  { %v4319_v21 = vpop.permute.xlu1 %405  ;;  %v4321_v25 = vpop.permute.xlu2 %508 }
 0x116   :  { %7095 = vst [vmem:[#allocation63_spill] sm:$0xff] %v4319_v21  ;;  %v4323_v3 = vpop.permute.xlu0 %837 }
 0x117   :  { %7096 = vst [vmem:[#allocation64_spill] sm:$0xff] %v4321_v25 }
 0x118   :  { %7097 = vst [vmem:[#allocation65_spill] sm:$0xff] %v4323_v3  ;;  %v4342_v3 = vld [vmem:[%s7003_s0 + $0x168] sm:$0xff] }
 0x11b   :  { %652 = vperm.xlu2 %3637, %v4328_v63  }
 0x11c   :  { %1017 = vperm.xlu0 %3639, %v4058_v49   ;;  %648 = vperm.xlu1 %3636, %v3986_v31  }
 0x11d   :  { %v4333_v23 = vpop.permute.xlu2 %520 }
 0x11e   :  { %7098 = vst [vmem:[#allocation66_spill] sm:$0xff] %v4333_v23  ;;  %v4335_v28 = vpop.permute.xlu0 %849  ;;  %v4337_v21 = vpop.permute.xlu1 %484 }
 0x11f   :  { %7099 = vst [vmem:[#allocation67_spill] sm:$0xff] %v4335_v28 }
 0x120   :  { %7100 = vst [vmem:[#allocation68_spill] sm:$0xff] %v4337_v21  ;;  %v4356_v21 = vld [vmem:[%s7003_s0 + $0x180] sm:$0xff] }
 0x123   :  { %664 = vperm.xlu2 %3637, %v4342_v3  }
 0x124   :  { %1029 = vperm.xlu0 %3639, %v4077_v54   ;;  %660 = vperm.xlu1 %3636, %v4001_v34  }
 0x125   :  { %v4347_v25 = vpop.permute.xlu2 %532 }
 0x126   :  { %7101 = vst [vmem:[#allocation69_spill] sm:$0xff] %v4347_v25  ;;  %v4349_v31 = vpop.permute.xlu0 %861  ;;  %v4351_v23 = vpop.permute.xlu1 %496 }
 0x127   :  { %7102 = vst [vmem:[#allocation70_spill] sm:$0xff] %v4349_v31  ;;  %v4370_v31 = vld [vmem:[%s7003_s0 + $0x198] sm:$0xff] }
 0x128   :  { %7103 = vst [vmem:[#allocation71_spill] sm:$0xff] %v4351_v23 }
 0x129   :  { %7107 = vst [vmem:[#allocation75_spill] sm:$0xff] %v4370_v31 }
 0x12b   :  { %676 = vperm.xlu2 %3637, %v4356_v21  }
 0x12c   :  { %1041 = vperm.xlu0 %3639, %v4097_v60   ;;  %672 = vperm.xlu1 %3636, %v4020_v39  }
 0x12d   :  { %v4361_v28 = vpop.permute.xlu2 %544 }
 0x12e   :  { %7104 = vst [vmem:[#allocation72_spill] sm:$0xff] %v4361_v28  ;;  %v4363_v34 = vpop.permute.xlu0 %873  ;;  %v4365_v25 = vpop.permute.xlu1 %504 }
 0x12f   :  { %7105 = vst [vmem:[#allocation73_spill] sm:$0xff] %v4363_v34  ;;  %v4384_v34 = vld [vmem:[%s7003_s0 + $0x1b0] sm:$0xff] }
 0x130   :  { %7106 = vst [vmem:[#allocation74_spill] sm:$0xff] %v4365_v25  ;;  %v7022_v25 = vmov 3  }
 0x133   :  { %688 = vperm.xlu2 %3637, %v4370_v31  }
 0x134   :  { %1053 = vperm.xlu0 %3639, %v4116_v56   ;;  %684 = vperm.xlu1 %3636, %v4039_v44  }
 0x135   :  { %v4375_v23 = vpop.permute.xlu2 %556 }
 0x136   :  { %7108 = vst [vmem:[#allocation76_spill] sm:$0xff] %v4375_v23  ;;  %v4377_v39 = vpop.permute.xlu0 %885  ;;  %v4379_v28 = vpop.permute.xlu1 %516 }
 0x137   :  { %7109 = vst [vmem:[#allocation77_spill] sm:$0xff] %v4377_v39 }
 0x138   :  { %7110 = vst [vmem:[#allocation78_spill] sm:$0xff] %v4379_v28  ;;  %v4399_v28 = vld [vmem:[%s7003_s0 + $0x1c8] sm:$0xff] }
 0x13b   :  { %700 = vperm.xlu2 %3637, %v4384_v34  }
 0x13c   :  { %3643 = vset.pattern.permute.xlu0 %v7022_v25  ;;  %696 = vperm.xlu1 %3636, %v4058_v49  }
 0x13d   :  { %1130 = vperm.xlu0 %3643, %v4135_v51   ;;  %v4390_v44 = vpop.permute.xlu2 %568 }
 0x13e   :  { %7111 = vst [vmem:[#allocation79_spill] sm:$0xff] %v4390_v44  ;;  %v4392_v23 = vpop.permute.xlu0 %897  ;;  %v4394_v39 = vpop.permute.xlu1 %528 }
 0x13f   :  { %7112 = vst [vmem:[#allocation80_spill] sm:$0xff] %v4392_v23  ;;  %v4413_v23 = vld [vmem:[%s7003_s0 + $0x1e0] sm:$0xff] }
 0x140   :  { %7113 = vst [vmem:[#allocation81_spill] sm:$0xff] %v4394_v39 }
 0x143   :  { %712 = vperm.xlu2 %3637, %v4399_v28  }
 0x144   :  { %708 = vperm.xlu1 %3636, %v4077_v54  }
 0x145   :  { %1150 = vperm.xlu0 %3643, %v4160_v62   ;;  %v4404_v49 = vpop.permute.xlu2 %580 }
 0x146   :  { %7114 = vst [vmem:[#allocation82_spill] sm:$0xff] %v4404_v49  ;;  %v4406_v25 = vpop.permute.xlu0 %909  ;;  %v4408_v44 = vpop.permute.xlu1 %540 }
 0x147   :  { %7115 = vst [vmem:[#allocation83_spill] sm:$0xff] %v4406_v25  ;;  %v4427_v25 = vld [vmem:[%s7003_s0 + $0x1f8] sm:$0xff] }
 0x148   :  { %7116 = vst [vmem:[#allocation84_spill] sm:$0xff] %v4408_v44 }
 0x14b   :  { %724 = vperm.xlu2 %3637, %v4413_v23  }
 0x14c   :  { %720 = vperm.xlu1 %3636, %v4097_v60  }
 0x14d   :  { %1162 = vperm.xlu0 %3643, %v4174_v46   ;;  %v4418_v54 = vpop.permute.xlu2 %592 }
 0x14e   :  { %7117 = vst [vmem:[#allocation85_spill] sm:$0xff] %v4418_v54  ;;  %v4420_v39 = vpop.permute.xlu0 %921  ;;  %v4422_v49 = vpop.permute.xlu1 %552 }
 0x14f   :  { %7118 = vst [vmem:[#allocation86_spill] sm:$0xff] %v4420_v39  ;;  %v7122_v39 = vmov 2  }
 0x150   :  { %7119 = vst [vmem:[#allocation87_spill] sm:$0xff] %v4422_v49 }
 0x153   :  { %736 = vperm.xlu2 %3637, %v4427_v25  }
 0x154   :  { %732 = vperm.xlu1 %3636, %v4116_v56  }
 0x155   :  { %1174 = vperm.xlu0 %3643, %v4188_v57   ;;  %v4432_v60 = vpop.permute.xlu2 %604 }
 0x156   :  { %7120 = vst [vmem:[#allocation88_spill] sm:$0xff] %v4432_v60  ;;  %v4434_v44 = vpop.permute.xlu0 %933  ;;  %v4436_v54 = vpop.permute.xlu1 %564 }
 0x157   :  { %7121 = vst [vmem:[#allocation89_spill] sm:$0xff] %v4434_v44 }
 0x15b   :  { %3641 = vset.pattern.permute.xlu2 %v7122_v39 }
 0x15c   :  { %3640 = vset.pattern.permute.xlu1 %v7122_v39  ;;  %813 = vperm.xlu2 %3641, %v3810_v1  }
 0x15d   :  { %1186 = vperm.xlu0 %3643, %v4202_v58   ;;  %809 = vperm.xlu1 %3640, %v4135_v51   ;;  %v4443_v49 = vpop.permute.xlu2 %616 }
 0x15e   :  { %7123 = vst [vmem:[#allocation90_spill] sm:$0xff] %v4443_v49  ;;  %v4445_v56 = vpop.permute.xlu0 %945  ;;  %v4447_v33 = vpop.permute.xlu1 %576 }
 0x15f   :  { %7124 = vst [vmem:[#allocation91_spill] sm:$0xff] %v4445_v56 }
 0x160   :  { %7125 = vst [vmem:[#allocation92_spill] sm:$0xff] %v4447_v33 }
 0x164   :  { %821 = vperm.xlu2 %3641, %v3805_v0  }
 0x165   :  { %1198 = vperm.xlu0 %3643, %v4216_v41   ;;  %817 = vperm.xlu1 %3640, %v3831_v6   ;;  %v4452_v44 = vpop.permute.xlu2 %628 }
 0x166   :  { %7126 = vst [vmem:[#allocation93_spill] sm:$0xff] %v4452_v44  ;;  %v4454_v39 = vpop.permute.xlu0 %957  ;;  %v4456_v60 = vpop.permute.xlu1 %588 }
 0x167   :  { %7127 = vst [vmem:[#allocation94_spill] sm:$0xff] %v4454_v39 }
 0x168   :  { %7128 = vst [vmem:[#allocation95_spill] sm:$0xff] %v4456_v60 }
 0x16c   :  { %833 = vperm.xlu2 %3641, %v3826_v5  }
 0x16d   :  { %1210 = vperm.xlu0 %3643, %v4230_v59   ;;  %829 = vperm.xlu1 %3640, %v4160_v62   ;;  %v4461_v56 = vpop.permute.xlu2 %640 }
 0x16e   :  { %7129 = vst [vmem:[#allocation96_spill] sm:$0xff] %v4461_v56  ;;  %v4463_v49 = vpop.permute.xlu0 %969  ;;  %v4465_v33 = vpop.permute.xlu1 %600 }
 0x16f   :  { %7130 = vst [vmem:[#allocation97_spill] sm:$0xff] %v4463_v49 }
 0x170   :  { %7131 = vst [vmem:[#allocation98_spill] sm:$0xff] %v4465_v33 }
 0x174   :  { %845 = vperm.xlu2 %3641, %v3844_v8  }
 0x175   :  { %1222 = vperm.xlu0 %3643, %v4244_v52   ;;  %841 = vperm.xlu1 %3640, %v4174_v46   ;;  %v4470_v39 = vpop.permute.xlu2 %652 }
 0x176   :  { %7132 = vst [vmem:[#allocation99_spill] sm:$0xff] %v4470_v39  ;;  %v4472_v44 = vpop.permute.xlu0 %981  ;;  %v4474_v60 = vpop.permute.xlu1 %612 }
 0x177   :  { %7133 = vst [vmem:[#allocation100_spill] sm:$0xff] %v4472_v44 }
 0x178   :  { %7134 = vst [vmem:[#allocation101_spill] sm:$0xff] %v4474_v60 }
 0x17c   :  { %857 = vperm.xlu2 %3641, %v3857_v10  }
 0x17d   :  { %1234 = vperm.xlu0 %3643, %v4258_v36   ;;  %853 = vperm.xlu1 %3640, %v4188_v57   ;;  %v4479_v49 = vpop.permute.xlu2 %664 }
 0x17e   :  { %7135 = vst [vmem:[#allocation102_spill] sm:$0xff] %v4479_v49  ;;  %v4481_v56 = vpop.permute.xlu0 %993  ;;  %v4483_v33 = vpop.permute.xlu1 %624 }
 0x17f   :  { %7136 = vst [vmem:[#allocation103_spill] sm:$0xff] %v4481_v56 }
 0x180   :  { %7137 = vst [vmem:[#allocation104_spill] sm:$0xff] %v4483_v33 }
 0x184   :  { %869 = vperm.xlu2 %3641, %v3870_v12  }
 0x185   :  { %1246 = vperm.xlu0 %3643, %v4272_v15   ;;  %865 = vperm.xlu1 %3640, %v4202_v58   ;;  %v4488_v44 = vpop.permute.xlu2 %676 }
 0x186   :  { %7138 = vst [vmem:[#allocation105_spill] sm:$0xff] %v4488_v44  ;;  %v4490_v39 = vpop.permute.xlu0 %1005  ;;  %v4492_v60 = vpop.permute.xlu1 %636 }
 0x187   :  { %7139 = vst [vmem:[#allocation106_spill] sm:$0xff] %v4490_v39 }
 0x188   :  { %7140 = vst [vmem:[#allocation107_spill] sm:$0xff] %v4492_v60 }
 0x18c   :  { %881 = vperm.xlu2 %3641, %v3883_v14  }
 0x18d   :  { %1258 = vperm.xlu0 %3643, %v4286_v17   ;;  %877 = vperm.xlu1 %3640, %v4216_v41   ;;  %v4497_v56 = vpop.permute.xlu2 %688 }
 0x18e   :  { %7141 = vst [vmem:[#allocation108_spill] sm:$0xff] %v4497_v56  ;;  %v4499_v49 = vpop.permute.xlu0 %1017  ;;  %v4501_v33 = vpop.permute.xlu1 %648 }
 0x18f   :  { %7142 = vst [vmem:[#allocation109_spill] sm:$0xff] %v4499_v49 }
 0x190   :  { %7143 = vst [vmem:[#allocation110_spill] sm:$0xff] %v4501_v33 }
 0x194   :  { %893 = vperm.xlu2 %3641, %v3896_v16  }
 0x195   :  { %1270 = vperm.xlu0 %3643, %v4300_v19   ;;  %889 = vperm.xlu1 %3640, %v4230_v59   ;;  %v4506_v39 = vpop.permute.xlu2 %700 }
 0x196   :  { %7144 = vst [vmem:[#allocation111_spill] sm:$0xff] %v4506_v39  ;;  %v4508_v44 = vpop.permute.xlu0 %1029  ;;  %v4510_v60 = vpop.permute.xlu1 %660 }
 0x197   :  { %7145 = vst [vmem:[#allocation112_spill] sm:$0xff] %v4508_v44 }
 0x19c   :  { %905 = vperm.xlu2 %3641, %v3909_v18  }
 0x19d   :  { %1282 = vperm.xlu0 %3643, %v4314_v43   ;;  %901 = vperm.xlu1 %3640, %v4244_v52   ;;  %v4515_v49 = vpop.permute.xlu2 %712 }
 0x19e   :  { %7146 = vst [vmem:[#allocation113_spill] sm:$0xff] %v4515_v49  ;;  %v4517_v56 = vpop.permute.xlu0 %1041  ;;  %v4519_v33 = vpop.permute.xlu1 %672 }
 0x19f   :  { %7147 = vst [vmem:[#allocation114_spill] sm:$0xff] %v4517_v56 }
 0x1a4   :  { %917 = vperm.xlu2 %3641, %v3922_v20  }
 0x1a5   :  { %1294 = vperm.xlu0 %3643, %v4328_v63   ;;  %913 = vperm.xlu1 %3640, %v4258_v36   ;;  %v4524_v44 = vpop.permute.xlu2 %724 }
 0x1a6   :  { %7148 = vst [vmem:[#allocation115_spill] sm:$0xff] %v4524_v44  ;;  %v4526_v39 = vpop.permute.xlu0 %1053  ;;  %v4528_v18 = vpop.permute.xlu1 %684 }
 0x1a7   :  { %7149 = vst [vmem:[#allocation116_spill] sm:$0xff] %v4526_v39 }
 0x1ac   :  { %929 = vperm.xlu2 %3641, %v3935_v22  }
 0x1ad   :  { %1306 = vperm.xlu0 %3643, %v4342_v3   ;;  %925 = vperm.xlu1 %3640, %v4272_v15   ;;  %v4533_v56 = vpop.permute.xlu2 %736 }
 0x1ae   :  { %7150 = vst [vmem:[#allocation117_spill] sm:$0xff] %v4533_v56  ;;  %v4535_v49 = vpop.permute.xlu1 %696 }
 0x1af   :  { %v4537_v20 = vpop.permute.xlu0 %1130 }
 0x1b0   :  { %7151 = vst [vmem:[#allocation118_spill] sm:$0xff] %v4537_v20 }
 0x1b4   :  { %941 = vperm.xlu2 %3641, %v3948_v24  }
 0x1b5   :  { %1318 = vperm.xlu0 %3643, %v4356_v21   ;;  %937 = vperm.xlu1 %3640, %v4286_v17  }
 0x1b6   :  { %v4542_v39 = vpop.permute.xlu1 %708  ;;  %v4544_v44 = vpop.permute.xlu2 %813 }
 0x1b7   :  { %7152 = vst [vmem:[#allocation119_spill] sm:$0xff] %v4544_v44  ;;  %v4546_v22 = vpop.permute.xlu0 %1150 }
 0x1b8   :  { %7153 = vst [vmem:[#allocation120_spill] sm:$0xff] %v4546_v22 }
 0x1bc   :  { %953 = vperm.xlu2 %3641, %v3961_v26  }
 0x1bd   :  { %1330 = vperm.xlu0 %3643, %v4370_v31   ;;  %949 = vperm.xlu1 %3640, %v4300_v19  }
 0x1be   :  { %v4551_v56 = vpop.permute.xlu1 %720  ;;  %v4553_v20 = vpop.permute.xlu2 %821 }
 0x1bf   :  { %7154 = vst [vmem:[#allocation121_spill] sm:$0xff] %v4553_v20  ;;  %v4555_v24 = vpop.permute.xlu0 %1162 }
 0x1c0   :  { %7155 = vst [vmem:[#allocation122_spill] sm:$0xff] %v4555_v24 }
 0x1c4   :  { %965 = vperm.xlu2 %3641, %v3976_v29  }
 0x1c5   :  { %1342 = vperm.xlu0 %3643, %v4384_v34   ;;  %961 = vperm.xlu1 %3640, %v4314_v43  }
 0x1c6   :  { %v4560_v44 = vpop.permute.xlu1 %732  ;;  %v4562_v22 = vpop.permute.xlu2 %833 }
 0x1c7   :  { %7156 = vst [vmem:[#allocation123_spill] sm:$0xff] %v4560_v44  ;;  %v4564_v26 = vpop.permute.xlu0 %1174  ;;  %v7164_v44 = vmov 0  }
 0x1c8   :  { %7157 = vst [vmem:[#allocation124_spill] sm:$0xff] %v4562_v22 }
 0x1c9   :  { %7158 = vst [vmem:[#allocation125_spill] sm:$0xff] %v4564_v26 }
 0x1cc   :  { %977 = vperm.xlu2 %3641, %v3991_v32  }
 0x1cd   :  { %1354 = vperm.xlu0 %3643, %v4399_v28   ;;  %973 = vperm.xlu1 %3640, %v4328_v63  }
 0x1ce   :  { %v4569_v20 = vpop.permute.xlu2 %845 }
 0x1cf   :  { %7159 = vst [vmem:[#allocation126_spill] sm:$0xff] %v4569_v20  ;;  %v4571_v24 = vpop.permute.xlu0 %1186  ;;  %v4573_v29 = vpop.permute.xlu1 %809 }
 0x1d0   :  { %7160 = vst [vmem:[#allocation127_spill] sm:$0xff] %v4571_v24 }
 0x1d4   :  { %989 = vperm.xlu2 %3641, %v4006_v35  }
 0x1d5   :  { %1366 = vperm.xlu0 %3643, %v4413_v23   ;;  %985 = vperm.xlu1 %3640, %v4342_v3  }
 0x1d6   :  { %v4578_v22 = vpop.permute.xlu2 %857 }
 0x1d7   :  { %7161 = vst [vmem:[#allocation128_spill] sm:$0xff] %v4578_v22  ;;  %v4580_v26 = vpop.permute.xlu0 %1198  ;;  %v4582_v32 = vpop.permute.xlu1 %817 }
 0x1d8   :  { %7162 = vst [vmem:[#allocation129_spill] sm:$0xff] %v4580_v26 }
 0x1dc   :  { %1001 = vperm.xlu2 %3641, %v4025_v40  }
 0x1dd   :  { %1378 = vperm.xlu0 %3643, %v4427_v25   ;;  %997 = vperm.xlu1 %3640, %v4356_v21  }
 0x1de   :  { %v4587_v24 = vpop.permute.xlu2 %869 }
 0x1df   :  { %v4589_v20 = vpop.permute.xlu0 %1210  ;;  %v4591_v35 = vpop.permute.xlu1 %829 }
 0x1e0   :  { %7163 = vst [vmem:[#allocation130_spill] sm:$0xff] %v4589_v20 }
 0x1e4   :  { %1013 = vperm.xlu2 %3641, %v4044_v45  }
 0x1e5   :  { %3645 = vset.pattern.permute.xlu0 %v7164_v44  ;;  %1009 = vperm.xlu1 %3640, %v4370_v31  }
 0x1e6   :  { %100 = vperm.xlu0 %3645, %v4082_v55   ;;  %v4597_v26 = vpop.permute.xlu2 %881 }
 0x1e7   :  { %v4599_v40 = vpop.permute.xlu0 %1222  ;;  %v4601_v22 = vpop.permute.xlu1 %841 }
 0x1e8   :  { %7165 = vst [vmem:[#allocation131_spill] sm:$0xff] %v4599_v40 }
 0x1ec   :  { %1025 = vperm.xlu2 %3641, %v4063_v50  }
 0x1ed   :  { %1021 = vperm.xlu1 %3640, %v4384_v34  }
 0x1ee   :  { %105 = vperm.xlu0 %3645, %v4135_v51   ;;  %v4606_v20 = vpop.permute.xlu2 %893 }
 0x1ef   :  { %v4608_v45 = vpop.permute.xlu0 %1234  ;;  %v4610_v44 = vpop.permute.xlu1 %853 }
 0x1f4   :  { %1037 = vperm.xlu2 %3641, %v4102_v61  }
 0x1f5   :  { %1033 = vperm.xlu1 %3640, %v4399_v28   ;;  %v7171_v28 = vmov 3  }
 0x1f6   :  { %130 = vperm.xlu0 %3645, %v4160_v62   ;;  %v4615_v31 = vpop.permute.xlu2 %905 }
 0x1f7   :  { %7166 = vst [vmem:[#allocation132_spill] sm:$0xff] %v4615_v31  ;;  %v4617_v40 = vpop.permute.xlu0 %1246  ;;  %v4619_v50 = vpop.permute.xlu1 %865 }
 0x1f8   :  { %7167 = vst [vmem:[#allocation133_spill] sm:$0xff] %v4617_v40  ;;  %v7264_v40 = vld [vmem:[#allocation48_spill] sm:$0xff] }
 0x1fc   :  { %1049 = vperm.xlu2 %3641, %v4121_v2  }
 0x1fd   :  { %1045 = vperm.xlu1 %3640, %v4413_v23  }
 0x1fe   :  { %145 = vperm.xlu0 %3645, %v4174_v46   ;;  %v4624_v51 = vpop.permute.xlu2 %917 }
 0x1ff   :  { %7168 = vst [vmem:[#allocation134_spill] sm:$0xff] %v4624_v51  ;;  %v4626_v34 = vpop.permute.xlu0 %1258  ;;  %v4628_v61 = vpop.permute.xlu1 %877 }
 0x200   :  { %7169 = vst [vmem:[#allocation135_spill] sm:$0xff] %v4626_v34  ;;  %v7247_v34 = vld [vmem:[#allocation43_spill] sm:$0xff] }
 0x201   :  { %7170 = vst [vmem:[#allocation136_spill] sm:$0xff] %v4628_v61  ;;  %v7297_v61 = vld [vmem:[#allocation72_spill] sm:$0xff] }
 0x204   :  { %3642 = vset.pattern.permute.xlu2 %v7171_v28 }
 0x205   :  { %1057 = vperm.xlu1 %3640, %v4427_v25   ;;  %1126 = vperm.xlu2 %3642, %v4082_v55  }
 0x206   :  { %160 = vperm.xlu0 %3645, %v4188_v57   ;;  %v4634_v62 = vpop.permute.xlu2 %929 }
 0x207   :  { %7172 = vst [vmem:[#allocation137_spill] sm:$0xff] %v4634_v62  ;;  %v4636_v2 = vpop.permute.xlu0 %1270  ;;  %v4638_v23 = vpop.permute.xlu1 %889 }
 0x208   :  { %7173 = vst [vmem:[#allocation138_spill] sm:$0xff] %v4636_v2  ;;  %v7236_v2 = vld [vmem:[#allocation44_spill] sm:$0xff] }
 0x209   :  { %7174 = vst [vmem:[#allocation139_spill] sm:$0xff] %v4638_v23  ;;  %v7263_v23 = vld [vmem:[#allocation61_spill] sm:$0xff] }
 0x20d   :  { %3644 = vset.pattern.permute.xlu1 %v7171_v28  ;;  %1138 = vperm.xlu2 %3642, %v3831_v6  }
 0x20e   :  { %175 = vperm.xlu0 %3645, %v4202_v58   ;;  %1134 = vperm.xlu1 %3644, %v3810_v1   ;;  %v4644_v46 = vpop.permute.xlu2 %941 }
 0x20f   :  { %7175 = vst [vmem:[#allocation140_spill] sm:$0xff] %v4644_v46  ;;  %v4646_v25 = vpop.permute.xlu0 %1282  ;;  %v4648_v55 = vpop.permute.xlu1 %901 }
 0x210   :  { %7176 = vst [vmem:[#allocation141_spill] sm:$0xff] %v4646_v25 }
 0x211   :  { %7177 = vst [vmem:[#allocation142_spill] sm:$0xff] %v4648_v55  ;;  %v7232_v55 = vld [vmem:[#allocation41_spill] sm:$0xff] }
 0x215   :  { %1146 = vperm.xlu2 %3642, %v3821_v4  }
 0x216   :  { %190 = vperm.xlu0 %3645, %v4216_v41   ;;  %1142 = vperm.xlu1 %3644, %v3805_v0   ;;  %v4653_v57 = vpop.permute.xlu2 %953 }
 0x217   :  { %7178 = vst [vmem:[#allocation143_spill] sm:$0xff] %v4653_v57  ;;  %v4655_v28 = vpop.permute.xlu0 %1294  ;;  %v4657_v6 = vpop.permute.xlu1 %913 }
 0x218   :  { %7179 = vst [vmem:[#allocation144_spill] sm:$0xff] %v4655_v28 }
 0x219   :  { %7180 = vst [vmem:[#allocation145_spill] sm:$0xff] %v4657_v6 }
 0x21d   :  { %1158 = vperm.xlu2 %3642, %v3839_v7  }
 0x21e   :  { %205 = vperm.xlu0 %3645, %v4230_v59   ;;  %1154 = vperm.xlu1 %3644, %v3826_v5   ;;  %v4662_v1 = vpop.permute.xlu2 %965 }
 0x21f   :  { %7181 = vst [vmem:[#allocation146_spill] sm:$0xff] %v4662_v1  ;;  %v4664_v58 = vpop.permute.xlu0 %1306  ;;  %v4666_v4 = vpop.permute.xlu1 %925 }
 0x220   :  { %7182 = vst [vmem:[#allocation147_spill] sm:$0xff] %v4664_v58 }
 0x221   :  { %7183 = vst [vmem:[#allocation148_spill] sm:$0xff] %v4666_v4 }
 0x225   :  { %1170 = vperm.xlu2 %3642, %v3852_v9   ;;  %v4685_v9 = vld [vmem:[%s7004_s1] sm:$0xf] }
 0x226   :  { %220 = vperm.xlu0 %3645, %v4244_v52   ;;  %1166 = vperm.xlu1 %3644, %v3844_v8   ;;  %v4671_v0 = vpop.permute.xlu2 %977  ;;  %v4692_v59 = vperm.slane %v4685_v9, 0 }
 0x227   :  { %7184 = vst [vmem:[#allocation149_spill] sm:$0xff] %v4671_v0  ;;  %v4673_v41 = vpop.permute.xlu0 %1318  ;;  %v4675_v7 = vpop.permute.xlu1 %937  ;;  %v7197_v0 = vld [vmem:[#allocation17_spill] sm:$0xff] }
 0x228   :  { %7185 = vst [vmem:[#allocation150_spill] sm:$0xff] %v4673_v41 }
 0x229   :  { %7186 = vst [vmem:[#allocation151_spill] sm:$0xff] %v4675_v7  ;;  %v7201_v7 = vld [vmem:[#allocation20_spill] sm:$0xff] }
 0x22a   :  { %v435_v28 = vmul.f32 %v4692_v59, %v7201_v7  ;;  %v7208_v7 = vld [vmem:[#allocation15_spill] sm:$0xff] }
 0x22b   :  { %v4768_v6 = vmul.f32 %v4692_v59, %v7208_v7  ;;  %v7216_v7 = vld [vmem:[#allocation22_spill] sm:$0xff] }
 0x22d   :  { %1182 = vperm.xlu2 %3642, %v3865_v11   ;;  %v4695_v11 = vperm.slane %v4685_v9, 1 }
 0x22e   :  { %235 = vperm.xlu0 %3645, %v4258_v36   ;;  %1178 = vperm.xlu1 %3644, %v3857_v10   ;;  %v4680_v5 = vpop.permute.xlu2 %989  ;;  %v421_v36 = vmul.f32 %v4692_v59, %v4015_v38  ;;  %v429_v38 = vmul.f32 %v4692_v59, %v4072_v53  ;;  %v7200_v53 = vld [vmem:[#allocation16_spill] sm:$0xff] }
 0x22f   :  { %7187 = vst [vmem:[#allocation152_spill] sm:$0xff] %v4680_v5  ;;  %v4687_v8 = vpop.permute.xlu0 %1330  ;;  %v4689_v52 = vpop.permute.xlu1 %949  ;;  %v742_v10 = vmul.f32 %v4695_v11, %v4013_v37  ;;  %v747_v5 = vmul.f32 %v4695_v11, %v4032_v42  ;;  %v4716_v37 = vmul.f32 %v4692_v59, %v3966_v27  ;;  %v7194_v42 = vld [vmem:[#allocation8_spill] sm:$0xff]  ;;  %v7196_v27 = vld [vmem:[#allocation14_spill] sm:$0xff]  ;;  %v762_v46 = vmul.f32 %v4695_v11, %v7216_v7 }
 0x230   :  { %7188 = vst [vmem:[#allocation153_spill] sm:$0xff] %v4687_v8 }
 0x231   :  { %7189 = vst [vmem:[#allocation154_spill] sm:$0xff] %v4689_v52  ;;  %v426_v52 = vmul.f32 %v4692_v59, %v4053_v48  ;;  %v4728_v48 = vmul.f32 %v4692_v59, %v7194_v42  ;;  %v4738_v58 = vadd.f32 %v742_v10, %v421_v36  ;;  %v756_v42 = vmul.f32 %v4695_v11, %v7200_v53  ;;  %v7205_v10 = vld [vmem:[#allocation23_spill] sm:$0xff] }
 0x232   :  { %7190 = vst [vmem:[#allocation155_spill] sm:$0xff] %v4695_v11  ;;  %v438_v36 = vmul.f32 %v4692_v59, %v7205_v10  ;;  %v7212_v10 = vld [vmem:[#allocation19_spill] sm:$0xff] }
 0x233   :  { %7198 = vst [vmem:[#allocation8_spill] sm:$0xff] %v4738_v58 }
 0x235   :  { %1194 = vperm.xlu2 %3642, %v3878_v13  }
 0x236   :  { %250 = vperm.xlu0 %3645, %v4272_v15   ;;  %1190 = vperm.xlu1 %3644, %v3870_v12   ;;  %v4704_v8 = vpop.permute.xlu2 %1001  ;;  %v4720_v15 = vmul.f32 %v4692_v59, %v3981_v30  ;;  %v750_v12 = vmul.f32 %v4695_v11, %v4051_v47  ;;  %v432_v30 = vmul.f32 %v4692_v59, %v7197_v0  ;;  %v7199_v47 = vld [vmem:[#allocation10_spill] sm:$0xff] }
 0x237   :  { %7191 = vst [vmem:[#allocation156_spill] sm:$0xff] %v4704_v8  ;;  %v4710_v41 = vpop.permute.xlu0 %1342  ;;  %v4712_v13 = vpop.permute.xlu1 %961  ;;  %v4742_v1 = vmul.f32 %v4692_v59, %v7199_v47  ;;  %v4756_v0 = vadd.f32 %v747_v5, %v426_v52  ;;  %v7206_v47 = vld [vmem:[#allocation13_spill] sm:$0xff]  ;;  %v7211_v5 = vld [vmem:[#allocation18_spill] sm:$0xff] }
 0x238   :  { %7192 = vst [vmem:[#allocation157_spill] sm:$0xff] %v4710_v41  ;;  %v7195_v41 = vld [vmem:[#allocation9_spill] sm:$0xff]  ;;  %v4762_v58 = vmul.f32 %v4692_v59, %v7206_v47  ;;  %v4764_v53 = vadd.f32 %v750_v12, %v429_v38  ;;  %v4776_v52 = vmul.f32 %v4692_v59, %v7211_v5  ;;  %v7214_v38 = vld [vmem:[#allocation6_spill] sm:$0xff] }
 0x239   :  { %7193 = vst [vmem:[#allocation158_spill] sm:$0xff] %v4712_v13  ;;  %v4732_v8 = vmul.f32 %v4692_v59, %v7195_v41  ;;  %v753_v13 = vmul.f32 %v4695_v11, %v7196_v27  ;;  %v7202_v41 = vld [vmem:[#allocation11_spill] sm:$0xff]  ;;  %v7203_v27 = vld [vmem:[#allocation12_spill] sm:$0xff]  ;;  %v7213_v47 = vld [vmem:[#allocation29_spill] sm:$0xff] }
 0x23a   :  { %v4750_v57 = vmul.f32 %v4692_v59, %v7202_v41  ;;  %v4754_v4 = vmul.f32 %v4692_v59, %v7203_v27  ;;  %7204 = vst [vmem:[#allocation9_spill] sm:$0xff] %v4756_v0  ;;  %v7209_v41 = vld [vmem:[#allocation26_spill] sm:$0xff]  ;;  %v759_v0 = vmul.f32 %v4695_v11, %v7212_v10  ;;  %v444_v12 = vmul.f32 %v4692_v59, %v7213_v47  ;;  %v7219_v5 = vld [vmem:[#allocation21_spill] sm:$0xff] }
 0x23b   :  { %7207 = vst [vmem:[#allocation14_spill] sm:$0xff] %v4764_v53  ;;  %v441_v25 = vmul.f32 %v4692_v59, %v7209_v41  ;;  %v4772_v27 = vadd.f32 %v753_v13, %v432_v30  ;;  %v4783_v53 = vadd.f32 %v756_v42, %v435_v28  ;;  %v7217_v41 = vld [vmem:[#allocation32_spill] sm:$0xff]  ;;  %v4795_v10 = vmul.f32 %v4692_v59, %v7219_v5  ;;  %v7221_v28 = vld [vmem:[#allocation25_spill] sm:$0xff] }
 0x23c   :  { %v447_v13 = vmul.f32 %v4692_v59, %v7217_v41  ;;  %v4797_v47 = vadd.f32 %v759_v0, %v438_v36  ;;  %v765_v42 = vmul.f32 %v4695_v11, %v7221_v28  ;;  %v7227_v5 = vld [vmem:[#allocation28_spill] sm:$0xff]  ;;  %v7228_v36 = vld [vmem:[#allocation38_spill] sm:$0xff]  ;;  %v7229_v28 = vld [vmem:[#allocation27_spill] sm:$0xff] }
 0x23d   :  { %7210 = vst [vmem:[#allocation17_spill] sm:$0xff] %v4772_v27  ;;  %1206 = vperm.xlu2 %3642, %v7214_v38   ;;  %v7222_v38 = vld [vmem:[#allocation35_spill] sm:$0xff]  ;;  %v4811_v27 = vadd.f32 %v762_v46, %v441_v25  ;;  %v768_v0 = vmul.f32 %v4695_v11, %v7227_v5  ;;  %v7233_v46 = vld [vmem:[#allocation30_spill] sm:$0xff] }
 0x23e   :  { %7215 = vst [vmem:[#allocation10_spill] sm:$0xff] %v4783_v53  ;;  %265 = vperm.xlu0 %3645, %v4286_v17   ;;  %1202 = vperm.xlu1 %3644, %v3883_v14   ;;  %v4791_v30 = vpop.permute.xlu2 %1013  ;;  %v450_v7 = vmul.f32 %v4692_v59, %v7222_v38  ;;  %v7225_v17 = vld [vmem:[#allocation24_spill] sm:$0xff]  ;;  %v4821_v38 = vadd.f32 %v765_v42, %v444_v12  ;;  %v7237_v12 = vld [vmem:[#allocation33_spill] sm:$0xff] }
 0x23f   :  { %7218 = vst [vmem:[#allocation16_spill] sm:$0xff] %v4791_v30  ;;  %v4803_v53 = vpop.permute.xlu0 %1354  ;;  %v4805_v41 = vpop.permute.xlu1 %973  ;;  %v4809_v14 = vmul.f32 %v4692_v59, %v7225_v17  ;;  %v4819_v30 = vmul.f32 %v4692_v59, %v7229_v28  ;;  %v456_v17 = vmul.f32 %v4692_v59, %v7232_v55  ;;  %v4829_v25 = vmul.f32 %v4692_v59, %v7233_v46  ;;  %v7240_v46 = vld [vmem:[#allocation37_spill] sm:$0xff] }
 0x240   :  { %7220 = vst [vmem:[#allocation20_spill] sm:$0xff] %v4797_v47  ;;  %v453_v47 = vmul.f32 %v4692_v59, %v7228_v36  ;;  %v4831_v5 = vadd.f32 %v768_v0, %v447_v13  ;;  %v459_v28 = vmul.f32 %v4692_v59, %v7236_v2  ;;  %v4839_v42 = vmul.f32 %v4692_v59, %v7237_v12  ;;  %v7243_v2 = vld [vmem:[#allocation40_spill] sm:$0xff]  ;;  %v7244_v12 = vld [vmem:[#allocation47_spill] sm:$0xff] }
 0x241   :  { %7223 = vst [vmem:[#allocation11_spill] sm:$0xff] %v4803_v53  ;;  %v7231_v53 = vld [vmem:[#allocation31_spill] sm:$0xff]  ;;  %v777_v13 = vmul.f32 %v4695_v11, %v7240_v46  ;;  %v780_v62 = vmul.f32 %v4695_v11, %v7243_v2  ;;  %v7251_v2 = vld [vmem:[#allocation53_spill] sm:$0xff] }
 0x242   :  { %7224 = vst [vmem:[#allocation12_spill] sm:$0xff] %v4805_v41  ;;  %v771_v41 = vmul.f32 %v4695_v11, %v7231_v53  ;;  %v468_v51 = vmul.f32 %v4692_v59, %v7251_v2  ;;  %v4889_v2 = vperm.slane %v4685_v9, 2 }
 0x243   :  { %7226 = vst [vmem:[#allocation23_spill] sm:$0xff] %v4811_v27  ;;  %v7235_v27 = vld [vmem:[#allocation34_spill] sm:$0xff] }
 0x244   :  { %7230 = vst [vmem:[#allocation13_spill] sm:$0xff] %v4821_v38  ;;  %v774_v36 = vmul.f32 %v4695_v11, %v7235_v27  ;;  %v4841_v53 = vadd.f32 %v771_v41, %v450_v7  ;;  %v7239_v38 = vld [vmem:[#allocation36_spill] sm:$0xff]  ;;  %v462_v7 = vmul.f32 %v4692_v59, %v7244_v12  ;;  %v4859_v41 = vadd.f32 %v777_v13, %v456_v17 }
 0x245   :  { %7234 = vst [vmem:[#allocation15_spill] sm:$0xff] %v4831_v5  ;;  %v4845_v55 = vmul.f32 %v4692_v59, %v7239_v38  ;;  %v7242_v5 = vld [vmem:[#allocation39_spill] sm:$0xff]  ;;  %v7252_v12 = vld [vmem:[#allocation56_spill] sm:$0xff] }
 0x246   :  { %7238 = vst [vmem:[#allocation26_spill] sm:$0xff] %v4841_v53  ;;  %v4849_v0 = vadd.f32 %v774_v36, %v453_v47  ;;  %v4853_v27 = vmul.f32 %v4692_v59, %v7242_v5  ;;  %v7246_v53 = vld [vmem:[#allocation42_spill] sm:$0xff]  ;;  %v783_v47 = vmul.f32 %v4695_v11, %v7247_v34  ;;  %v7249_v5 = vld [vmem:[#allocation7_spill] sm:$0xff]  ;;  %v471_v17 = vmul.f32 %v4692_v59, %v7252_v12  ;;  %v7254_v34 = vld [vmem:[#allocation45_spill] sm:$0xff] }
 0x247   :  { %7245 = vst [vmem:[#allocation19_spill] sm:$0xff] %v4859_v41  ;;  %v4863_v38 = vmul.f32 %v4692_v59, %v7246_v53  ;;  %v7248_v36 = vld [vmem:[#allocation50_spill] sm:$0xff]  ;;  %1218 = vperm.xlu2 %3642, %v7249_v5   ;;  %280 = vperm.xlu0 %3645, %v4300_v19   ;;  %v4878_v53 = vpop.permute.xlu2 %1025  ;;  %v4882_v13 = vmul.f32 %v4692_v59, %v7254_v34  ;;  %v4891_v12 = vpop.permute.xlu0 %1366  ;;  %v7262_v34 = vld [vmem:[#allocation52_spill] sm:$0xff] }
 0x248   :  { %7241 = vst [vmem:[#allocation18_spill] sm:$0xff] %v4849_v0  ;;  %v465_v46 = vmul.f32 %v4692_v59, %v7248_v36  ;;  %v4870_v0 = vadd.f32 %v780_v62, %v459_v28  ;;  %1214 = vperm.xlu1 %3644, %v3896_v16   ;;  %v7255_v36 = vld [vmem:[#allocation46_spill] sm:$0xff]  ;;  %v7256_v28 = vld [vmem:[#allocation57_spill] sm:$0xff]  ;;  %v4893_v19 = vpop.permute.xlu1 %985  ;;  %v4895_v16 = vadd.f32 %v783_v47, %v462_v7  ;;  %v7267_v7 = vld [vmem:[#allocation55_spill] sm:$0xff] }
 0x249   :  { %7253 = vst [vmem:[#allocation6_spill] sm:$0xff] %v4878_v53  ;;  %v786_v62 = vmul.f32 %v4695_v11, %v7255_v36  ;;  %v474_v5 = vmul.f32 %v4692_v59, %v7256_v28  ;;  %v792_v53 = vmul.f32 %v4695_v11, %v7262_v34  ;;  %v744_v36 = vmul.f32 %v4695_v11, %v7263_v23 }
 0x24a   :  { %7250 = vst [vmem:[#allocation29_spill] sm:$0xff] %v4870_v0  ;;  %v7261_v0 = vld [vmem:[#allocation49_spill] sm:$0xff]  ;;  %v4905_v28 = vmul.f32 %v4692_v59, %v7264_v40  ;;  %v795_v47 = vmul.f32 %v4695_v11, %v7267_v7  ;;  %v7274_v7 = vld [vmem:[#allocation62_spill] sm:$0xff] }
 0x24b   :  { %7257 = vst [vmem:[#allocation22_spill] sm:$0xff] %v4889_v2  ;;  %v789_v41 = vmul.f32 %v4695_v11, %v7261_v0  ;;  %v4907_v31 = vadd.f32 %v786_v62, %v465_v46  ;;  %v4921_v23 = vadd.f32 %v792_v53, %v471_v17  ;;  %v7272_v46 = vld [vmem:[#allocation58_spill] sm:$0xff]  ;;  %v7277_v17 = vld [vmem:[#allocation64_spill] sm:$0xff] }
 0x24c   :  { %7258 = vst [vmem:[#allocation32_spill] sm:$0xff] %v4891_v12  ;;  %v7266_v12 = vld [vmem:[#allocation51_spill] sm:$0xff]  ;;  %v4923_v40 = vadd.f32 %v795_v47, %v474_v5  ;;  %v4927_v62 = vmul.f32 %v4695_v11, %v7272_v46  ;;  %v4942_v53 = vmul.f32 %v4695_v11, %v7277_v17  ;;  %v7279_v47 = vld [vmem:[#allocation65_spill] sm:$0xff]  ;;  %v7283_v17 = vld [vmem:[#allocation66_spill] sm:$0xff] }
 0x24d   :  { %7259 = vst [vmem:[#allocation21_spill] sm:$0xff] %v4893_v19  ;;  %v4911_v19 = vmul.f32 %v4692_v59, %v7266_v12  ;;  %v4915_v0 = vadd.f32 %v789_v41, %v468_v51  ;;  %v7273_v12 = vld [vmem:[#allocation59_spill] sm:$0xff]  ;;  %v4935_v51 = vmul.f32 %v4889_v2, %v7274_v7  ;;  %v4938_v41 = vadd.f32 %v744_v36, %v4716_v37  ;;  %v3675_v37 = vld [vmem:[%s7003_s0 + $0xd0] sm:$0xff] }
 0x24e   :  { %7260 = vst [vmem:[#allocation25_spill] sm:$0xff] %v4895_v16  ;;  %v7269_v16 = vld [vmem:[#allocation54_spill] sm:$0xff]  ;;  %v7278_v5 = vld [vmem:[#allocation71_spill] sm:$0xff]  ;;  %v4948_v46 = vmul.f32 %v4889_v2, %v7279_v47  ;;  %v7027_v36 = vmov 0.0  }
 0x24f   :  { %7265 = vst [vmem:[#allocation35_spill] sm:$0xff] %v4907_v31  ;;  %v4919_v34 = vmul.f32 %v4692_v59, %v7269_v16  ;;  %v4931_v31 = vmul.f32 %v4889_v2, %v7273_v12  ;;  %v743_v16 = vmul.f32 %v4695_v11, %v7278_v5  ;;  %v7281_v12 = vld [vmem:[#allocation74_spill] sm:$0xff]  ;;  %1230 = vperm.xlu2 %3642, %v3675_v37   ;;  %v7285_v47 = vld [vmem:[#allocation67_spill] sm:$0xff] }
 0x250   :  { %7268 = vst [vmem:[#allocation24_spill] sm:$0xff] %v4915_v0  ;;  %v4961_v5 = vmul.f32 %v4695_v11, %v7283_v17  ;;  %v7287_v0 = vld [vmem:[#allocation81_spill] sm:$0xff]  ;;  %295 = vperm.xlu0 %3645, %v4314_v43   ;;  %v3676_v37 = vld [vmem:[%s7003_s0 + $0xc8] sm:$0xff]  ;;  %v7289_v17 = vld [vmem:[#allocation68_spill] sm:$0xff] }
 0x251   :  { %7270 = vst [vmem:[#allocation28_spill] sm:$0xff] %v4921_v23  ;;  %v7282_v23 = vld [vmem:[#allocation78_spill] sm:$0xff]  ;;  %1226 = vperm.xlu1 %3644, %v3676_v37  }
 0x252   :  { %7271 = vst [vmem:[#allocation38_spill] sm:$0xff] %v4923_v40  ;;  %v745_v40 = vmul.f32 %v4695_v11, %v7281_v12  ;;  %v748_v7 = vmul.f32 %v4695_v11, %v7282_v23  ;;  %v4965_v12 = vmul.f32 %v4889_v2, %v7285_v47  ;;  %v751_v23 = vmul.f32 %v4695_v11, %v7287_v0  ;;  %v7290_v47 = vld [vmem:[#allocation69_spill] sm:$0xff]  ;;  %v7292_v0 = vld [vmem:[#allocation70_spill] sm:$0xff] }
 0x253   :  { %7275 = vst [vmem:[#allocation27_spill] sm:$0xff] %v4935_v51  ;;  %v4987_v43 = vmul.f32 %v4889_v2, %v7292_v0  ;;  %v4991_v51 = vpop.permute.xlu0 %1378 }
 0x254   :  { %7276 = vst [vmem:[#allocation31_spill] sm:$0xff] %v4938_v41  ;;  %v4973_v41 = vpop.permute.xlu2 %1037 }
 0x255   :  { %7280 = vst [vmem:[#allocation41_spill] sm:$0xff] %v4948_v46  ;;  %v4979_v46 = vmul.f32 %v4695_v11, %v7289_v17  ;;  %v4998_v17 = vadd.f32 %v743_v16, %v4750_v57  ;;  %v7302_v16 = vld [vmem:[#allocation77_spill] sm:$0xff] }
 0x256   :  { %1903 = vst.msk [vmem:[#allocation2] sm:$0xff] %vm1902_vm0, %v7027_v36 }
 0x257   :  { %7284 = vst [vmem:[#allocation30_spill] sm:$0xff] %v4961_v5  ;;  %v7294_v5 = vld [vmem:[#allocation84_spill] sm:$0xff] }
 0x258   :  { %7286 = vst [vmem:[#allocation34_spill] sm:$0xff] %v4965_v12  ;;  %v4983_v12 = vmul.f32 %v4695_v11, %v7290_v47  ;;  %v754_v37 = vmul.f32 %v4695_v11, %v7294_v5  ;;  %v5002_v47 = vmul.f32 %v4695_v11, %v7297_v61  ;;  %v5021_v61 = vmul.f32 %v4889_v2, %v7302_v16 }
 0x259   :  { %7288 = vst [vmem:[#allocation44_spill] sm:$0xff] %v4973_v41  ;;  %v4993_v41 = vpop.permute.xlu1 %997  ;;  %v760_v16 = vmul.f32 %v4695_v11, %v4436_v54  ;;  %v7313_v54 = vld [vmem:[#allocation85_spill] sm:$0xff]  ;;  %310 = vperm.xlu0 %3645, %v4328_v63  }
 0x25a   :  { %1920 = vst.msk [vmem:[#allocation2 + $0x30] sm:$0x1] %vm1917_vm1, %v7027_v36 }
 0x25b   :  { %7291 = vst [vmem:[#allocation33_spill] sm:$0xff] %v4983_v12  ;;  %v7298_v12 = vld [vmem:[#allocation73_spill] sm:$0xff] }
 0x25c   :  { %7293 = vst [vmem:[#allocation36_spill] sm:$0xff] %v4987_v43  ;;  %v5006_v0 = vmul.f32 %v4889_v2, %v7298_v12  ;;  %v7300_v43 = vld [vmem:[#allocation87_spill] sm:$0xff]  ;;  %v5024_v12 = vadd.f32 %v748_v7, %v4728_v48  ;;  %v7308_v48 = vld [vmem:[#allocation82_spill] sm:$0xff] }
 0x25d   :  { %7295 = vst [vmem:[#allocation37_spill] sm:$0xff] %v4991_v51  ;;  %v757_v5 = vmul.f32 %v4695_v11, %v7300_v43  ;;  %v5013_v51 = vadd.f32 %v745_v40, %v4720_v15  ;;  %v7304_v43 = vld [vmem:[#allocation79_spill] sm:$0xff]  ;;  %v7306_v15 = vld [vmem:[#allocation80_spill] sm:$0xff]  ;;  %v5045_v7 = vmul.f32 %v4695_v11, %v7308_v48 }
 0x25e   :  { %7296 = vst [vmem:[#allocation39_spill] sm:$0xff] %v4993_v41  ;;  %v7301_v41 = vld [vmem:[#allocation76_spill] sm:$0xff]  ;;  %v5034_v40 = vmul.f32 %v4889_v2, %v7306_v15  ;;  %v5052_v15 = vadd.f32 %v754_v37, %v4742_v1 }
 0x25f   :  { %1921 = vst.msk [vmem:[#allocation2 + $0x48] sm:$0x1] %vm1917_vm1, %v7027_v36  ;;  %v5017_v57 = vmul.f32 %v4695_v11, %v7301_v41  ;;  %v5037_v41 = vadd.f32 %v751_v23, %v4732_v8  ;;  %v5060_v23 = vmul.f32 %v4695_v11, %v7313_v54  ;;  %v7318_v37 = vld [vmem:[#allocation88_spill] sm:$0xff]  ;;  %v7322_v54 = vld [vmem:[#allocation98_spill] sm:$0xff] }
 0x260   :  { %7299 = vst [vmem:[#allocation40_spill] sm:$0xff] %v5006_v0  ;;  %v5030_v0 = vmul.f32 %v4695_v11, %v7304_v43 }
 0x261   :  { %1922 = vst.msk [vmem:[#allocation2 + $0x60] sm:$0x1] %vm1917_vm1, %v7027_v36  ;;  %325 = vperm.xlu0 %3645, %v4342_v3   ;;  %v1062_v3 = vmul.f32 %v4889_v2, %v4573_v29 }
 0x262   :  { %7303 = vst [vmem:[#allocation47_spill] sm:$0xff] %v5021_v61  ;;  %v7310_v61 = vld [vmem:[#allocation83_spill] sm:$0xff] }
 0x263   :  { %1904 = vst.msk [vmem:[#allocation2 + $0x8] sm:$0xff] %vm1902_vm0, %v7027_v36  ;;  %v5049_v43 = vmul.f32 %v4889_v2, %v7310_v61  ;;  %v5067_v61 = vadd.f32 %v757_v5, %v4754_v4  ;;  %v5085_v4 = vadd.f32 %v760_v16, %v4762_v58  ;;  %v7323_v5 = vld [vmem:[#allocation90_spill] sm:$0xff] }
 0x264   :  { %7305 = vst [vmem:[#allocation42_spill] sm:$0xff] %v5030_v0  ;;  %v7315_v0 = vld [vmem:[#allocation86_spill] sm:$0xff] }
 0x265   :  { %7307 = vst [vmem:[#allocation43_spill] sm:$0xff] %v5034_v40  ;;  %v7312_v40 = vld [vmem:[#allocation92_spill] sm:$0xff]  ;;  %v5064_v48 = vmul.f32 %v4889_v2, %v7315_v0  ;;  %v3677_v0 = vld [vmem:[%s7003_s0 + $0xe8] sm:$0xff] }
 0x266   :  { %1907 = vst.msk [vmem:[#allocation2 + $0x1b0] sm:$0xff] %vm1902_vm0, %v7027_v36  ;;  %v763_v8 = vmul.f32 %v4695_v11, %v7312_v40  ;;  %v5073_v40 = vmul.f32 %v4695_v11, %v7318_v37  ;;  %1242 = vperm.xlu2 %3642, %v3677_v0   ;;  %v7325_v37 = vld [vmem:[#allocation101_spill] sm:$0xff]  ;;  %v7327_v0 = vld [vmem:[#allocation91_spill] sm:$0xff] }
 0x267   :  { %7309 = vst [vmem:[#allocation50_spill] sm:$0xff] %v5045_v7  ;;  %v7320_v7 = vld [vmem:[#allocation89_spill] sm:$0xff]  ;;  %v5101_v58 = vmul.f32 %v4889_v2, %v7327_v0  ;;  %v7335_v0 = vld [vmem:[#allocation96_spill] sm:$0xff] }
 0x268   :  { %7311 = vst [vmem:[#allocation7_spill] sm:$0xff] %v5049_v43  ;;  %v7317_v43 = vld [vmem:[#allocation95_spill] sm:$0xff]  ;;  %v5104_v16 = vadd.f32 %v763_v8, %v4768_v6  ;;  %v5123_v6 = vmul.f32 %v4695_v11, %v7335_v0  ;;  %v7343_v0 = vld [vmem:[#allocation110_spill] sm:$0xff] }
 0x269   :  { %1908 = vst.msk [vmem:[#allocation2 + $0x1b8] sm:$0xff] %vm1902_vm0, %v7027_v36  ;;  %v766_v1 = vmul.f32 %v4695_v11, %v7317_v43  ;;  %v5077_v36 = vmul.f32 %v4889_v2, %v7320_v7  ;;  %v5089_v43 = vmul.f32 %v4695_v11, %v7323_v5  ;;  %v3678_v7 = vld [vmem:[%s7003_s0 + $0xe0] sm:$0xff]  ;;  %v7330_v5 = vld [vmem:[#allocation93_spill] sm:$0xff]  ;;  %v7337_v8 = vld [vmem:[#allocation107_spill] sm:$0xff]  ;;  %340 = vperm.xlu0 %3645, %v4356_v21  }
 0x26a   :  { %7314 = vst [vmem:[#allocation53_spill] sm:$0xff] %v5060_v23  ;;  %v769_v23 = vmul.f32 %v4695_v11, %v7322_v54  ;;  %1238 = vperm.xlu1 %3644, %v3678_v7   ;;  %v5097_v54 = vpop.permute.xlu2 %1049 }
 0x26b   :  { %7316 = vst [vmem:[#allocation56_spill] sm:$0xff] %v5064_v48  ;;  %v772_v48 = vmul.f32 %v4695_v11, %v7325_v37  ;;  %v7332_v37 = vld [vmem:[#allocation104_spill] sm:$0xff] }
 0x26c   :  { %7319 = vst [vmem:[#allocation45_spill] sm:$0xff] %v5073_v40  ;;  %v775_v63 = vmul.f32 %v4695_v11, %v7332_v37  ;;  %v7333_v40 = vld [vmem:[#allocation94_spill] sm:$0xff]  ;;  %v7339_v37 = vld [vmem:[#allocation97_spill] sm:$0xff] }
 0x26d   :  { %7321 = vst [vmem:[#allocation46_spill] sm:$0xff] %v5077_v36  ;;  %v5108_v36 = vmul.f32 %v4695_v11, %v7330_v5  ;;  %v5116_v7 = vmul.f32 %v4889_v2, %v7333_v40  ;;  %v778_v5 = vmul.f32 %v4695_v11, %v7337_v8  ;;  %v5134_v40 = vadd.f32 %v769_v23, %v4795_v10  ;;  %v7344_v8 = vld [vmem:[#allocation100_spill] sm:$0xff]  ;;  %v7348_v23 = vld [vmem:[#allocation103_spill] sm:$0xff] }
 0x26e   :  { %7324 = vst [vmem:[#allocation57_spill] sm:$0xff] %v5089_v43  ;;  %v5112_v43 = vpop.permute.xlu1 %1009 }
 0x26f   :  { %7326 = vst [vmem:[#allocation49_spill] sm:$0xff] %v5097_v54  ;;  %v5119_v54 = vadd.f32 %v766_v1, %v4776_v52  ;;  %v7341_v52 = vld [vmem:[#allocation99_spill] sm:$0xff] }
 0x270   :  { %7328 = vst [vmem:[#allocation52_spill] sm:$0xff] %v5101_v58  ;;  %v101_v58 = vpop.permute.xlu0 %100  ;;  %v5138_v1 = vmul.f32 %v4695_v11, %v7341_v52  ;;  %v5157_v52 = vmul.f32 %v4889_v2, %v7348_v23 }
 0x271   :  { %7329 = vst [vmem:[#allocation61_spill] sm:$0xff] %v5104_v16  ;;  %v5131_v16 = vmul.f32 %v4889_v2, %v7339_v37  ;;  %v5149_v37 = vadd.f32 %v772_v48, %v4809_v14  ;;  %v784_v14 = vmul.f32 %v4695_v11, %v4510_v60  ;;  %v5171_v48 = vperm.slane %v4685_v9, 3 }
 0x272   :  { %7331 = vst [vmem:[#allocation48_spill] sm:$0xff] %v5108_v36  ;;  %v7338_v36 = vmov 0.0  }
 0x273   :  { %7334 = vst [vmem:[#allocation51_spill] sm:$0xff] %v5116_v7  ;;  %v781_v7 = vmul.f32 %v4695_v11, %v7343_v0  ;;  %v5162_v0 = vadd.f32 %v775_v63, %v4819_v30  ;;  %v5180_v30 = vadd.f32 %v778_v5, %v4829_v25  ;;  %v7355_v63 = vld [vmem:[#allocation108_spill] sm:$0xff]  ;;  %v787_v25 = vmul.f32 %v4695_v11, %v4519_v33  ;;  %v3679_v5 = vld [vmem:[%s7003_s0 + $0x100] sm:$0xff]  ;;  %v3680_v33 = vld [vmem:[%s7003_s0 + $0xf8] sm:$0xff] }
 0x274   :  { %7336 = vst [vmem:[#allocation55_spill] sm:$0xff] %v5123_v6  ;;  %v5146_v6 = vmul.f32 %v4889_v2, %v7344_v8  ;;  %1254 = vperm.xlu2 %3642, %v3679_v5   ;;  %1250 = vperm.xlu1 %3644, %v3680_v33   ;;  %v793_v5 = vmul.f32 %v4695_v11, %v4535_v49  ;;  %v7366_v33 = vld [vmem:[#allocation113_spill] sm:$0xff] }
 0x275   :  { %1919 = vst.msk [vmem:[#allocation2 + $0x18] sm:$0x1] %vm1917_vm1, %v7338_v36  ;;  %v5193_v9 = vadd.f32 %v781_v7, %v4839_v42  ;;  %v790_v42 = vmul.f32 %v4695_v11, %v4528_v18  ;;  %v419_v7 = vmul.f32 %v4692_v59, %v101_v58  ;;  %v796_v49 = vmul.f32 %v4695_v11, %v4542_v39 }
 0x276   :  { %7340 = vst [vmem:[#allocation54_spill] sm:$0xff] %v5131_v16  ;;  %v7346_v16 = vld [vmem:[#allocation102_spill] sm:$0xff]  ;;  %v5228_v58 = vpop.permute.xlu1 %1021 }
 0x277   :  { %7342 = vst [vmem:[#allocation58_spill] sm:$0xff] %v5138_v1  ;;  %v5153_v10 = vmul.f32 %v4695_v11, %v7346_v16  ;;  %v7350_v1 = vld [vmem:[#allocation105_spill] sm:$0xff]  ;;  %v7352_v16 = vld [vmem:[#allocation106_spill] sm:$0xff]  ;;  %v5260_v39 = vadd.f32 %v790_v42, %v4863_v38  ;;  %v5278_v38 = vadd.f32 %v793_v5, %v4882_v13  ;;  %v5284_v42 = vadd.f32 %v796_v49, %v4905_v28 }
 0x278   :  { %1923 = vst.msk [vmem:[#allocation2 + $0x78] sm:$0x1] %vm1917_vm1, %v7338_v36  ;;  %v5166_v8 = vmul.f32 %v4695_v11, %v7350_v1  ;;  %v5177_v23 = vmul.f32 %v4889_v2, %v7352_v16  ;;  %v5184_v1 = vmul.f32 %v4695_v11, %v7355_v63  ;;  %v106_v29 = vpop.permute.xlu0 %105  ;;  %v5295_v13 = vld [vmem:[%s7006_s3] ss:$0 sm:$0xff]  ;;  %v3681_v49 = vld [vmem:[%s7003_s0 + $0x118] sm:$0xff] }
 0x279   :  { %7345 = vst [vmem:[#allocation59_spill] sm:$0xff] %v5146_v6  ;;  %v7417_v6 = vld [vmem:[#allocation144_spill] sm:$0xff] }
 0x27a   :  { %7347 = vst [vmem:[#allocation62_spill] sm:$0xff] %v5153_v10 }
 0x27b   :  { %7349 = vst [vmem:[#allocation64_spill] sm:$0xff] %v5157_v52  ;;  %v7357_v52 = vld [vmem:[#allocation109_spill] sm:$0xff] }
 0x27c   :  { %1924 = vst.msk [vmem:[#allocation2 + $0x90] sm:$0x1] %vm1917_vm1, %v7338_v36  ;;  %v5188_v60 = vmul.f32 %v4889_v2, %v7357_v52  ;;  %v7362_v52 = vld [vmem:[#allocation112_spill] sm:$0xff]  ;;  %1266 = vperm.xlu2 %3642, %v3681_v49  }
 0x27d   :  { %7351 = vst [vmem:[#allocation71_spill] sm:$0xff] %v5166_v8  ;;  %v7360_v8 = vld [vmem:[#allocation111_spill] sm:$0xff]  ;;  %v5208_v63 = vmul.f32 %v4889_v2, %v7362_v52  ;;  %v7365_v52 = vld [vmem:[#allocation118_spill] sm:$0xff] }
 0x27e   :  { %1925 = vst.msk [vmem:[#allocation2 + $0xa8] sm:$0x1] %vm1917_vm1, %v7338_v36  ;;  %v5197_v16 = vmul.f32 %v4695_v11, %v7360_v8  ;;  %v5220_v8 = vadd.f32 %v784_v14, %v4845_v55  ;;  %v1383_v18 = vmul.f32 %v5171_v48, %v7365_v52  ;;  %v7368_v55 = vld [vmem:[#allocation114_spill] sm:$0xff] }
 0x27f   :  { %7353 = vst [vmem:[#allocation65_spill] sm:$0xff] %v5177_v23  ;;  %v5238_v14 = vmul.f32 %v4889_v2, %v7368_v55  ;;  %v7371_v23 = vld [vmem:[#allocation115_spill] sm:$0xff] }
 0x280   :  { %7354 = vst [vmem:[#allocation74_spill] sm:$0xff] %v5180_v30 }
 0x281   :  { %7356 = vst [vmem:[#allocation78_spill] sm:$0xff] %v5184_v1 }
 0x282   :  { %7358 = vst [vmem:[#allocation66_spill] sm:$0xff] %v5188_v60  ;;  %v5234_v60 = vmul.f32 %v4695_v11, %v7366_v33  ;;  %v5250_v33 = vmul.f32 %v4695_v11, %v7371_v23  ;;  %v5268_v23 = vld [vmem:[%s7005_s2] ss:$0 sm:$0xff] }
 0x283   :  { %1926 = vst.msk [vmem:[#allocation2 + $0xc0] sm:$0x1] %vm1917_vm1, %v7338_v36 }
 0x284   :  { %7359 = vst [vmem:[#allocation67_spill] sm:$0xff] %v5193_v9  ;;  %v1424_v9 = vmul.f32 %v5171_v48, %v7417_v6 }
 0x285   :  { %7361 = vst [vmem:[#allocation81_spill] sm:$0xff] %v5197_v16  ;;  %v5246_v16 = vadd.f32 %v787_v25, %v4853_v27  ;;  %v799_v27 = vmul.f32 %v4695_v11, %v4551_v56  ;;  %v1446_v25 = vadd.f32 %v4979_v46, %v419_v7  ;;  %v1511_v56 = vadd.f32 %v1383_v18, %v1062_v3  ;;  %v7383_v18 = vld [vmem:[#allocation123_spill] sm:$0xff] }
 0x286   :  { %1927 = vst.msk [vmem:[#allocation2 + $0xd8] sm:$0x1] %vm1917_vm1, %v7338_v36  ;;  %v802_v3 = vmul.f32 %v4695_v11, %v7383_v18  ;;  %v5333_v18 = vpop.permute.xlu1 %1033 }
 0x287   :  { %7363 = vst [vmem:[#allocation68_spill] sm:$0xff] %v5208_v63  ;;  %v1127_v63 = vpop.permute.xlu2 %1126 }
 0x288   :  { %1928 = vst.msk [vmem:[#allocation2 + $0xf0] sm:$0x1] %vm1917_vm1, %v7338_v36  ;;  %v1382_v52 = vmul.f32 %v5171_v48, %v1127_v63  ;;  %v7376_v63 = vld [vmem:[#allocation117_spill] sm:$0xff] }
 0x289   :  { %7364 = vst [vmem:[#allocation69_spill] sm:$0xff] %v5220_v8  ;;  %v7416_v8 = vld [vmem:[#allocation41_spill] sm:$0xff] }
 0x28a   :  { %1929 = vst.msk [vmem:[#allocation2 + $0x108] sm:$0x1] %vm1917_vm1, %v7338_v36 }
 0x28b   :  { %7367 = vst [vmem:[#allocation70_spill] sm:$0xff] %v5234_v60  ;;  %v7373_v60 = vld [vmem:[#allocation116_spill] sm:$0xff] }
 0x28c   :  { %7369 = vst [vmem:[#allocation84_spill] sm:$0xff] %v5238_v14  ;;  %v5254_v55 = vmul.f32 %v4889_v2, %v7373_v60  ;;  %v420_v14 = vmul.f32 %v4692_v59, %v106_v29  ;;  %v1510_v60 = vadd.f32 %v1382_v52, %v4931_v31  ;;  %v5275_v29 = vmul.f32 %v4695_v11, %v7376_v63  ;;  %v7380_v31 = vld [vmem:[#allocation119_spill] sm:$0xff]  ;;  %v7381_v52 = vld [vmem:[#allocation120_spill] sm:$0xff] }
 0x28d   :  { %1930 = vst.msk [vmem:[#allocation2 + $0x120] sm:$0x1] %vm1917_vm1, %v7338_v36  ;;  %v5288_v7 = vmul.f32 %v4889_v2, %v7380_v31  ;;  %v1388_v63 = vmul.f32 %v5171_v48, %v7381_v52 }
 0x28e   :  { %7370 = vst [vmem:[#allocation72_spill] sm:$0xff] %v5246_v16  ;;  %v1447_v46 = vadd.f32 %v4927_v62, %v420_v14  ;;  %v1574_v5 = vadd.f32 %v1510_v60, %v1446_v25  ;;  %v7382_v62 = vld [vmem:[#allocation121_spill] sm:$0xff]  ;;  %v5311_v25 = vadd.f32 %v799_v27, %v4911_v19  ;;  %v7385_v60 = vld [vmem:[#allocation122_spill] sm:$0xff] }
 0x28f   :  { %7372 = vst [vmem:[#allocation73_spill] sm:$0xff] %v5250_v33  ;;  %v5301_v28 = vmul.f32 %v4889_v2, %v7382_v62  ;;  %v1391_v31 = vmul.f32 %v5171_v48, %v7385_v60  ;;  %v7387_v19 = vld [vmem:[#allocation125_spill] sm:$0xff]  ;;  %v1139_v49 = vpop.permute.xlu2 %1138  ;;  %v1064_v60 = vmul.f32 %v4889_v2, %v4582_v32  ;;  %v7389_v32 = vld [vmem:[#allocation126_spill] sm:$0xff]  ;;  %v7391_v33 = vld [vmem:[#allocation128_spill] sm:$0xff] }
 0x290   :  { %7374 = vst [vmem:[#allocation87_spill] sm:$0xff] %v5254_v55  ;;  %v1575_v14 = vadd.f32 %v1511_v56, %v1447_v46  ;;  %v1642_v52 = vadd.f32 %v5268_v23, %v1574_v5  ;;  %v3682_v56 = vld [vmem:[%s7003_s0 + $0x110] sm:$0xff]  ;;  %v5328_v27 = vmul.f32 %v5171_v48, %v7387_v19  ;;  %v1067_v5 = vmul.f32 %v4889_v2, %v4591_v35  ;;  %v131_v19 = vpop.permute.xlu0 %130 }
 0x291   :  { %1931 = vst.msk [vmem:[#allocation2 + $0x138] sm:$0x1] %vm1917_vm1, %v7338_v36  ;;  %1262 = vperm.xlu1 %3644, %v3682_v56   ;;  %v7386_v46 = vld [vmem:[#allocation124_spill] sm:$0xff]  ;;  %v5344_v35 = vadd.f32 %v802_v3, %v4919_v34  ;;  %v425_v11 = vmul.f32 %v4692_v59, %v131_v19  ;;  %v5352_v55 = vmul.f32 %v4889_v2, %v7389_v32 }
 0x292   :  { %7375 = vst [vmem:[#allocation76_spill] sm:$0xff] %v5260_v39  ;;  %v5324_v62 = vmul.f32 %v4889_v2, %v7386_v46  ;;  %v1643_v21 = vadd.f32 %v5268_v23, %v1575_v14  ;;  %vm1706_vm2 = vcmp.ge.f32.partialorder %v1642_v52, 0.0  ;;  %v1774_v56 = vmul.f32 %v5295_v13, %v1642_v52 }
 0x293   :  { %1932 = vst.msk [vmem:[#allocation2 + $0x150] sm:$0x1] %vm1917_vm1, %v7338_v36  ;;  %v1385_v46 = vmul.f32 %v5171_v48, %v1139_v49  ;;  %v7390_v49 = vld [vmem:[#allocation127_spill] sm:$0xff]  ;;  %v1516_v34 = vadd.f32 %v1388_v63, %v1067_v5  ;;  %v1070_v3 = vmul.f32 %v4889_v2, %v4601_v22  ;;  %v5364_v32 = vmul.f32 %v4889_v2, %v7391_v33  ;;  %v7393_v63 = vld [vmem:[#allocation130_spill] sm:$0xff]  ;;  %v3683_v33 = vld [vmem:[%s7003_s0 + $0x130] sm:$0xff] }
 0x294   :  { %7377 = vst [vmem:[#allocation77_spill] sm:$0xff] %v5275_v29  ;;  %vm1707_vm3 = vcmp.ge.f32.partialorder %v1643_v21, 0.0  ;;  %v1775_v14 = vmul.f32 %v5295_v13, %v1643_v21  ;;  %v1397_v29 = vmul.f32 %v5171_v48, %v7390_v49  ;;  %1278 = vperm.xlu2 %3642, %v3683_v33   ;;  %v3684_v5 = vld [vmem:[%s7003_s0 + $0x128] sm:$0xff]  ;;  %v1076_v49 = vmul.f32 %v4889_v2, %v4619_v50 }
 0x295   :  { %7378 = vst [vmem:[#allocation79_spill] sm:$0xff] %v5278_v38  ;;  %v7392_v38 = vld [vmem:[#allocation129_spill] sm:$0xff] }
 0x296   :  { %1933 = vst.msk [vmem:[#allocation2 + $0x168] sm:$0x1] %vm1917_vm1, %v7338_v36  ;;  %v1839_v19 = vsel %vm1707_vm3, %v1643_v21, %v1775_v14  ;;  %v1519_v21 = vadd.f32 %v1391_v31, %v1070_v3  ;;  %v5437_v1 = vadd.f32 %v1397_v29, %v1076_v49  ;;  %v3685_v29 = vld [vmem:[%s7003_s0 + $0x148] sm:$0xff]  ;;  %v7407_v49 = vld [vmem:[#allocation138_spill] sm:$0xff] }
 0x297   :  { %7379 = vst [vmem:[#allocation80_spill] sm:$0xff] %v5284_v42  ;;  %v1513_v42 = vadd.f32 %v1385_v46, %v1064_v60  ;;  %v5370_v60 = vmul.f32 %v4889_v2, %v4587_v24  ;;  %v7394_v24 = vld [vmem:[#allocation131_spill] sm:$0xff]  ;;  %v1147_v14 = vpop.permute.xlu2 %1146 }
 0x298   :  { %1934 = vst.msk [vmem:[#allocation2 + $0x180] sm:$0x1] %vm1917_vm1, %v7338_v36 }
 0x299   :  { %1937 = vst.msk [vmem:[#allocation2 + $0x1c8] sm:$0x1] %vm1917_vm1, %v7338_v36  ;;  %v1577_v22 = vadd.f32 %v1513_v42, %v4998_v17  ;;  %v1073_v17 = vmul.f32 %v4889_v2, %v4610_v44  ;;  %1274 = vperm.xlu1 %3644, %v3684_v5   ;;  %v5404_v44 = vmul.f32 %v5171_v48, %v4608_v45  ;;  %v7396_v45 = vld [vmem:[#allocation136_spill] sm:$0xff]  ;;  %v7399_v5 = vld [vmem:[#allocation133_spill] sm:$0xff] }
 0x29a   :  { %7384 = vst [vmem:[#allocation82_spill] sm:$0xff] %v5311_v25  ;;  %v1838_v25 = vsel %vm1706_vm2, %v1642_v52, %v1774_v56  ;;  %v1400_v52 = vmul.f32 %v5171_v48, %v7392_v38  ;;  %v5387_v38 = vmul.f32 %v5171_v48, %v7394_v24  ;;  %v5400_v56 = vmul.f32 %v4889_v2, %v4606_v20  ;;  %v7398_v24 = vld [vmem:[#allocation27_spill] sm:$0xff] }
 0x29b   :  { %1938 = vst.msk [vmem:[#allocation2 + $0x1e0] sm:$0x1] %vm1917_vm1, %v7338_v36  ;;  %v1645_v42 = vadd.f32 %v5268_v23, %v1577_v22  ;;  %v1387_v20 = vmul.f32 %v5171_v48, %v1147_v14  ;;  %v1079_v3 = vmul.f32 %v4889_v2, %v7396_v45  ;;  %v1522_v50 = vadd.f32 %v5328_v27, %v1073_v17  ;;  %v7400_v45 = vld [vmem:[#allocation139_spill] sm:$0xff]  ;;  %v7401_v27 = vld [vmem:[#allocation30_spill] sm:$0xff] }
 0x29c   :  { %1939 = vst.msk [vmem:[#allocation2 + $0x1f8] sm:$0x1] %vm1917_vm1, %v7338_v36  ;;  %v1412_v14 = vmul.f32 %v5171_v48, %v7399_v5  ;;  %1290 = vperm.xlu2 %3642, %v3685_v29   ;;  %v7412_v29 = vld [vmem:[#allocation145_spill] sm:$0xff] }
 0x29d   :  { %1940 = vst.msk [vmem:[#allocation2 + $0x210] sm:$0x1] %vm1917_vm1, %v7338_v36  ;;  %vm1709_vm4 = vcmp.ge.f32.partialorder %v1645_v42, 0.0  ;;  %v1777_v31 = vmul.f32 %v5295_v13, %v1645_v42  ;;  %v5447_v5 = vadd.f32 %v1400_v52, %v1079_v3 }
 0x29e   :  { %7388 = vst [vmem:[#allocation83_spill] sm:$0xff] %v5344_v35  ;;  %v1452_v35 = vadd.f32 %v4942_v53, %v425_v11  ;;  %v5378_v11 = vmul.f32 %v4889_v2, %v4597_v26  ;;  %v7395_v26 = vld [vmem:[#allocation75_spill] sm:$0xff] }
 0x29f   :  { %1941 = vst.msk [vmem:[#allocation2 + $0x228] sm:$0x1] %vm1917_vm1, %v7338_v36  ;;  %355 = vperm.xlu0 %3645, %v7395_v26   ;;  %v1841_v33 = vsel %vm1709_vm4, %v1645_v42, %v1777_v31  ;;  %v1515_v26 = vadd.f32 %v1387_v20, %v7398_v24  ;;  %v7404_v31 = vld [vmem:[#allocation135_spill] sm:$0xff] }
 0x2a0   :  { %1942 = vst.msk [vmem:[#allocation2 + $0x240] sm:$0x1] %vm1917_vm1, %v7338_v36  ;;  %v1580_v53 = vadd.f32 %v1516_v34, %v1452_v35  ;;  %v5407_v35 = vpop.permute.xlu1 %1045  ;;  %v146_v34 = vpop.permute.xlu0 %145  ;;  %v1415_v20 = vmul.f32 %v5171_v48, %v7404_v31 }
 0x2a1   :  { %1991 = vst.msk [vmem:[#allocation2 + $0x19] sm:$0xff] %vm1902_vm0, %v1838_v25  ;;  %v1403_v25 = vmul.f32 %v5171_v48, %v7393_v63  ;;  %v428_v22 = vmul.f32 %v4692_v59, %v146_v34  ;;  %v7397_v63 = vld [vmem:[#allocation132_spill] sm:$0xff]  ;;  %v1082_v34 = vmul.f32 %v4889_v2, %v7400_v45  ;;  %v1579_v24 = vadd.f32 %v1515_v26, %v5013_v51  ;;  %v7405_v45 = vld [vmem:[#allocation137_spill] sm:$0xff]  ;;  %v7408_v51 = vld [vmem:[#allocation142_spill] sm:$0xff] }
 0x2a2   :  { %1992 = vst.msk [vmem:[#allocation2 + $0x21] sm:$0xff] %vm1902_vm0, %v1839_v19  ;;  %v1648_v46 = vadd.f32 %v5268_v23, %v1580_v53  ;;  %v5426_v53 = vmul.f32 %v4889_v2, %v7397_v63  ;;  %v7402_v63 = vld [vmem:[#allocation134_spill] sm:$0xff]  ;;  %v1085_v52 = vmul.f32 %v4889_v2, %v7408_v51  ;;  %v7409_v26 = vld [vmem:[#allocation140_spill] sm:$0xff] }
 0x2a3   :  { %1943 = vst.msk [vmem:[#allocation2 + $0x258] sm:$0x1] %vm1917_vm1, %v7338_v36  ;;  %v1455_v17 = vadd.f32 %v7401_v27, %v428_v22  ;;  %v5441_v42 = vmul.f32 %v4889_v2, %v7402_v63  ;;  %v1647_v3 = vadd.f32 %v5268_v23, %v1579_v24  ;;  %v3687_v22 = vld [vmem:[%s7003_s0 + $0x140] sm:$0xff]  ;;  %v5477_v27 = vmul.f32 %v4889_v2, %v7409_v26 }
 0x2a4   :  { %1944 = vst.msk [vmem:[#allocation2 + $0x270] sm:$0x1] %vm1917_vm1, %v7338_v36  ;;  %vm1712_vm5 = vcmp.ge.f32.partialorder %v1648_v46, 0.0  ;;  %v1780_v19 = vmul.f32 %v5295_v13, %v1648_v46  ;;  %1286 = vperm.xlu1 %3644, %v3687_v22  }
 0x2a5   :  { %1945 = vst.msk [vmem:[#allocation2 + $0x288] sm:$0x1] %vm1917_vm1, %v7338_v36  ;;  %vm1711_vm6 = vcmp.ge.f32.partialorder %v1647_v3, 0.0 }
 0x2a6   :  { %1946 = vst.msk [vmem:[#allocation2 + $0x2a0] sm:$0x1] %vm1917_vm1, %v7338_v36  ;;  %v1844_v39 = vsel %vm1712_vm5, %v1648_v46, %v1780_v19  ;;  %v5451_v46 = vmul.f32 %v4889_v2, %v7405_v45  ;;  %v1583_v19 = vadd.f32 %v1519_v21, %v1455_v17  ;;  %v3686_v21 = vld [vmem:[%s7003_s0 + $0x1b0] sm:$0xff]  ;;  %v7411_v17 = vld [vmem:[#allocation141_spill] sm:$0xff]  ;;  %v1159_v45 = vpop.permute.xlu2 %1158 }
 0x2a7   :  { %1947 = vst.msk [vmem:[#allocation2 + $0x2b8] sm:$0x1] %vm1917_vm1, %v7338_v36  ;;  %370 = vperm.xlu0 %3645, %v3686_v21   ;;  %v5481_v63 = vmul.f32 %v5171_v48, %v7411_v17  ;;  %v7413_v21 = vld [vmem:[#allocation148_spill] sm:$0xff]  ;;  %v5499_v17 = vadd.f32 %v5387_v38, %v1085_v52  ;;  %v7420_v52 = vld [vmem:[#allocation146_spill] sm:$0xff] }
 0x2a8   :  { %1948 = vst.msk [vmem:[#allocation2 + $0x2d0] sm:$0x1] %vm1917_vm1, %v7338_v36  ;;  %v1651_v31 = vadd.f32 %v5268_v23, %v1583_v19  ;;  %v5484_v24 = vpop.permute.xlu1 %1057  ;;  %v161_v51 = vpop.permute.xlu0 %160  ;;  %v1091_v19 = vmul.f32 %v4889_v2, %v7413_v21 }
 0x2a9   :  { %1994 = vst.msk [vmem:[#allocation2 + $0x39] sm:$0xff] %vm1902_vm0, %v1841_v33  ;;  %v5473_v33 = vadd.f32 %v1403_v25, %v1082_v34  ;;  %v1088_v25 = vmul.f32 %v4889_v2, %v7412_v29  ;;  %v1779_v34 = vmul.f32 %v5295_v13, %v1647_v3  ;;  %v431_v26 = vmul.f32 %v4692_v59, %v161_v51  ;;  %v7414_v29 = vld [vmem:[#allocation143_spill] sm:$0xff]  ;;  %v7419_v51 = vld [vmem:[#allocation33_spill] sm:$0xff] }
 0x2aa   :  { %7403 = vst [vmem:[#allocation92_spill] sm:$0xff] %v5441_v42  ;;  %vm1715_vm7 = vcmp.ge.f32.partialorder %v1651_v31, 0.0  ;;  %v1783_v22 = vmul.f32 %v5295_v13, %v1651_v31  ;;  %v5503_v16 = vmul.f32 %v4889_v2, %v7414_v29  ;;  %v5517_v29 = vmul.f32 %v4889_v2, %v7420_v52  ;;  %v7435_v42 = vld [vmem:[#allocation157_spill] sm:$0xff] }
 0x2ab   :  { %1997 = vst.msk [vmem:[#allocation2 + $0x61] sm:$0xff] %vm1902_vm0, %v1844_v39  ;;  %v5460_v39 = vmul.f32 %v5171_v48, %v7407_v49  ;;  %v1390_v49 = vmul.f32 %v5171_v48, %v1159_v45  ;;  %v1843_v45 = vsel %vm1711_vm6, %v1647_v3, %v1779_v34  ;;  %v1458_v30 = vadd.f32 %v7419_v51, %v431_v26  ;;  %v7422_v3 = vld [vmem:[#allocation147_spill] sm:$0xff]  ;;  %v7426_v26 = vld [vmem:[#allocation154_spill] sm:$0xff] }
 0x2ac   :  { %7406 = vst [vmem:[#allocation85_spill] sm:$0xff] %v5451_v46  ;;  %v7418_v46 = vld [vmem:[#allocation151_spill] sm:$0xff]  ;;  %v1847_v10 = vsel %vm1715_vm7, %v1651_v31, %v1783_v22  ;;  %v5513_v38 = vadd.f32 %v5404_v44, %v1088_v25  ;;  %v7423_v31 = vld [vmem:[#allocation149_spill] sm:$0xff]  ;;  %v3688_v25 = vld [vmem:[%s7003_s0 + $0x160] sm:$0xff] }
 0x2ad   :  { %1949 = vst.msk [vmem:[#allocation2 + $0x2e8] sm:$0x1] %vm1917_vm1, %v7338_v36  ;;  %v1094_v21 = vmul.f32 %v4889_v2, %v7418_v46  ;;  %v5525_v46 = vadd.f32 %v1412_v14, %v1091_v19  ;;  %v5529_v34 = vmul.f32 %v4889_v2, %v7423_v31  ;;  %v1586_v44 = vadd.f32 %v1522_v50, %v1458_v30  ;;  %v3689_v14 = vld [vmem:[%s7003_s0 + $0x1c8] sm:$0xff]  ;;  %v3690_v30 = vld [vmem:[%s7003_s0 + $0x158] sm:$0xff] }
 0x2ae   :  { %1950 = vst.msk [vmem:[#allocation2 + $0x300] sm:$0x1] %vm1917_vm1, %v7338_v36  ;;  %1302 = vperm.xlu2 %3642, %v3688_v25   ;;  %1298 = vperm.xlu1 %3644, %v3690_v30  }
 0x2af   :  { %7410 = vst [vmem:[#allocation86_spill] sm:$0xff] %v5477_v27  ;;  %v1518_v27 = vadd.f32 %v1390_v49, %v7416_v8  ;;  %v5521_v8 = vmul.f32 %v5171_v48, %v7422_v3  ;;  %v7425_v49 = vld [vmem:[#allocation150_spill] sm:$0xff]  ;;  %385 = vperm.xlu0 %3645, %v3689_v14   ;;  %v5547_v50 = vadd.f32 %v1415_v20, %v1094_v21  ;;  %v1171_v3 = vpop.permute.xlu2 %1170 }
 0x2b0   :  { %1951 = vst.msk [vmem:[#allocation2 + $0x318] sm:$0x1] %vm1917_vm1, %v7338_v36  ;;  %v5536_v22 = vmul.f32 %v5171_v48, %v7425_v49  ;;  %v1654_v52 = vadd.f32 %v5268_v23, %v1586_v44  ;;  %v1393_v20 = vmul.f32 %v5171_v48, %v1171_v3  ;;  %v176_v21 = vpop.permute.xlu0 %175  ;;  %v1135_v49 = vpop.permute.xlu1 %1134 }
 0x2b1   :  { %1952 = vst.msk [vmem:[#allocation2 + $0x330] sm:$0x1] %vm1917_vm1, %v7338_v36  ;;  %v1582_v6 = vadd.f32 %v1518_v27, %v5024_v12  ;;  %v7427_v27 = vld [vmem:[#allocation152_spill] sm:$0xff]  ;;  %v434_v14 = vmul.f32 %v4692_v59, %v176_v21  ;;  %v1384_v30 = vmul.f32 %v5171_v48, %v1135_v49 }
 0x2b2   :  { %7415 = vst [vmem:[#allocation95_spill] sm:$0xff] %v5503_v16  ;;  %v5551_v19 = vmul.f32 %v4889_v2, %v7427_v27  ;;  %vm1718_vm9 = vcmp.ge.f32.partialorder %v1654_v52, 0.0  ;;  %v7431_v27 = vld [vmem:[#allocation12_spill] sm:$0xff] }
 0x2b3   :  { %1996 = vst.msk [vmem:[#allocation2 + $0x51] sm:$0xff] %vm1902_vm0, %v1843_v45  ;;  %v1650_v12 = vadd.f32 %v5268_v23, %v1582_v6  ;;  %v7429_v45 = vld [vmem:[#allocation153_spill] sm:$0xff]  ;;  %v7430_v6 = vld [vmem:[#allocation158_spill] sm:$0xff]  ;;  %v1461_v21 = vadd.f32 %v5002_v47, %v434_v14  ;;  %v1512_v49 = vadd.f32 %v1384_v30, %v5288_v7 }
 0x2b4   :  { %7421 = vst [vmem:[#allocation88_spill] sm:$0xff] %v5517_v29  ;;  %v5555_v51 = vmul.f32 %v5171_v48, %v7429_v45  ;;  %v1100_v31 = vmul.f32 %v4889_v2, %v7430_v6  ;;  %v1103_v45 = vmul.f32 %v4889_v2, %v7431_v27  ;;  %v7433_v29 = vld [vmem:[#allocation156_spill] sm:$0xff]  ;;  %v7443_v14 = vld [vmem:[#allocation21_spill] sm:$0xff] }
 0x2b5   :  { %2000 = vst.msk [vmem:[#allocation2 + $0x81] sm:$0xff] %vm1902_vm0, %v1847_v10  ;;  %v1097_v10 = vmul.f32 %v4889_v2, %v7426_v26  ;;  %vm1714_vm8 = vcmp.ge.f32.partialorder %v1650_v12, 0.0  ;;  %v1782_v25 = vmul.f32 %v5295_v13, %v1650_v12  ;;  %v1786_v26 = vmul.f32 %v5295_v13, %v1654_v52 }
 0x2b6   :  { %7424 = vst [vmem:[#allocation89_spill] sm:$0xff] %v5529_v34  ;;  %v5573_v3 = vmul.f32 %v4889_v2, %v7433_v29  ;;  %v1589_v7 = vadd.f32 %v5437_v1, %v1461_v21  ;;  %v3693_v1 = vld [vmem:[%s7003_s0 + $0x170] sm:$0xff]  ;;  %v1106_v30 = vmul.f32 %v4889_v2, %v7443_v14  ;;  %v7444_v21 = vld [vmem:[#allocation39_spill] sm:$0xff]  ;;  %v5633_v14 = vld [vmem:[%s7007_s4] sm:$0xff] }
 0x2b7   :  { %7428 = vst [vmem:[#allocation98_spill] sm:$0xff] %v5551_v19  ;;  %v5566_v44 = vadd.f32 %v5460_v39, %v1097_v10  ;;  %v1846_v6 = vsel %vm1714_vm8, %v1650_v12, %v1782_v25  ;;  %v7432_v19 = vld [vmem:[#allocation34_spill] sm:$0xff]  ;;  %v1850_v16 = vsel %vm1718_vm9, %v1654_v52, %v1786_v26  ;;  %v5580_v39 = vmul.f32 %v5171_v48, %v7435_v42  ;;  %v7436_v12 = vld [vmem:[#allocation16_spill] sm:$0xff]  ;;  %v7438_v52 = vld [vmem:[#allocation11_spill] sm:$0xff] }
 0x2b8   :  { %v1521_v34 = vadd.f32 %v1393_v20, %v7432_v19  ;;  %7434 = vst [vmem:[#allocation90_spill] sm:$0xff] %v5573_v3  ;;  %v5583_v10 = vadd.f32 %v5481_v63, %v1100_v31  ;;  %v5587_v19 = vmul.f32 %v4889_v2, %v7436_v12  ;;  %v5593_v47 = vmul.f32 %v5171_v48, %v7438_v52  ;;  %v7439_v25 = vld [vmem:[#allocation8_spill] sm:$0xff]  ;;  %v3691_v63 = vld [vmem:[%s7003_s0 + $0x178] sm:$0xff]  ;;  %v7440_v20 = vld [vmem:[#allocation6_spill] sm:$0xff]  ;;  %v191_v52 = vpop.permute.xlu0 %190 }
 0x2b9   :  { %1999 = vst.msk [vmem:[#allocation2 + $0x79] sm:$0xff] %vm1902_vm0, %v1846_v6  ;;  %v1576_v42 = vadd.f32 %v1512_v49, %v7439_v25  ;;  %1314 = vperm.xlu2 %3642, %v3691_v63   ;;  %v5600_v31 = vadd.f32 %v1424_v9, %v1103_v45  ;;  %1310 = vperm.xlu1 %3644, %v3693_v1   ;;  %v7442_v26 = vld [vmem:[#allocation32_spill] sm:$0xff]  ;;  %v1183_v6 = vpop.permute.xlu2 %1182  ;;  %v1143_v25 = vpop.permute.xlu1 %1142  ;;  %vm1905_vm8 = vcmask 58368  }
 0x2ba   :  { %7437 = vst [vmem:[#allocation101_spill] sm:$0xff] %v5587_v19  ;;  %v1585_v29 = vadd.f32 %v1521_v34, %v5037_v41  ;;  %v3692_v34 = vld [vmem:[%s7003_s0 + $0x1e0] sm:$0xff]  ;;  %v5615_v9 = vmul.f32 %v5171_v48, %v7442_v26  ;;  %v1657_v27 = vadd.f32 %v5268_v23, %v1589_v7  ;;  %v1109_v49 = vmul.f32 %v4889_v2, %v7444_v21  ;;  %v7446_v21 = vld [vmem:[#allocation37_spill] sm:$0xff] }
 0x2bb   :  { %2003 = vst.msk [vmem:[#allocation2 + $0xa9] sm:$0xff] %vm1902_vm0, %v1850_v16  ;;  %v5604_v16 = vmul.f32 %v4889_v2, %v7440_v20  ;;  %400 = vperm.xlu0 %3645, %v3692_v34   ;;  %v1644_v45 = vadd.f32 %v5268_v23, %v1576_v42  ;;  %v7445_v34 = vld [vmem:[#allocation36_spill] sm:$0xff]  ;;  %v437_v1 = vmul.f32 %v4692_v59, %v191_v52  ;;  %v7450_v19 = vld [vmem:[#allocation42_spill] sm:$0xff] }
 0x2bc   :  { %v1653_v41 = vadd.f32 %v5268_v23, %v1585_v29  ;;  %v1396_v29 = vmul.f32 %v5171_v48, %v1183_v6  ;;  %vm1721_vm11 = vcmp.ge.f32.partialorder %v1657_v27, 0.0  ;;  %v1789_v63 = vmul.f32 %v5295_v13, %v1657_v27  ;;  %1906 = vst.msk [vmem:[#allocation2 + $0x10] sm:$0x3] %vm1905_vm8, %v7338_v36 }
 0x2bd   :  { %7441 = vst [vmem:[#allocation91_spill] sm:$0xff] %v5604_v16  ;;  %vm1708_vm12 = vcmp.ge.f32.partialorder %v1644_v45, 0.0  ;;  %v1776_v20 = vmul.f32 %v5295_v13, %v1644_v45  ;;  %v1386_v26 = vmul.f32 %v5171_v48, %v1143_v25  ;;  %v5636_v6 = vadd.f32 %v5521_v8, %v1106_v30  ;;  %v3694_v30 = vld [vmem:[%s7003_s0 + $0x190] sm:$0xff] }
 0x2be   :  { %vm1717_vm10 = vcmp.ge.f32.partialorder %v1653_v41, 0.0  ;;  %v1785_v12 = vmul.f32 %v5295_v13, %v1653_v41  ;;  %v1524_v42 = vadd.f32 %v1396_v29, %v7445_v34  ;;  %v5640_v16 = vmul.f32 %v5171_v48, %v7446_v21  ;;  %1918 = vst.msk [vmem:[#allocation2] sm:$0x1] %vm1917_vm1, %v7338_v36 }
 0x2bf   :  { %v5644_v29 = vadd.f32 %v5536_v22, %v1109_v49  ;;  %v1464_v25 = vadd.f32 %v5017_v57, %v437_v1  ;;  %v1514_v8 = vadd.f32 %v1386_v26, %v5301_v28  ;;  %v5658_v22 = vperm.slane %v5633_v14, 1  ;;  %v7448_v49 = vld [vmem:[#allocation31_spill] sm:$0xff]  ;;  %1909 = vst.msk [vmem:[#allocation2 + $0x1c0] sm:$0x3] %vm1905_vm8, %v7338_v36 }
 0x2c0   :  { %v1849_v7 = vsel %vm1717_vm10, %v1653_v41, %v1785_v12  ;;  %7447 = vst [vmem:[#allocation93_spill] sm:$0xff] %v5640_v16  ;;  %v1853_v41 = vsel %vm1721_vm11, %v1657_v27, %v1789_v63  ;;  %v1840_v12 = vsel %vm1708_vm12, %v1644_v45, %v1776_v20  ;;  %v1588_v52 = vadd.f32 %v1524_v42, %v5052_v15  ;;  %v3695_v20 = vld [vmem:[%s7003_s0 + $0x1f8] sm:$0xff] }
 0x2c1   :  { %2002 = vst.msk [vmem:[#allocation2 + $0x99] sm:$0xff] %vm1902_vm0, %v1849_v7  ;;  %1326 = vperm.xlu2 %3642, %v3694_v30   ;;  %v5655_v27 = vperm.slane %v5633_v14, 0  ;;  %v5661_v45 = vperm.slane %v5633_v14, 2  ;;  %v5664_v57 = vperm.slane %v5633_v14, 3  ;;  %v1592_v28 = vadd.f32 %v5447_v5, %v1464_v25  ;;  %v3696_v7 = vld [vmem:[%s7003_s0 + $0x188] sm:$0xff]  ;;  %v1195_v1 = vpop.permute.xlu2 %1194  ;;  %v1155_v25 = vpop.permute.xlu1 %1154 }
 0x2c2   :  { %2006 = vst.msk [vmem:[#allocation2 + $0xc9] sm:$0xff] %vm1902_vm0, %v1853_v41  ;;  %v1656_v15 = vadd.f32 %v5268_v23, %v1588_v52  ;;  %v1578_v63 = vadd.f32 %v1514_v8, %v7448_v49  ;;  %1322 = vperm.xlu1 %3644, %v3696_v7   ;;  %v1112_v34 = vmul.f32 %v4889_v2, %v5112_v43  ;;  %v5680_v5 = vperm.slane %v5633_v14, 4  ;;  %v206_v52 = vpop.permute.xlu0 %205 }
 0x2c3   :  { %1993 = vst.msk [vmem:[#allocation2 + $0x31] sm:$0xff] %vm1902_vm0, %v1840_v12  ;;  %415 = vperm.xlu0 %3645, %v3695_v20   ;;  %v1115_v42 = vmul.f32 %v4889_v2, %v5228_v58  ;;  %v5683_v26 = vperm.slane %v5633_v14, 5  ;;  %v1660_v41 = vadd.f32 %v5268_v23, %v1592_v28  ;;  %v1118_v43 = vmul.f32 %v4889_v2, %v5333_v18 }
 0x2c4   :  { %vm1720_vm13 = vcmp.ge.f32.partialorder %v1656_v15, 0.0  ;;  %v1788_v21 = vmul.f32 %v5295_v13, %v1656_v15  ;;  %v1646_v12 = vadd.f32 %v5268_v23, %v1578_v63  ;;  %v1399_v58 = vmul.f32 %v5171_v48, %v1195_v1  ;;  %v7449_v63 = vld [vmem:[#allocation40_spill] sm:$0xff]  ;;  %1936 = vst.msk [vmem:[#allocation2 + $0x1b0] sm:$0x1] %vm1917_vm1, %v7338_v36 }
 0x2c5   :  { %v440_v8 = vmul.f32 %v4692_v59, %v206_v52  ;;  %v1389_v30 = vmul.f32 %v5171_v48, %v1155_v25  ;;  %vm1724_vm14 = vcmp.ge.f32.partialorder %v1660_v41, 0.0  ;;  %v1792_v20 = vmul.f32 %v5295_v13, %v1660_v41 }
 0x2c6   :  { %v1852_v49 = vsel %vm1720_vm13, %v1656_v15, %v1788_v21  ;;  %vm1710_vm15 = vcmp.ge.f32.partialorder %v1646_v12, 0.0  ;;  %v1778_v28 = vmul.f32 %v5295_v13, %v1646_v12  ;;  %v1527_v7 = vadd.f32 %v1399_v58, %v7449_v63 }
 0x2c7   :  { %2005 = vst.msk [vmem:[#allocation2 + $0xc1] sm:$0xff] %vm1902_vm0, %v1852_v49  ;;  %v1467_v3 = vadd.f32 %v7450_v19, %v440_v8  ;;  %v1517_v18 = vadd.f32 %v1389_v30, %v5324_v62  ;;  %v5700_v1 = vadd.f32 %v5555_v51, %v1112_v34  ;;  %v5703_v52 = vadd.f32 %v5580_v39, %v1115_v42  ;;  %v7451_v62 = vld [vmem:[#allocation9_spill] sm:$0xff]  ;;  %v3698_v39 = vld [vmem:[%s7003_s0 + $0x1a0] sm:$0xff] }
 0x2c8   :  { %v1121_v15 = vmul.f32 %v4889_v2, %v5407_v35  ;;  %v1856_v21 = vsel %vm1724_vm14, %v1660_v41, %v1792_v20  ;;  %v1842_v16 = vsel %vm1710_vm15, %v1646_v12, %v1778_v28  ;;  %v1591_v58 = vadd.f32 %v1527_v7, %v5067_v61  ;;  %v3697_v35 = vld [vmem:[%s7003_s0 + $0x1a8] sm:$0xff] }
 0x2c9   :  { %2009 = vst.msk [vmem:[#allocation2 + $0xf1] sm:$0xff] %vm1902_vm0, %v1856_v21  ;;  %v1595_v19 = vadd.f32 %v5473_v33, %v1467_v3  ;;  %v1581_v8 = vadd.f32 %v1517_v18, %v7451_v62  ;;  %v5712_v34 = vadd.f32 %v5593_v47, %v1118_v43  ;;  %1338 = vperm.xlu2 %3642, %v3697_v35   ;;  %v5723_v33 = vperm.slane %v5633_v14, 6  ;;  %v1207_v41 = vpop.permute.xlu2 %1206  ;;  %v1167_v28 = vpop.permute.xlu1 %1166  ;;  %v2106_v7 = vld [vmem:[#allocation2 + $0x1] ss:$2 sm:$0xff]  ;;  %v2203_v18 = vld [vmem:[#allocation2 + $0x18] ss:$2 sm:$0xff] }
 0x2ca   :  { %v2059_v25 = vld [vmem:[#allocation2 + $0x30] ss:$2 sm:$0xff]  ;;  %v2108_v49 = vld [vmem:[#allocation2 + $0x31] ss:$2 sm:$0xff]  ;;  %1995 = vst.msk [vmem:[#allocation2 + $0x49] sm:$0xff] %vm1902_vm0, %v1842_v16  ;;  %1334 = vperm.xlu1 %3644, %v3698_v39   ;;  %v5726_v3 = vperm.slane %v5633_v14, 7  ;;  %v1659_v47 = vadd.f32 %v5268_v23, %v1591_v58  ;;  %v5733_v43 = vadd.f32 %v5615_v9, %v1121_v15  ;;  %v5737_v30 = vmul.f32 %v4889_v2, %v5484_v24  ;;  %v221_v14 = vpop.permute.xlu0 %220 }
 0x2cb   :  { %v2157_v51 = vld [vmem:[#allocation2 + $0x32] ss:$2 sm:$0xff]  ;;  %7452 = vst [vmem:[#allocation104_spill] sm:$0xff] %v5712_v34  ;;  %v2090_v61 = vmul.f32 %v5655_v27, %v2059_v25  ;;  %v1663_v16 = vadd.f32 %v5268_v23, %v1595_v19  ;;  %v1649_v42 = vadd.f32 %v5268_v23, %v1581_v8  ;;  %v2139_v12 = vmul.f32 %v5658_v22, %v2108_v49  ;;  %v2252_v9 = vld [vmem:[#allocation2 + $0x19] ss:$2 sm:$0xff]  ;;  %v7455_v24 = vld [vmem:[#allocation47_spill] sm:$0xff] }
 0x2cc   :  { %7453 = vst [vmem:[#allocation94_spill] sm:$0xff] %v5733_v43  ;;  %v1402_v20 = vmul.f32 %v5171_v48, %v1207_v41  ;;  %v2188_v63 = vmul.f32 %v5661_v45, %v2157_v51  ;;  %vm1723_vm2 = vcmp.ge.f32.partialorder %v1659_v47, 0.0  ;;  %v1791_v21 = vmul.f32 %v5295_v13, %v1659_v47  ;;  %v2301_v19 = vld [vmem:[#allocation2 + $0x1a] ss:$2 sm:$0xff]  ;;  %v2256_v34 = vld [vmem:[#allocation2 + $0x79] ss:$2 sm:$0xff] }
 0x2cd   :  { %7454 = vst [vmem:[#allocation96_spill] sm:$0xff] %v5737_v30  ;;  %vm1727_vm3 = vcmp.ge.f32.partialorder %v1663_v16, 0.0  ;;  %v1795_v25 = vmul.f32 %v5295_v13, %v1663_v16  ;;  %vm1713_vm4 = vcmp.ge.f32.partialorder %v1649_v42, 0.0  ;;  %v1781_v15 = vmul.f32 %v5295_v13, %v1649_v42  ;;  %v7456_v2 = vld [vmem:[#allocation50_spill] sm:$0xff] }
 0x2ce   :  { %v1530_v49 = vadd.f32 %v1402_v20, %v7455_v24  ;;  %v443_v58 = vmul.f32 %v4692_v59, %v221_v14  ;;  %v1855_v62 = vsel %vm1723_vm2, %v1659_v47, %v1791_v21  ;;  %v1392_v51 = vmul.f32 %v5171_v48, %v1167_v28  ;;  %v7457_v21 = vld [vmem:[#allocation14_spill] sm:$0xff] }
 0x2cf   :  { %v1859_v8 = vsel %vm1727_vm3, %v1663_v16, %v1795_v25  ;;  %v2497_v35 = vadd.f32 %v2139_v12, %v2090_v61  ;;  %2008 = vst.msk [vmem:[#allocation2 + $0xe1] sm:$0xff] %vm1902_vm0, %v1855_v62  ;;  %v1845_v39 = vsel %vm1713_vm4, %v1649_v42, %v1781_v15  ;;  %v5751_v43 = vmul.f32 %v5658_v22, %v2106_v7  ;;  %v3700_v12 = vld [vmem:[%s7003_s0 + $0x1b8] sm:$0xff] }
 0x2d0   :  { %v1594_v41 = vadd.f32 %v1530_v49, %v5085_v4  ;;  %v1470_v30 = vadd.f32 %v7456_v2, %v443_v58  ;;  %2012 = vst.msk [vmem:[#allocation2 + $0x111] sm:$0xff] %vm1902_vm0, %v1859_v8  ;;  %v1520_v20 = vadd.f32 %v1392_v51, %v5352_v55  ;;  %v5756_v16 = vmul.f32 %v5664_v57, %v2203_v18  ;;  %v3699_v55 = vld [vmem:[%s7003_s0 + $0x1c0] sm:$0xff]  ;;  %v2350_v18 = vld [vmem:[#allocation2 + $0x30] ss:$2 sm:$0xff] }
 0x2d1   :  { %v2205_v14 = vld [vmem:[#allocation2 + $0x48] ss:$2 sm:$0xff]  ;;  %v2254_v47 = vld [vmem:[#allocation2 + $0x49] ss:$2 sm:$0xff]  ;;  %v5759_v61 = vmul.f32 %v5680_v5, %v2252_v9  ;;  %v5762_v42 = vmul.f32 %v5683_v26, %v2301_v19  ;;  %1998 = vst.msk [vmem:[#allocation2 + $0x69] sm:$0xff] %vm1902_vm0, %v1845_v39  ;;  %1350 = vperm.xlu2 %3642, %v3699_v55   ;;  %v1219_v9 = vpop.permute.xlu2 %1218  ;;  %v1179_v62 = vpop.permute.xlu1 %1178 }
 0x2d2   :  { %v1662_v2 = vadd.f32 %v5268_v23, %v1594_v41  ;;  %v1598_v4 = vadd.f32 %v5499_v17, %v1470_v30  ;;  %1346 = vperm.xlu1 %3644, %v3700_v12   ;;  %v2236_v28 = vmul.f32 %v5664_v57, %v2205_v14  ;;  %v2303_v7 = vld [vmem:[#allocation2 + $0x4a] ss:$2 sm:$0xff]  ;;  %v1584_v25 = vadd.f32 %v1520_v20, %v7457_v21  ;;  %v236_v19 = vpop.permute.xlu0 %235  ;;  %v2399_v12 = vld [vmem:[#allocation2 + $0x31] ss:$2 sm:$0xff] }
 0x2d3   :  { %v2285_v15 = vmul.f32 %v5680_v5, %v2254_v47  ;;  %v2334_v17 = vmul.f32 %v5683_v26, %v2303_v7  ;;  %v5778_v30 = vmul.f32 %v5723_v33, %v2350_v18  ;;  %v1405_v58 = vmul.f32 %v5171_v48, %v1219_v9  ;;  %v7458_v47 = vld [vmem:[#allocation43_spill] sm:$0xff]  ;;  %v7459_v7 = vld [vmem:[#allocation53_spill] sm:$0xff] }
 0x2d4   :  { %vm1726_vm5 = vcmp.ge.f32.partialorder %v1662_v2, 0.0  ;;  %v1794_v24 = vmul.f32 %v5295_v13, %v1662_v2  ;;  %v1666_v49 = vadd.f32 %v5268_v23, %v1598_v4  ;;  %v1652_v8 = vadd.f32 %v5268_v23, %v1584_v25 }
 0x2d5   :  { %v446_v51 = vmul.f32 %v4692_v59, %v236_v19  ;;  %v1395_v39 = vmul.f32 %v5171_v48, %v1179_v62  ;;  %v2513_v41 = vadd.f32 %v2236_v28, %v2188_v63  ;;  %v1533_v55 = vadd.f32 %v1405_v58, %v7458_v47  ;;  %v5795_v63 = vld [vmem:[%s7007_s4 + $0x8] ss:$0 sm:$0xff]  ;;  %v7460_v28 = vld [vmem:[#allocation61_spill] sm:$0xff] }
 0x2d6   :  { %v1858_v20 = vsel %vm1726_vm5, %v1662_v2, %v1794_v24  ;;  %vm1730_vm6 = vcmp.ge.f32.partialorder %v1666_v49, 0.0  ;;  %v1798_v14 = vmul.f32 %v5295_v13, %v1666_v49  ;;  %vm1716_vm7 = vcmp.ge.f32.partialorder %v1652_v8, 0.0  ;;  %v2448_v58 = vld [vmem:[#allocation2 + $0x32] ss:$2 sm:$0xff] }
 0x2d7   :  { %2011 = vst.msk [vmem:[#allocation2 + $0x109] sm:$0xff] %vm1902_vm0, %v1858_v20  ;;  %v1784_v4 = vmul.f32 %v5295_v13, %v1652_v8  ;;  %v1473_v18 = vadd.f32 %v7459_v7, %v446_v51  ;;  %v1523_v21 = vadd.f32 %v1395_v39, %v5364_v32  ;;  %v1597_v25 = vadd.f32 %v1533_v55, %v7460_v28  ;;  %v7461_v20 = vld [vmem:[#allocation17_spill] sm:$0xff] }
 0x2d8   :  { %v1862_v2 = vsel %vm1730_vm6, %v1666_v49, %v1798_v14  ;;  %v2529_v9 = vadd.f32 %v2334_v17, %v2285_v15  ;;  %v2561_v24 = vadd.f32 %v2513_v41, %v2497_v35  ;;  %v2352_v47 = vld [vmem:[#allocation2 + $0x60] ss:$2 sm:$0xff]  ;;  %v2401_v32 = vld [vmem:[#allocation2 + $0x61] ss:$2 sm:$0xff]  ;;  %v2431_v39 = vmul.f32 %v5726_v3, %v2399_v12  ;;  %v3701_v35 = vld [vmem:[%s7003_s0 + $0x1d8] sm:$0xff] }
 0x2d9   :  { %2015 = vst.msk [vmem:[#allocation2 + $0x139] sm:$0xff] %vm1902_vm0, %v1862_v2  ;;  %v1848_v19 = vsel %vm1716_vm7, %v1652_v8, %v1784_v4  ;;  %v1601_v62 = vadd.f32 %v5513_v38, %v1473_v18  ;;  %v1587_v51 = vadd.f32 %v1523_v21, %v7461_v20  ;;  %v1665_v49 = vadd.f32 %v5268_v23, %v1597_v25  ;;  %v3702_v15 = vld [vmem:[%s7003_s0 + $0x1d0] sm:$0xff]  ;;  %v1231_v55 = vpop.permute.xlu2 %1230  ;;  %v1191_v2 = vpop.permute.xlu1 %1190 }
 0x2da   :  { %2001 = vst.msk [vmem:[#allocation2 + $0x91] sm:$0xff] %vm1902_vm0, %v1848_v19  ;;  %1362 = vperm.xlu2 %3642, %v3701_v35   ;;  %1358 = vperm.xlu1 %3644, %v3702_v15   ;;  %v2383_v38 = vmul.f32 %v5723_v33, %v2352_v47  ;;  %v2432_v17 = vmul.f32 %v5726_v3, %v2401_v32  ;;  %v2450_v8 = vld [vmem:[#allocation2 + $0x62] ss:$2 sm:$0xff]  ;;  %v251_v21 = vpop.permute.xlu0 %250  ;;  %v2110_v35 = vld [vmem:[#allocation2 + $0x61] ss:$2 sm:$0xff] }
 0x2db   :  { %v1669_v41 = vadd.f32 %v5268_v23, %v1601_v62  ;;  %v1655_v14 = vadd.f32 %v5268_v23, %v1587_v51  ;;  %v2481_v12 = vmul.f32 %v5795_v63, %v2450_v8  ;;  %v5816_v4 = vmul.f32 %v5795_v63, %v2448_v58  ;;  %v2061_v62 = vld [vmem:[#allocation2 + $0x60] ss:$2 sm:$0xff] }
 0x2dc   :  { %vm1729_vm9 = vcmp.ge.f32.partialorder %v1665_v49, 0.0  ;;  %v1797_v7 = vmul.f32 %v5295_v13, %v1665_v49  ;;  %v1408_v18 = vmul.f32 %v5171_v48, %v1231_v55  ;;  %v2545_v28 = vadd.f32 %v2432_v17, %v2383_v38  ;;  %v7462_v51 = vld [vmem:[#allocation7_spill] sm:$0xff] }
 0x2dd   :  { %vm1733_vm10 = vcmp.ge.f32.partialorder %v1669_v41, 0.0  ;;  %v1801_v25 = vmul.f32 %v5295_v13, %v1669_v41  ;;  %vm1719_vm11 = vcmp.ge.f32.partialorder %v1655_v14, 0.0  ;;  %v1787_v19 = vmul.f32 %v5295_v13, %v1655_v14  ;;  %v2159_v15 = vld [vmem:[#allocation2 + $0x62] ss:$2 sm:$0xff] }
 0x2de   :  { %v1861_v20 = vsel %vm1729_vm9, %v1665_v49, %v1797_v7  ;;  %v1536_v47 = vadd.f32 %v1408_v18, %v7462_v51  ;;  %v449_v58 = vmul.f32 %v4692_v59, %v251_v21  ;;  %v1398_v32 = vmul.f32 %v5171_v48, %v1191_v2  ;;  %v7463_v7 = vld [vmem:[#allocation45_spill] sm:$0xff] }
 0x2df   :  { %2014 = vst.msk [vmem:[#allocation2 + $0x129] sm:$0xff] %vm1902_vm0, %v1861_v20  ;;  %v1865_v38 = vsel %vm1733_vm10, %v1669_v41, %v1801_v25  ;;  %v1851_v17 = vsel %vm1719_vm11, %v1655_v14, %v1787_v19  ;;  %v2577_v8 = vadd.f32 %v2545_v28, %v2529_v9  ;;  %v2528_v55 = vadd.f32 %v5762_v42, %v5759_v61  ;;  %v2207_v51 = vld [vmem:[#allocation2 + $0x78] ss:$2 sm:$0xff] }
 0x2e0   :  { %2018 = vst.msk [vmem:[#allocation2 + $0x159] sm:$0xff] %vm1902_vm0, %v1865_v38  ;;  %v1600_v49 = vadd.f32 %v1536_v47, %v5119_v54  ;;  %v1476_v18 = vadd.f32 %v7463_v7, %v449_v58  ;;  %v1526_v21 = vadd.f32 %v1398_v32, %v5370_v60  ;;  %v2544_v2 = vadd.f32 %v2431_v39, %v5778_v30  ;;  %v7464_v14 = vld [vmem:[#allocation10_spill] sm:$0xff]  ;;  %v3703_v39 = vld [vmem:[%s7003_s0 + $0x1f0] sm:$0xff] }
 0x2e1   :  { %2004 = vst.msk [vmem:[#allocation2 + $0xb1] sm:$0xff] %vm1902_vm0, %v1851_v17  ;;  %v2593_v41 = vadd.f32 %v2577_v8, %v2561_v24  ;;  %v5837_v9 = vmul.f32 %v5655_v27, %v2061_v62  ;;  %v5840_v61 = vmul.f32 %v5658_v22, %v2110_v35  ;;  %v5843_v42 = vmul.f32 %v5661_v45, %v2159_v15  ;;  %v3704_v24 = vld [vmem:[%s7003_s0 + $0x1e8] sm:$0xff]  ;;  %v1243_v28 = vpop.permute.xlu2 %1242  ;;  %v5857_v19 = vld [vmem:[%s7008_s5] ss:$0 sm:$0xff]  ;;  %v1203_v35 = vpop.permute.xlu1 %1202 }
 0x2e2   :  { %v1668_v54 = vadd.f32 %v5268_v23, %v1600_v49  ;;  %v1604_v60 = vadd.f32 %v5525_v46, %v1476_v18  ;;  %v1590_v30 = vadd.f32 %v1526_v21, %v7464_v14  ;;  %1374 = vperm.xlu2 %3642, %v3703_v39   ;;  %1370 = vperm.xlu1 %3644, %v3704_v24   ;;  %v266_v32 = vpop.permute.xlu0 %265  ;;  %v2155_v8 = vld [vmem:[#allocation2 + $0x2] ss:$2 sm:$0xff]  ;;  %v5880_v7 = vld [vmem:[%s7009_s6] ss:$0 sm:$0xff] }
 0x2e3   :  { %v2609_v25 = vadd.f32 %v2593_v41, %v2481_v12  ;;  %v5859_v46 = vadd.f32 %v2544_v2, %v2528_v55  ;;  %v5862_v62 = vmul.f32 %v5664_v57, %v2207_v51  ;;  %v5865_v20 = vmul.f32 %v5680_v5, %v2256_v34  ;;  %v7465_v21 = vld [vmem:[#allocation56_spill] sm:$0xff]  ;;  %v7466_v51 = vld [vmem:[#allocation57_spill] sm:$0xff] }
 0x2e4   :  { %vm1732_vm12 = vcmp.ge.f32.partialorder %v1668_v54, 0.0  ;;  %v1800_v47 = vmul.f32 %v5295_v13, %v1668_v54  ;;  %v1672_v58 = vadd.f32 %v5268_v23, %v1604_v60  ;;  %v1658_v12 = vadd.f32 %v5268_v23, %v1590_v30 }
 0x2e5   :  { %v1411_v15 = vmul.f32 %v5171_v48, %v1243_v28  ;;  %v452_v38 = vmul.f32 %v4692_v59, %v266_v32  ;;  %v1401_v17 = vmul.f32 %v5171_v48, %v1203_v35  ;;  %v2629_v34 = vadd.f32 %v5857_v19, %v2609_v25  ;;  %v2354_v35 = vld [vmem:[#allocation2 + $0x90] ss:$2 sm:$0xff] }
 0x2e6   :  { %v1864_v55 = vsel %vm1732_vm12, %v1668_v54, %v1800_v47  ;;  %vm1736_vm13 = vcmp.ge.f32.partialorder %v1672_v58, 0.0  ;;  %v1804_v49 = vmul.f32 %v5295_v13, %v1672_v58  ;;  %vm1722_vm14 = vcmp.ge.f32.partialorder %v1658_v12, 0.0  ;;  %v2305_v54 = vld [vmem:[#allocation2 + $0x7a] ss:$2 sm:$0xff]  ;;  %v7467_v47 = vld [vmem:[#allocation20_spill] sm:$0xff] }
 0x2e7   :  { %2017 = vst.msk [vmem:[#allocation2 + $0x151] sm:$0xff] %vm1902_vm0, %v1864_v55  ;;  %v1790_v18 = vmul.f32 %v5295_v13, %v1658_v12  ;;  %v1539_v2 = vadd.f32 %v1411_v15, %v7465_v21  ;;  %v1479_v41 = vadd.f32 %v7466_v51, %v452_v38  ;;  %v1529_v60 = vadd.f32 %v1401_v17, %v5378_v11  ;;  %v2403_v15 = vld [vmem:[#allocation2 + $0x91] ss:$2 sm:$0xff] }
 0x2e8   :  { %v1868_v14 = vsel %vm1736_vm13, %v1672_v58, %v1804_v49  ;;  %vm2645_vm15 = vcmp.ge.f32.partialorder %v2629_v34, 0.0  ;;  %v2665_v30 = vmul.f32 %v5880_v7, %v2629_v34  ;;  %v2187_v39 = vmul.f32 %v5661_v45, %v2155_v8  ;;  %v2057_v8 = vld [vmem:[#allocation2] ss:$2 sm:$0xff] }
 0x2e9   :  { %2021 = vst.msk [vmem:[#allocation2 + $0x181] sm:$0xff] %vm1902_vm0, %v1868_v14  ;;  %v1854_v24 = vsel %vm1722_vm14, %v1658_v12, %v1790_v18  ;;  %v1603_v28 = vadd.f32 %v1539_v2, %v5134_v40  ;;  %v1607_v25 = vadd.f32 %v5547_v50, %v1479_v41  ;;  %v1593_v32 = vadd.f32 %v1529_v60, %v7467_v47  ;;  %v1255_v55 = vpop.permute.xlu2 %1254  ;;  %v1215_v18 = vpop.permute.xlu1 %1214  ;;  %v2452_v41 = vld [vmem:[#allocation2 + $0x92] ss:$2 sm:$0xff] }
 0x2ea   :  { %2007 = vst.msk [vmem:[#allocation2 + $0xd9] sm:$0xff] %vm1902_vm0, %v1854_v24  ;;  %v7468_v11 = vmov 0   ;;  %v5896_v58 = vsel %vm2645_vm15, %v2629_v34, %v2665_v30  ;;  %v2512_v38 = vadd.f32 %v5756_v16, %v2187_v39  ;;  %v2335_v12 = vmul.f32 %v5683_v26, %v2305_v54  ;;  %v281_v16 = vpop.permute.xlu0 %280  ;;  %v7469_v14 = vld [vmem:[#allocation46_spill] sm:$0xff] }
 0x2eb   :  { %3647 = vset.pattern.permute.xlu2 %v7468_v11  ;;  %3646 = vset.pattern.permute.xlu1 %v7468_v11  ;;  %v1671_v40 = vadd.f32 %v5268_v23, %v1603_v28  ;;  %v1675_v50 = vadd.f32 %v5268_v23, %v1607_v25  ;;  %v1661_v17 = vadd.f32 %v5268_v23, %v1593_v32 }
 0x2ec   :  { %2704 = vperm.xlu2 %3647, %v5896_v58   ;;  %v2089_v34 = vmul.f32 %v5655_v27, %v2057_v8  ;;  %v1414_v49 = vmul.f32 %v5171_v48, %v1255_v55  ;;  %v2384_v21 = vmul.f32 %v5723_v33, %v2354_v35  ;;  %v2433_v2 = vmul.f32 %v5726_v3, %v2403_v15  ;;  %v2063_v15 = vld [vmem:[#allocation2 + $0x90] ss:$2 sm:$0xff] }
 0x2ed   :  { %vm1735_vm2 = vcmp.ge.f32.partialorder %v1671_v40, 0.0  ;;  %v1803_v23 = vmul.f32 %v5295_v13, %v1671_v40  ;;  %vm1739_vm3 = vcmp.ge.f32.partialorder %v1675_v50, 0.0  ;;  %v1807_v51 = vmul.f32 %v5295_v13, %v1675_v50 }
 0x2ee   :  { %vm1725_vm4 = vcmp.ge.f32.partialorder %v1661_v17, 0.0  ;;  %v1793_v60 = vmul.f32 %v5295_v13, %v1661_v17  ;;  %v2496_v54 = vadd.f32 %v5751_v43, %v2089_v34  ;;  %v1542_v30 = vadd.f32 %v1414_v49, %v7469_v14  ;;  %v7470_v13 = vld [vmem:[#allocation48_spill] sm:$0xff]  ;;  %v5947_v49 = vld [vmem:[%s7006_s3] ss:$0 sm:$0xff] }
 0x2ef   :  { %v1867_v39 = vsel %vm1735_vm2, %v1671_v40, %v1803_v23  ;;  %v1871_v24 = vsel %vm1739_vm3, %v1675_v50, %v1807_v51  ;;  %v455_v28 = vmul.f32 %v4692_v59, %v281_v16  ;;  %v1404_v25 = vmul.f32 %v5171_v48, %v1215_v18 }
 0x2f0   :  { %2020 = vst.msk [vmem:[#allocation2 + $0x171] sm:$0xff] %vm1902_vm0, %v1867_v39  ;;  %v1857_v47 = vsel %vm1725_vm4, %v1661_v17, %v1793_v60  ;;  %v2560_v32 = vadd.f32 %v2512_v38, %v2496_v54  ;;  %v1606_v36 = vadd.f32 %v1542_v30, %v5149_v37  ;;  %v2482_v35 = vmul.f32 %v5795_v63, %v2452_v41  ;;  %v5934_v37 = vld [vmem:[%s7005_s2] ss:$0 sm:$0xff]  ;;  %v2112_v30 = vld [vmem:[#allocation2 + $0x91] ss:$2 sm:$0xff] }
 0x2f1   :  { %2024 = vst.msk [vmem:[#allocation2 + $0x1d1] sm:$0xff] %vm1902_vm0, %v1871_v24  ;;  %v1482_v43 = vadd.f32 %v7470_v13, %v455_v28  ;;  %v1532_v11 = vadd.f32 %v1404_v25, %v5400_v56  ;;  %v2498_v40 = vadd.f32 %v5840_v61, %v5837_v9  ;;  %v2514_v50 = vadd.f32 %v5862_v62, %v5843_v42  ;;  %v7471_v9 = vld [vmem:[#allocation23_spill] sm:$0xff]  ;;  %v1267_v42 = vpop.permute.xlu2 %1266  ;;  %v7472_v28 = vld [vmem:[#allocation52_spill] sm:$0xff] }
 0x2f2   :  { %2010 = vst.msk [vmem:[#allocation2 + $0xf9] sm:$0xff] %vm1902_vm0, %v1857_v47  ;;  %v2592_v38 = vadd.f32 %v5859_v46, %v2560_v32  ;;  %v1674_v17 = vadd.f32 %v5934_v37, %v1606_v36  ;;  %v2530_v8 = vadd.f32 %v2335_v12, %v5865_v20  ;;  %v2546_v56 = vadd.f32 %v2433_v2, %v2384_v21  ;;  %v296_v16 = vpop.permute.xlu0 %295  ;;  %v2161_v47 = vld [vmem:[#allocation2 + $0x92] ss:$2 sm:$0xff] }
 0x2f3   :  { %v1610_v55 = vadd.f32 %v5566_v44, %v1482_v43  ;;  %v1596_v61 = vadd.f32 %v1532_v11, %v7471_v9  ;;  %v2562_v34 = vadd.f32 %v2514_v50, %v2498_v40  ;;  %v5941_v62 = vmul.f32 %v5655_v27, %v2063_v15  ;;  %v1227_v44 = vpop.permute.xlu1 %1226  ;;  %v7473_v15 = vld [vmem:[#allocation55_spill] sm:$0xff] }
 0x2f4   :  { %v2608_v46 = vadd.f32 %v2592_v38, %v5816_v4  ;;  %vm1738_vm1 = vcmp.ge.f32.partialorder %v1674_v17, 0.0  ;;  %v1806_v20 = vmul.f32 %v5947_v49, %v1674_v17  ;;  %v2578_v12 = vadd.f32 %v2546_v56, %v2530_v8  ;;  %v2209_v11 = vld [vmem:[#allocation2 + $0xa8] ss:$2 sm:$0xff] }
 0x2f5   :  { %v1678_v18 = vadd.f32 %v5934_v37, %v1610_v55  ;;  %v1664_v21 = vadd.f32 %v5934_v37, %v1596_v61  ;;  %v1417_v2 = vmul.f32 %v5171_v48, %v1267_v42  ;;  %v458_v23 = vmul.f32 %v4692_v59, %v296_v16  ;;  %v2307_v8 = vld [vmem:[#allocation2 + $0xaa] ss:$2 sm:$0xff] }
 0x2f6   :  { %v2628_v4 = vadd.f32 %v5857_v19, %v2608_v46  ;;  %v1870_v51 = vsel %vm1738_vm1, %v1674_v17, %v1806_v20  ;;  %v2594_v41 = vadd.f32 %v2578_v12, %v2562_v34  ;;  %v1407_v60 = vmul.f32 %v5171_v48, %v1227_v44  ;;  %v2258_v17 = vld [vmem:[#allocation2 + $0xa9] ss:$2 sm:$0xff]  ;;  %v2356_v61 = vld [vmem:[#allocation2 + $0xc0] ss:$2 sm:$0xff] }
 0x2f7   :  { %2023 = vst.msk [vmem:[#allocation2 + $0x1c9] sm:$0xff] %vm1902_vm0, %v1870_v51  ;;  %vm1742_vm5 = vcmp.ge.f32.partialorder %v1678_v18, 0.0  ;;  %v1810_v54 = vmul.f32 %v5947_v49, %v1678_v18  ;;  %vm1728_vm6 = vcmp.ge.f32.partialorder %v1664_v21, 0.0  ;;  %v1796_v14 = vmul.f32 %v5947_v49, %v1664_v21 }
 0x2f8   :  { %vm2644_vm7 = vcmp.ge.f32.partialorder %v2628_v4, 0.0  ;;  %v2664_v39 = vmul.f32 %v5880_v7, %v2628_v4  ;;  %v2610_v24 = vadd.f32 %v2594_v41, %v2482_v35  ;;  %v1545_v25 = vadd.f32 %v1417_v2, %v7472_v28  ;;  %v2454_v2 = vld [vmem:[#allocation2 + $0xc2] ss:$2 sm:$0xff]  ;;  %v2114_v28 = vld [vmem:[#allocation2 + $0xc1] ss:$2 sm:$0xff] }
 0x2f9   :  { %v1874_v32 = vsel %vm1742_vm5, %v1678_v18, %v1810_v54  ;;  %v1860_v36 = vsel %vm1728_vm6, %v1664_v21, %v1796_v14  ;;  %v1485_v13 = vadd.f32 %v7473_v15, %v458_v23  ;;  %v1535_v43 = vadd.f32 %v1407_v60, %v5426_v53  ;;  %v7474_v53 = vld [vmem:[#allocation13_spill] sm:$0xff]  ;;  %v1279_v34 = vpop.permute.xlu2 %1278  ;;  %v2405_v21 = vld [vmem:[#allocation2 + $0xc1] ss:$2 sm:$0xff] }
 0x2fa   :  { %v5963_v40 = vsel %vm2644_vm7, %v2628_v4, %v2664_v39  ;;  %2027 = vst.msk [vmem:[#allocation2 + $0x1f9] sm:$0xff] %vm1902_vm0, %v1874_v32  ;;  %v2630_v50 = vadd.f32 %v5857_v19, %v2610_v24  ;;  %v1609_v38 = vadd.f32 %v1545_v25, %v5162_v0  ;;  %v2141_v35 = vmul.f32 %v5658_v22, %v2112_v30  ;;  %v311_v20 = vpop.permute.xlu0 %310  ;;  %v2065_v24 = vld [vmem:[#allocation2 + $0xc0] ss:$2 sm:$0xff] }
 0x2fb   :  { %2699 = vperm.xlu1 %3646, %v5963_v40   ;;  %2013 = vst.msk [vmem:[#allocation2 + $0x121] sm:$0xff] %vm1902_vm0, %v1860_v36  ;;  %v1613_v56 = vadd.f32 %v5583_v10, %v1485_v13  ;;  %v1599_v55 = vadd.f32 %v1535_v43, %v7474_v53  ;;  %v2190_v9 = vmul.f32 %v5661_v45, %v2161_v47  ;;  %v1239_v12 = vpop.permute.xlu1 %1238  ;;  %v2163_v25 = vld [vmem:[#allocation2 + $0xc2] ss:$2 sm:$0xff] }
 0x2fc   :  { %vm2646_vm8 = vcmp.ge.f32.partialorder %v2630_v50, 0.0  ;;  %v2666_v42 = vmul.f32 %v5880_v7, %v2630_v50  ;;  %v1677_v0 = vadd.f32 %v5934_v37, %v1609_v38  ;;  %v2238_v46 = vmul.f32 %v5664_v57, %v2209_v11  ;;  %v2211_v38 = vld [vmem:[#allocation2 + $0xd8] ss:$2 sm:$0xff] }
 0x2fd   :  { %v1681_v16 = vadd.f32 %v5934_v37, %v1613_v56  ;;  %v1667_v44 = vadd.f32 %v5934_v37, %v1599_v55  ;;  %v2287_v10 = vmul.f32 %v5680_v5, %v2258_v17  ;;  %v2336_v18 = vmul.f32 %v5683_v26, %v2307_v8  ;;  %v7475_v55 = vld [vmem:[#allocation51_spill] sm:$0xff] }
 0x2fe   :  { %v5981_v23 = vsel %vm2646_vm8, %v2630_v50, %v2666_v42  ;;  %vm1741_vm9 = vcmp.ge.f32.partialorder %v1677_v0, 0.0  ;;  %v1809_v4 = vmul.f32 %v5947_v49, %v1677_v0  ;;  %v2385_v51 = vmul.f32 %v5723_v33, %v2356_v61  ;;  %v7476_v61 = vld [vmem:[#allocation58_spill] sm:$0xff]  ;;  %v7477_v42 = vld [vmem:[#allocation92_spill] sm:$0xff] }
 0x2ff   :  { %2709 = vperm.xlu0 %3645, %v5981_v23   ;;  %vm1745_vm10 = vcmp.ge.f32.partialorder %v1681_v16, 0.0  ;;  %v1813_v41 = vmul.f32 %v5947_v49, %v1681_v16  ;;  %vm1731_vm11 = vcmp.ge.f32.partialorder %v1667_v44, 0.0  ;;  %v1799_v60 = vmul.f32 %v5947_v49, %v1667_v44 }
 0x300   :  { %v1873_v54 = vsel %vm1741_vm9, %v1677_v0, %v1809_v4  ;;  %v2434_v14 = vmul.f32 %v5726_v3, %v2405_v21  ;;  %v2483_v30 = vmul.f32 %v5795_v63, %v2454_v2  ;;  %v2499_v39 = vadd.f32 %v2141_v35, %v5941_v62  ;;  %v7478_v2 = vld [vmem:[#allocation74_spill] sm:$0xff] }
 0x301   :  { %2026 = vst.msk [vmem:[#allocation2 + $0x1e9] sm:$0xff] %vm1902_vm0, %v1873_v54  ;;  %v1877_v47 = vsel %vm1745_vm10, %v1681_v16, %v1813_v41  ;;  %v1863_v32 = vsel %vm1731_vm11, %v1667_v44, %v1799_v60  ;;  %v2515_v36 = vadd.f32 %v2238_v46, %v2190_v9  ;;  %v2531_v15 = vadd.f32 %v2336_v18, %v2287_v10  ;;  %v1291_v35 = vpop.permute.xlu2 %1290  ;;  %v7479_v41 = vld [vmem:[#allocation15_spill] sm:$0xff] }
 0x302   :  { %2030 = vst.msk [vmem:[#allocation2 + $0x219] sm:$0xff] %vm1902_vm0, %v1877_v47  ;;  %v2547_v13 = vadd.f32 %v2434_v14, %v2385_v51  ;;  %v1420_v43 = vmul.f32 %v5171_v48, %v1279_v34  ;;  %v461_v11 = vmul.f32 %v4692_v59, %v311_v20  ;;  %v1410_v50 = vmul.f32 %v5171_v48, %v1239_v12  ;;  %v326_v46 = vpop.permute.xlu0 %325  ;;  %v2260_v12 = vld [vmem:[#allocation2 + $0xd9] ss:$2 sm:$0xff]  ;;  %v2309_v54 = vld [vmem:[#allocation2 + $0xda] ss:$2 sm:$0xff] }
 0x303   :  { %2016 = vst.msk [vmem:[#allocation2 + $0x141] sm:$0xff] %vm1902_vm0, %v1863_v32  ;;  %v2563_v62 = vadd.f32 %v2515_v36, %v2499_v39  ;;  %v5998_v17 = vmul.f32 %v5655_v27, %v2065_v24  ;;  %v6001_v8 = vmul.f32 %v5658_v22, %v2114_v28  ;;  %v6004_v56 = vmul.f32 %v5661_v45, %v2163_v25  ;;  %v1251_v20 = vpop.permute.xlu1 %1250  ;;  %v7480_v14 = vld [vmem:[#allocation54_spill] sm:$0xff]  ;;  %v7482_v25 = vld [vmem:[#allocation85_spill] sm:$0xff] }
 0x304   :  { %v2579_v53 = vadd.f32 %v2547_v13, %v2531_v15  ;;  %v1548_v9 = vadd.f32 %v1420_v43, %v7475_v55  ;;  %v1488_v34 = vadd.f32 %v7476_v61, %v461_v11  ;;  %v1538_v0 = vadd.f32 %v1410_v50, %v7477_v42  ;;  %v7481_v24 = vld [vmem:[#allocation62_spill] sm:$0xff]  ;;  %v7483_v11 = vld [vmem:[#allocation67_spill] sm:$0xff] }
 0x305   :  { %v1423_v16 = vmul.f32 %v5171_v48, %v1291_v35  ;;  %v464_v44 = vmul.f32 %v4692_v59, %v326_v46  ;;  %v1413_v10 = vmul.f32 %v5171_v48, %v1251_v20  ;;  %v2239_v18 = vmul.f32 %v5664_v57, %v2211_v38  ;;  %v7484_v38 = vld [vmem:[#allocation26_spill] sm:$0xff]  ;;  %v2358_v46 = vld [vmem:[#allocation2 + $0xf0] ss:$2 sm:$0xff]  ;;  %v2407_v20 = vld [vmem:[#allocation2 + $0xf1] ss:$2 sm:$0xff] }
 0x306   :  { %v2595_v21 = vadd.f32 %v2579_v53, %v2563_v62  ;;  %v1612_v4 = vadd.f32 %v1548_v9, %v7478_v2  ;;  %v1616_v51 = vadd.f32 %v5600_v31, %v1488_v34  ;;  %v1602_v60 = vadd.f32 %v1538_v0, %v7479_v41  ;;  %v2456_v2 = vld [vmem:[#allocation2 + $0xf2] ss:$2 sm:$0xff] }
 0x307   :  { %v1551_v39 = vadd.f32 %v1423_v16, %v7480_v14  ;;  %v1491_v28 = vadd.f32 %v7481_v24, %v464_v44  ;;  %v1541_v47 = vadd.f32 %v1413_v10, %v7482_v25  ;;  %v2288_v32 = vmul.f32 %v5680_v5, %v2260_v12  ;;  %v2067_v25 = vld [vmem:[#allocation2 + $0xf0] ss:$2 sm:$0xff] }
 0x308   :  { %v2611_v36 = vadd.f32 %v2595_v21, %v2483_v30  ;;  %v1680_v15 = vadd.f32 %v5934_v37, %v1612_v4  ;;  %v1684_v13 = vadd.f32 %v5934_v37, %v1616_v51  ;;  %v1670_v43 = vadd.f32 %v5934_v37, %v1602_v60 }
 0x309   :  { %v1615_v31 = vadd.f32 %v1551_v39, %v7483_v11  ;;  %v1619_v50 = vadd.f32 %v5636_v6, %v1491_v28  ;;  %v1605_v62 = vadd.f32 %v1541_v47, %v7484_v38  ;;  %v2337_v35 = vmul.f32 %v5683_v26, %v2309_v54  ;;  %v1303_v34 = vpop.permute.xlu2 %1302  ;;  %v2116_v47 = vld [vmem:[#allocation2 + $0xf1] ss:$2 sm:$0xff]  ;;  %v2165_v11 = vld [vmem:[#allocation2 + $0xf2] ss:$2 sm:$0xff] }
 0x30a   :  { %v2631_v53 = vadd.f32 %v5857_v19, %v2611_v36  ;;  %vm1744_vm12 = vcmp.ge.f32.partialorder %v1680_v15, 0.0  ;;  %v1812_v55 = vmul.f32 %v5947_v49, %v1680_v15  ;;  %vm1748_vm13 = vcmp.ge.f32.partialorder %v1684_v13, 0.0  ;;  %v341_v12 = vpop.permute.xlu0 %340 }
 0x30b   :  { %v1816_v30 = vmul.f32 %v5947_v49, %v1684_v13  ;;  %vm1734_vm14 = vcmp.ge.f32.partialorder %v1670_v43, 0.0  ;;  %v1802_v9 = vmul.f32 %v5947_v49, %v1670_v43  ;;  %v1683_v61 = vadd.f32 %v5934_v37, %v1615_v31  ;;  %v1263_v16 = vpop.permute.xlu1 %1262 }
 0x30c   :  { %vm2647_vm15 = vcmp.ge.f32.partialorder %v2631_v53, 0.0  ;;  %v2667_v6 = vmul.f32 %v5880_v7, %v2631_v53  ;;  %v1876_v42 = vsel %vm1744_vm12, %v1680_v15, %v1812_v55  ;;  %v1687_v0 = vadd.f32 %v5934_v37, %v1619_v50  ;;  %v2262_v55 = vld [vmem:[#allocation2 + $0x109] ss:$2 sm:$0xff] }
 0x30d   :  { %2029 = vst.msk [vmem:[#allocation2 + $0x211] sm:$0xff] %vm1902_vm0, %v1876_v42  ;;  %v1880_v44 = vsel %vm1748_vm13, %v1684_v13, %v1816_v30  ;;  %v1866_v10 = vsel %vm1734_vm14, %v1670_v43, %v1802_v9  ;;  %vm1747_vm2 = vcmp.ge.f32.partialorder %v1683_v61, 0.0  ;;  %v1815_v21 = vmul.f32 %v5947_v49, %v1683_v61  ;;  %v2311_v30 = vld [vmem:[#allocation2 + $0x10a] ss:$2 sm:$0xff]  ;;  %v7487_v42 = vld [vmem:[#allocation86_spill] sm:$0xff] }
 0x30e   :  { %v6036_v4 = vsel %vm2647_vm15, %v2631_v53, %v2667_v6  ;;  %2033 = vst.msk [vmem:[#allocation2 + $0x241] sm:$0xff] %vm1902_vm0, %v1880_v44  ;;  %vm1751_vm3 = vcmp.ge.f32.partialorder %v1687_v0, 0.0  ;;  %v1819_v51 = vmul.f32 %v5947_v49, %v1687_v0  ;;  %v1673_v41 = vadd.f32 %v5934_v37, %v1605_v62  ;;  %v2213_v53 = vld [vmem:[#allocation2 + $0x108] ss:$2 sm:$0xff] }
 0x30f   :  { %2714 = vperm.xlu1 %3646, %v6036_v4   ;;  %2019 = vst.msk [vmem:[#allocation2 + $0x169] sm:$0xff] %vm1902_vm0, %v1866_v10  ;;  %v1879_v60 = vsel %vm1747_vm2, %v1683_v61, %v1815_v21  ;;  %v2386_v54 = vmul.f32 %v5723_v33, %v2358_v46  ;;  %v2435_v14 = vmul.f32 %v5726_v3, %v2407_v20  ;;  %v2409_v20 = vld [vmem:[#allocation2 + $0x121] ss:$2 sm:$0xff] }
 0x310   :  { %2032 = vst.msk [vmem:[#allocation2 + $0x231] sm:$0xff] %vm1902_vm0, %v1879_v60  ;;  %v1883_v39 = vsel %vm1751_vm3, %v1687_v0, %v1819_v51  ;;  %vm1737_vm4 = vcmp.ge.f32.partialorder %v1673_v41, 0.0  ;;  %v1805_v24 = vmul.f32 %v5947_v49, %v1673_v41  ;;  %v2484_v28 = vmul.f32 %v5795_v63, %v2456_v2 }
 0x311   :  { %2036 = vst.msk [vmem:[#allocation2 + $0x261] sm:$0xff] %vm1902_vm0, %v1883_v39  ;;  %v2500_v36 = vadd.f32 %v6001_v8, %v5998_v17  ;;  %v2516_v15 = vadd.f32 %v2239_v18, %v6004_v56  ;;  %v2532_v13 = vadd.f32 %v2337_v35, %v2288_v32  ;;  %v2548_v43 = vadd.f32 %v2435_v14, %v2386_v54  ;;  %v2360_v56 = vld [vmem:[#allocation2 + $0x120] ss:$2 sm:$0xff] }
 0x312   :  { %v1869_v31 = vsel %vm1737_vm4, %v1673_v41, %v1805_v24  ;;  %v1426_v50 = vmul.f32 %v5171_v48, %v1303_v34  ;;  %v467_v38 = vmul.f32 %v4692_v59, %v341_v12  ;;  %v1416_v62 = vmul.f32 %v5171_v48, %v1263_v16  ;;  %v7485_v32 = vld [vmem:[#allocation59_spill] sm:$0xff]  ;;  %v356_v16 = vpop.permute.xlu0 %355  ;;  %v7488_v41 = vld [vmem:[#allocation69_spill] sm:$0xff]  ;;  %v7489_v14 = vld [vmem:[#allocation18_spill] sm:$0xff] }
 0x313   :  { %2022 = vst.msk [vmem:[#allocation2 + $0x189] sm:$0xff] %vm1902_vm0, %v1869_v31  ;;  %v2564_v9 = vadd.f32 %v2516_v15, %v2500_v36  ;;  %v2580_v61 = vadd.f32 %v2548_v43, %v2532_v13  ;;  %v2094_v17 = vmul.f32 %v5655_v27, %v2067_v25  ;;  %v2143_v8 = vmul.f32 %v5658_v22, %v2116_v47  ;;  %v1315_v18 = vpop.permute.xlu2 %1314  ;;  %v7486_v34 = vld [vmem:[#allocation71_spill] sm:$0xff]  ;;  %v1275_v44 = vpop.permute.xlu1 %1274 }
 0x314   :  { %v1554_v35 = vadd.f32 %v1426_v50, %v7485_v32  ;;  %v1494_v6 = vadd.f32 %v7486_v34, %v467_v38  ;;  %v1544_v0 = vadd.f32 %v1416_v62, %v7487_v42  ;;  %v2192_v46 = vmul.f32 %v5661_v45, %v2165_v11  ;;  %v2458_v12 = vld [vmem:[#allocation2 + $0x122] ss:$2 sm:$0xff] }
 0x315   :  { %v2596_v10 = vadd.f32 %v2580_v61, %v2564_v9  ;;  %v2240_v21 = vmul.f32 %v5664_v57, %v2213_v53  ;;  %v2289_v2 = vmul.f32 %v5680_v5, %v2262_v55  ;;  %v2338_v51 = vmul.f32 %v5683_v26, %v2311_v30  ;;  %v2069_v9 = vld [vmem:[#allocation2 + $0x120] ss:$2 sm:$0xff] }
 0x316   :  { %v1618_v60 = vadd.f32 %v1554_v35, %v7488_v41  ;;  %v1622_v54 = vadd.f32 %v5644_v29, %v1494_v6  ;;  %v1608_v39 = vadd.f32 %v1544_v0, %v7489_v14  ;;  %v2387_v24 = vmul.f32 %v5723_v33, %v2360_v56  ;;  %v2167_v35 = vld [vmem:[#allocation2 + $0x122] ss:$2 sm:$0xff] }
 0x317   :  { %v2612_v25 = vadd.f32 %v2596_v10, %v2484_v28  ;;  %v2436_v47 = vmul.f32 %v5726_v3, %v2409_v20  ;;  %v2485_v36 = vmul.f32 %v5795_v63, %v2458_v12  ;;  %v2501_v15 = vadd.f32 %v2143_v8, %v2094_v17  ;;  %v2215_v10 = vld [vmem:[#allocation2 + $0x138] ss:$2 sm:$0xff]  ;;  %v7491_v14 = vld [vmem:[#allocation72_spill] sm:$0xff] }
 0x318   :  { %v1686_v13 = vadd.f32 %v5934_v37, %v1618_v60  ;;  %v1690_v43 = vadd.f32 %v5934_v37, %v1622_v54  ;;  %v1676_v11 = vadd.f32 %v5934_v37, %v1608_v39  ;;  %v2517_v31 = vadd.f32 %v2240_v21, %v2192_v46  ;;  %v7490_v46 = vld [vmem:[#allocation64_spill] sm:$0xff]  ;;  %v2264_v21 = vld [vmem:[#allocation2 + $0x139] ss:$2 sm:$0xff]  ;;  %v2313_v60 = vld [vmem:[#allocation2 + $0x13a] ss:$2 sm:$0xff] }
 0x319   :  { %v2632_v50 = vadd.f32 %v5857_v19, %v2612_v25  ;;  %v2533_v29 = vadd.f32 %v2338_v51, %v2289_v2  ;;  %v2549_v38 = vadd.f32 %v2436_v47, %v2387_v24  ;;  %v1429_v62 = vmul.f32 %v5171_v48, %v1315_v18  ;;  %v2118_v18 = vld [vmem:[#allocation2 + $0x121] ss:$2 sm:$0xff]  ;;  %v2362_v54 = vld [vmem:[#allocation2 + $0x150] ss:$2 sm:$0xff] }
 0x31a   :  { %vm1750_vm1 = vcmp.ge.f32.partialorder %v1686_v13, 0.0  ;;  %v1818_v28 = vmul.f32 %v5947_v49, %v1686_v13  ;;  %vm1754_vm5 = vcmp.ge.f32.partialorder %v1690_v43, 0.0  ;;  %v1822_v53 = vmul.f32 %v5947_v49, %v1690_v43  ;;  %v371_v34 = vpop.permute.xlu0 %370  ;;  %v7492_v24 = vld [vmem:[#allocation78_spill] sm:$0xff] }
 0x31b   :  { %vm2648_vm6 = vcmp.ge.f32.partialorder %v2632_v50, 0.0  ;;  %v2668_v55 = vmul.f32 %v5880_v7, %v2632_v50  ;;  %vm1740_vm7 = vcmp.ge.f32.partialorder %v1676_v11, 0.0  ;;  %v1808_v30 = vmul.f32 %v5947_v49, %v1676_v11  ;;  %v6080_v61 = vpop.permute.xlu2 %1326  ;;  %v6082_v6 = vpop.permute.xlu1 %1286 }
 0x31c   :  { %v1882_v17 = vsel %vm1750_vm1, %v1686_v13, %v1818_v28  ;;  %v1886_v8 = vsel %vm1754_vm5, %v1690_v43, %v1822_v53  ;;  %v2565_v56 = vadd.f32 %v2517_v31, %v2501_v15  ;;  %v2581_v32 = vadd.f32 %v2549_v38, %v2533_v29  ;;  %v2411_v15 = vld [vmem:[#allocation2 + $0x151] ss:$2 sm:$0xff]  ;;  %v2460_v13 = vld [vmem:[#allocation2 + $0x152] ss:$2 sm:$0xff] }
 0x31d   :  { %v6084_v42 = vsel %vm2648_vm6, %v2632_v50, %v2668_v55  ;;  %2035 = vst.msk [vmem:[#allocation2 + $0x259] sm:$0xff] %vm1902_vm0, %v1882_v17  ;;  %v1872_v0 = vsel %vm1740_vm7, %v1676_v11, %v1808_v30  ;;  %v1557_v20 = vadd.f32 %v1429_v62, %v7490_v46  ;;  %v470_v12 = vmul.f32 %v4692_v59, %v356_v16  ;;  %v7493_v11 = vld [vmem:[#allocation95_spill] sm:$0xff] }
 0x31e   :  { %2719 = vperm.xlu2 %3647, %v6084_v42   ;;  %2039 = vst.msk [vmem:[#allocation2 + $0x289] sm:$0xff] %vm1902_vm0, %v1886_v8  ;;  %v2597_v2 = vadd.f32 %v2581_v32, %v2565_v56  ;;  %v1419_v51 = vmul.f32 %v5171_v48, %v1275_v44  ;;  %v2095_v41 = vmul.f32 %v5655_v27, %v2069_v9  ;;  %v7494_v55 = vld [vmem:[#allocation19_spill] sm:$0xff] }
 0x31f   :  { %2025 = vst.msk [vmem:[#allocation2 + $0x1e1] sm:$0xff] %vm1902_vm0, %v1872_v0  ;;  %v1621_v39 = vadd.f32 %v1557_v20, %v7491_v14  ;;  %v1497_v25 = vadd.f32 %v7492_v24, %v470_v12  ;;  %v2144_v16 = vmul.f32 %v5658_v22, %v2118_v18  ;;  %v2193_v47 = vmul.f32 %v5661_v45, %v2167_v35  ;;  %v2071_v14 = vld [vmem:[#allocation2 + $0x150] ss:$2 sm:$0xff] }
 0x320   :  { %v2613_v43 = vadd.f32 %v2597_v2, %v2485_v36  ;;  %v1547_v31 = vadd.f32 %v1419_v51, %v7493_v11  ;;  %v2241_v44 = vmul.f32 %v5664_v57, %v2215_v10  ;;  %v2290_v50 = vmul.f32 %v5680_v5, %v2264_v21  ;;  %v2120_v11 = vld [vmem:[#allocation2 + $0x151] ss:$2 sm:$0xff] }
 0x321   :  { %v1689_v29 = vadd.f32 %v5934_v37, %v1621_v39  ;;  %v1625_v38 = vadd.f32 %v5700_v1, %v1497_v25  ;;  %v2339_v62 = vmul.f32 %v5683_v26, %v2313_v60  ;;  %v2388_v28 = vmul.f32 %v5723_v33, %v2362_v54 }
 0x322   :  { %v2633_v53 = vadd.f32 %v5857_v19, %v2613_v43  ;;  %v1611_v30 = vadd.f32 %v1547_v31, %v7494_v55  ;;  %v2437_v36 = vmul.f32 %v5726_v3, %v2411_v15  ;;  %v2486_v9 = vmul.f32 %v5795_v63, %v2460_v13  ;;  %v386_v2 = vpop.permute.xlu0 %385  ;;  %v7496_v13 = vld [vmem:[#allocation81_spill] sm:$0xff]  ;;  %v7500_v55 = vld [vmem:[#allocation70_spill] sm:$0xff] }
 0x323   :  { %vm1753_vm8 = vcmp.ge.f32.partialorder %v1689_v29, 0.0  ;;  %v1821_v17 = vmul.f32 %v5947_v49, %v1689_v29  ;;  %v1693_v8 = vadd.f32 %v5934_v37, %v1625_v38  ;;  %v2502_v56 = vadd.f32 %v2144_v16, %v2095_v41  ;;  %v1339_v20 = vpop.permute.xlu2 %1338  ;;  %v1299_v12 = vpop.permute.xlu1 %1298 }
 0x324   :  { %vm2649_vm9 = vcmp.ge.f32.partialorder %v2633_v53, 0.0  ;;  %v2669_v1 = vmul.f32 %v5880_v7, %v2633_v53  ;;  %v1679_v32 = vadd.f32 %v5934_v37, %v1611_v30  ;;  %v2518_v18 = vadd.f32 %v2241_v44, %v2193_v47  ;;  %v7495_v47 = vld [vmem:[#allocation65_spill] sm:$0xff]  ;;  %v7497_v44 = vld [vmem:[#allocation88_spill] sm:$0xff] }
 0x325   :  { %v1885_v35 = vsel %vm1753_vm8, %v1689_v29, %v1821_v17  ;;  %vm1757_vm10 = vcmp.ge.f32.partialorder %v1693_v8, 0.0  ;;  %v1825_v0 = vmul.f32 %v5947_v49, %v1693_v8  ;;  %v2534_v46 = vadd.f32 %v2339_v62, %v2290_v50  ;;  %v7498_v29 = vld [vmem:[#allocation66_spill] sm:$0xff]  ;;  %v7499_v62 = vld [vmem:[#allocation76_spill] sm:$0xff] }
 0x326   :  { %v6114_v63 = vsel %vm2649_vm9, %v2633_v53, %v2669_v1  ;;  %2038 = vst.msk [vmem:[#allocation2 + $0x279] sm:$0xff] %vm1902_vm0, %v1885_v35  ;;  %vm1743_vm11 = vcmp.ge.f32.partialorder %v1679_v32, 0.0  ;;  %v1811_v10 = vmul.f32 %v5947_v49, %v1679_v32  ;;  %v2550_v21 = vadd.f32 %v2437_v36, %v2388_v28  ;;  %v7501_v36 = vld [vmem:[#allocation89_spill] sm:$0xff] }
 0x327   :  { %2724 = vperm.xlu1 %3646, %v6114_v63   ;;  %v1889_v51 = vsel %vm1757_vm10, %v1693_v8, %v1825_v0  ;;  %v2566_v41 = vadd.f32 %v2518_v18, %v2502_v56  ;;  %v1432_v60 = vmul.f32 %v5171_v48, %v6080_v61  ;;  %v473_v54 = vmul.f32 %v4692_v59, %v371_v34  ;;  %v2169_v8 = vld [vmem:[#allocation2 + $0x152] ss:$2 sm:$0xff]  ;;  %v7503_v18 = vld [vmem:[#allocation79_spill] sm:$0xff] }
 0x328   :  { %2042 = vst.msk [vmem:[#allocation2 + $0x2a9] sm:$0xff] %vm1902_vm0, %v1889_v51  ;;  %v1875_v39 = vsel %vm1743_vm11, %v1679_v32, %v1811_v10  ;;  %v2582_v24 = vadd.f32 %v2550_v21, %v2534_v46  ;;  %v1422_v25 = vmul.f32 %v5171_v48, %v6082_v6  ;;  %v1435_v16 = vmul.f32 %v5171_v48, %v1339_v20  ;;  %v7502_v1 = vld [vmem:[#allocation29_spill] sm:$0xff] }
 0x329   :  { %2028 = vst.msk [vmem:[#allocation2 + $0x201] sm:$0xff] %vm1902_vm0, %v1875_v39  ;;  %v1560_v15 = vadd.f32 %v1432_v60, %v7495_v47  ;;  %v1500_v43 = vadd.f32 %v7496_v13, %v473_v54  ;;  %v476_v61 = vmul.f32 %v4692_v59, %v386_v2  ;;  %v1425_v34 = vmul.f32 %v5171_v48, %v1299_v12  ;;  %v7504_v12 = vld [vmem:[#allocation104_spill] sm:$0xff]  ;;  %v7505_v21 = vld [vmem:[#allocation25_spill] sm:$0xff] }
 0x32a   :  { %v2598_v31 = vadd.f32 %v2582_v24, %v2566_v41  ;;  %v1550_v50 = vadd.f32 %v1422_v25, %v7497_v44  ;;  %v1563_v38 = vadd.f32 %v1435_v16, %v7498_v29  ;;  %v6134_v6 = vmul.f32 %v5655_v27, %v2071_v14  ;;  %v2217_v25 = vld [vmem:[#allocation2 + $0x168] ss:$2 sm:$0xff]  ;;  %v2266_v16 = vld [vmem:[#allocation2 + $0x169] ss:$2 sm:$0xff] }
 0x32b   :  { %v1624_v28 = vadd.f32 %v1560_v15, %v7499_v62  ;;  %v1628_v53 = vadd.f32 %v5703_v52, %v1500_v43  ;;  %v1503_v30 = vadd.f32 %v7500_v55, %v476_v61  ;;  %v1553_v17 = vadd.f32 %v1425_v34, %v7501_v36  ;;  %v6147_v2 = vpop.permute.xlu1 %1310  ;;  %v2315_v43 = vld [vmem:[#allocation2 + $0x16a] ss:$2 sm:$0xff]  ;;  %v1351_v34 = vpop.permute.xlu2 %1350  ;;  %v2413_v29 = vld [vmem:[#allocation2 + $0x181] ss:$2 sm:$0xff] }
 0x32c   :  { %v2614_v56 = vadd.f32 %v2598_v31, %v2486_v9  ;;  %v1614_v32 = vadd.f32 %v1550_v50, %v7502_v1  ;;  %v1627_v35 = vadd.f32 %v1563_v38, %v7503_v18  ;;  %v2145_v0 = vmul.f32 %v5658_v22, %v2120_v11  ;;  %v2364_v61 = vld [vmem:[#allocation2 + $0x180] ss:$2 sm:$0xff]  ;;  %v2073_v18 = vld [vmem:[#allocation2 + $0x1b0] ss:$2 sm:$0xff] }
 0x32d   :  { %v1692_v46 = vadd.f32 %v5934_v37, %v1624_v28  ;;  %v1696_v20 = vadd.f32 %v5934_v37, %v1628_v53  ;;  %v1631_v10 = vadd.f32 %v7504_v12, %v1503_v30  ;;  %v1617_v52 = vadd.f32 %v1553_v17, %v7505_v21  ;;  %v2462_v38 = vld [vmem:[#allocation2 + $0x182] ss:$2 sm:$0xff]  ;;  %v401_v36 = vpop.permute.xlu0 %400  ;;  %v2171_v21 = vld [vmem:[#allocation2 + $0x1b2] ss:$2 sm:$0xff] }
 0x32e   :  { %v2634_v51 = vadd.f32 %v5857_v19, %v2614_v56  ;;  %v1682_v9 = vadd.f32 %v5934_v37, %v1614_v32  ;;  %v1695_v41 = vadd.f32 %v5934_v37, %v1627_v35  ;;  %v2194_v60 = vmul.f32 %v5661_v45, %v2169_v8  ;;  %v6177_v1 = vld [vmem:[%s7007_s4 + $0x8] ss:$0 sm:$0xff]  ;;  %v2122_v35 = vld [vmem:[#allocation2 + $0x1b1] ss:$2 sm:$0xff] }
 0x32f   :  { %vm1756_vm12 = vcmp.ge.f32.partialorder %v1692_v46, 0.0  ;;  %v1824_v54 = vmul.f32 %v5947_v49, %v1692_v46  ;;  %vm1760_vm13 = vcmp.ge.f32.partialorder %v1696_v20, 0.0  ;;  %v1828_v14 = vmul.f32 %v5947_v49, %v1696_v20 }
 0x330   :  { %vm2650_vm14 = vcmp.ge.f32.partialorder %v2634_v51, 0.0  ;;  %v2670_v39 = vmul.f32 %v5880_v7, %v2634_v51  ;;  %vm1746_vm15 = vcmp.ge.f32.partialorder %v1682_v9, 0.0  ;;  %v1814_v24 = vmul.f32 %v5947_v49, %v1682_v9 }
 0x331   :  { %v1888_v47 = vsel %vm1756_vm12, %v1692_v46, %v1824_v54  ;;  %v1892_v15 = vsel %vm1760_vm13, %v1696_v20, %v1828_v14  ;;  %vm1759_vm2 = vcmp.ge.f32.partialorder %v1695_v41, 0.0  ;;  %v1827_v13 = vmul.f32 %v5947_v49, %v1695_v41 }
 0x332   :  { %v6158_v11 = vsel %vm2650_vm14, %v2634_v51, %v2670_v39  ;;  %2041 = vst.msk [vmem:[#allocation2 + $0x2a1] sm:$0xff] %vm1902_vm0, %v1888_v47  ;;  %v1878_v31 = vsel %vm1746_vm15, %v1682_v9, %v1814_v24  ;;  %v1699_v44 = vadd.f32 %v5934_v37, %v1631_v10  ;;  %v1685_v50 = vadd.f32 %v5934_v37, %v1617_v52  ;;  %v2219_v52 = vld [vmem:[#allocation2 + $0x1c8] ss:$2 sm:$0xff]  ;;  %v2268_v39 = vld [vmem:[#allocation2 + $0x1c9] ss:$2 sm:$0xff] }
 0x333   :  { %2729 = vperm.xlu2 %3647, %v6158_v11   ;;  %2045 = vst.msk [vmem:[#allocation2 + $0x2d1] sm:$0xff] %vm1902_vm0, %v1892_v15  ;;  %v1891_v62 = vsel %vm1759_vm2, %v1695_v41, %v1827_v13  ;;  %v2242_v28 = vmul.f32 %v5664_v57, %v2217_v25  ;;  %v2291_v53 = vmul.f32 %v5680_v5, %v2266_v16  ;;  %v2317_v24 = vld [vmem:[#allocation2 + $0x1ca] ss:$2 sm:$0xff] }
 0x334   :  { %2031 = vst.msk [vmem:[#allocation2 + $0x229] sm:$0xff] %vm1902_vm0, %v1878_v31  ;;  %vm1763_vm3 = vcmp.ge.f32.partialorder %v1699_v44, 0.0  ;;  %v1831_v55 = vmul.f32 %v5947_v49, %v1699_v44  ;;  %vm1749_vm4 = vcmp.ge.f32.partialorder %v1685_v50, 0.0  ;;  %v1817_v30 = vmul.f32 %v5947_v49, %v1685_v50  ;;  %v6181_v51 = vpop.permute.xlu1 %1322  ;;  %v2366_v16 = vld [vmem:[#allocation2 + $0x1e0] ss:$2 sm:$0xff]  ;;  %v7506_v15 = vld [vmem:[#allocation68_spill] sm:$0xff] }
 0x335   :  { %2044 = vst.msk [vmem:[#allocation2 + $0x2c1] sm:$0xff] %vm1902_vm0, %v1891_v62  ;;  %v2340_v17 = vmul.f32 %v5683_v26, %v2315_v43  ;;  %v2389_v8 = vmul.f32 %v5723_v33, %v2364_v61  ;;  %v2438_v56 = vmul.f32 %v5726_v3, %v2413_v29  ;;  %v2487_v32 = vmul.f32 %v6177_v1, %v2462_v38  ;;  %v7507_v43 = vld [vmem:[#allocation73_spill] sm:$0xff]  ;;  %v2415_v31 = vld [vmem:[#allocation2 + $0x1e1] ss:$2 sm:$0xff] }
 0x336   :  { %v1895_v46 = vsel %vm1763_vm3, %v1699_v44, %v1831_v55  ;;  %v1881_v20 = vsel %vm1749_vm4, %v1685_v50, %v1817_v30  ;;  %v2503_v12 = vadd.f32 %v2145_v0, %v6134_v6  ;;  %v2519_v10 = vadd.f32 %v2242_v28, %v2194_v60  ;;  %v7508_v44 = vld [vmem:[#allocation98_spill] sm:$0xff]  ;;  %v7509_v28 = vld [vmem:[#allocation80_spill] sm:$0xff] }
 0x337   :  { %2048 = vst.msk [vmem:[#allocation2 + $0x2f1] sm:$0xff] %vm1902_vm0, %v1895_v46  ;;  %v2535_v9 = vadd.f32 %v2340_v17, %v2291_v53  ;;  %v2551_v41 = vadd.f32 %v2438_v56, %v2389_v8  ;;  %v1438_v54 = vmul.f32 %v5171_v48, %v1351_v34  ;;  %v479_v14 = vmul.f32 %v4692_v59, %v401_v36  ;;  %v7510_v55 = vld [vmem:[#allocation94_spill] sm:$0xff]  ;;  %v1363_v17 = vpop.permute.xlu2 %1362  ;;  %v7511_v8 = vld [vmem:[#allocation96_spill] sm:$0xff]  ;;  %v7512_v56 = vld [vmem:[#allocation93_spill] sm:$0xff] }
 0x338   :  { %2034 = vst.msk [vmem:[#allocation2 + $0x249] sm:$0xff] %vm1902_vm0, %v1881_v20  ;;  %v2567_v25 = vadd.f32 %v2519_v10, %v2503_v12  ;;  %v1428_v6 = vmul.f32 %v5171_v48, %v6147_v2  ;;  %v2097_v0 = vmul.f32 %v5655_v27, %v2073_v18  ;;  %v2146_v60 = vmul.f32 %v5658_v22, %v2122_v35  ;;  %v7513_v35 = vld [vmem:[#allocation35_spill] sm:$0xff] }
 0x339   :  { %v2583_v47 = vadd.f32 %v2551_v41, %v2535_v9  ;;  %v1566_v13 = vadd.f32 %v1438_v54, %v7506_v15  ;;  %v1506_v61 = vadd.f32 %v7507_v43, %v479_v14  ;;  %v2195_v34 = vmul.f32 %v5661_v45, %v2171_v21 }
 0x33a   :  { %v1556_v50 = vadd.f32 %v1428_v6, %v7508_v44  ;;  %v2243_v29 = vmul.f32 %v5664_v57, %v2219_v52  ;;  %v2292_v38 = vmul.f32 %v5680_v5, %v2268_v39  ;;  %v2341_v2 = vmul.f32 %v5683_v26, %v2317_v24  ;;  %v416_v6 = vpop.permute.xlu0 %415 }
 0x33b   :  { %v2599_v62 = vadd.f32 %v2583_v47, %v2567_v25  ;;  %v1630_v53 = vadd.f32 %v1566_v13, %v7509_v28  ;;  %v1634_v30 = vadd.f32 %v7510_v55, %v1506_v61  ;;  %v2390_v36 = vmul.f32 %v5723_v33, %v2366_v16  ;;  %v2270_v55 = vld [vmem:[#allocation2 + $0x1f9] ss:$2 sm:$0xff] }
 0x33c   :  { %v1573_v18 = vadd.f32 %v7512_v56, %v7511_v8  ;;  %v1620_v46 = vadd.f32 %v1556_v50, %v7513_v35  ;;  %v2439_v20 = vmul.f32 %v5726_v3, %v2415_v31  ;;  %v2504_v12 = vadd.f32 %v2146_v60, %v2097_v0  ;;  %v2464_v60 = vld [vmem:[#allocation2 + $0x1e2] ss:$2 sm:$0xff]  ;;  %v6213_v47 = vpop.permute.xlu1 %1334 }
 0x33d   :  { %v2615_v10 = vadd.f32 %v2599_v62, %v2487_v32  ;;  %v1698_v21 = vadd.f32 %v5934_v37, %v1630_v53  ;;  %v1702_v52 = vadd.f32 %v5934_v37, %v1634_v30  ;;  %v2520_v9 = vadd.f32 %v2243_v29, %v2195_v34  ;;  %v7514_v31 = vld [vmem:[#allocation84_spill] sm:$0xff]  ;;  %v2124_v29 = vld [vmem:[#allocation2 + $0x1e1] ss:$2 sm:$0xff]  ;;  %v2221_v53 = vld [vmem:[#allocation2 + $0x1f8] ss:$2 sm:$0xff] }
 0x33e   :  { %v1688_v41 = vadd.f32 %v5934_v37, %v1620_v46  ;;  %v2536_v54 = vadd.f32 %v2341_v2, %v2292_v38  ;;  %v2552_v14 = vadd.f32 %v2439_v20, %v2390_v36  ;;  %v1441_v39 = vmul.f32 %v5171_v48, %v1363_v17  ;;  %v2173_v38 = vld [vmem:[#allocation2 + $0x1e2] ss:$2 sm:$0xff]  ;;  %v7516_v17 = vld [vmem:[#allocation77_spill] sm:$0xff] }
 0x33f   :  { %v2635_v24 = vadd.f32 %v5857_v19, %v2615_v10  ;;  %vm1762_vm1 = vcmp.ge.f32.partialorder %v1698_v21, 0.0  ;;  %v1830_v25 = vmul.f32 %v5947_v49, %v1698_v21  ;;  %vm1766_vm5 = vcmp.ge.f32.partialorder %v1702_v52, 0.0  ;;  %v2075_v19 = vld [vmem:[#allocation2 + $0x1e0] ss:$2 sm:$0xff]  ;;  %v2368_v46 = vld [vmem:[#allocation2 + $0x210] ss:$2 sm:$0xff] }
 0x340   :  { %v1834_v32 = vmul.f32 %v5947_v49, %v1702_v52  ;;  %vm1752_vm6 = vcmp.ge.f32.partialorder %v1688_v41, 0.0  ;;  %v1820_v0 = vmul.f32 %v5947_v49, %v1688_v41  ;;  %v2568_v16 = vadd.f32 %v2520_v9, %v2504_v12  ;;  %v7515_v30 = vld [vmem:[#allocation82_spill] sm:$0xff] }
 0x341   :  { %vm2651_vm7 = vcmp.ge.f32.partialorder %v2635_v24, 0.0  ;;  %v2671_v15 = vmul.f32 %v5880_v7, %v2635_v24  ;;  %v1894_v13 = vsel %vm1762_vm1, %v1698_v21, %v1830_v25  ;;  %v2584_v43 = vadd.f32 %v2552_v14, %v2536_v54  ;;  %v2319_v35 = vld [vmem:[#allocation2 + $0x1fa] ss:$2 sm:$0xff]  ;;  %v7518_v25 = vld [vmem:[#allocation24_spill] sm:$0xff] }
 0x342   :  { %2047 = vst.msk [vmem:[#allocation2 + $0x2e9] sm:$0xff] %vm1902_vm0, %v1894_v13  ;;  %v1898_v61 = vsel %vm1766_vm5, %v1702_v52, %v1834_v32  ;;  %v1884_v34 = vsel %vm1752_vm6, %v1688_v41, %v1820_v0  ;;  %v1569_v44 = vadd.f32 %v1441_v39, %v7514_v31  ;;  %v482_v50 = vmul.f32 %v4692_v59, %v416_v6  ;;  %v7517_v12 = vld [vmem:[#allocation90_spill] sm:$0xff]  ;;  %v2417_v52 = vld [vmem:[#allocation2 + $0x211] ss:$2 sm:$0xff] }
 0x343   :  { %v6219_v2 = vsel %vm2651_vm7, %v2635_v24, %v2671_v15  ;;  %2051 = vst.msk [vmem:[#allocation2 + $0x319] sm:$0xff] %vm1902_vm0, %v1898_v61  ;;  %v2488_v62 = vmul.f32 %v6177_v1, %v2464_v60  ;;  %v2600_v7 = vadd.f32 %v2584_v43, %v2568_v16  ;;  %v1431_v28 = vmul.f32 %v5171_v48, %v6181_v51  ;;  %v6239_v39 = vld [vmem:[%s7008_s5] ss:$0 sm:$0xff]  ;;  %v1375_v61 = vpop.permute.xlu2 %1374 }
 0x344   :  { %2734 = vperm.xlu0 %3645, %v6219_v2   ;;  %2037 = vst.msk [vmem:[#allocation2 + $0x271] sm:$0xff] %vm1902_vm0, %v1884_v34  ;;  %v1633_v36 = vadd.f32 %v1569_v44, %v7515_v30  ;;  %v1509_v8 = vadd.f32 %v7516_v17, %v482_v50  ;;  %v2098_v56 = vmul.f32 %v5655_v27, %v2075_v19  ;;  %v6251_v15 = vld [vmem:[%s7009_s6] ss:$0 sm:$0xff] }
 0x345   :  { %v2616_v20 = vadd.f32 %v2600_v7, %v2488_v62  ;;  %v1559_v10 = vadd.f32 %v1431_v28, %v7517_v12  ;;  %v2147_v21 = vmul.f32 %v5658_v22, %v2124_v29  ;;  %v2196_v51 = vmul.f32 %v5661_v45, %v2173_v38  ;;  %v2466_v44 = vld [vmem:[#allocation2 + $0x212] ss:$2 sm:$0xff]  ;;  %v1347_v29 = vpop.permute.xlu1 %1346 }
 0x346   :  { %v1701_v9 = vadd.f32 %v5934_v37, %v1633_v36  ;;  %v1637_v41 = vadd.f32 %v1573_v18, %v1509_v8  ;;  %v2244_v54 = vmul.f32 %v5664_v57, %v2221_v53  ;;  %v2293_v14 = vmul.f32 %v5680_v5, %v2270_v55  ;;  %v2077_v28 = vld [vmem:[#allocation2 + $0x210] ss:$2 sm:$0xff]  ;;  %v2126_v53 = vld [vmem:[#allocation2 + $0x211] ss:$2 sm:$0xff] }
 0x347   :  { %v2636_v24 = vadd.f32 %v6239_v39, %v2616_v20  ;;  %v1623_v6 = vadd.f32 %v1559_v10, %v7518_v25  ;;  %v2342_v32 = vmul.f32 %v5683_v26, %v2319_v35  ;;  %v2391_v0 = vmul.f32 %v5723_v33, %v2368_v46  ;;  %v2175_v17 = vld [vmem:[#allocation2 + $0x212] ss:$2 sm:$0xff]  ;;  %v2272_v20 = vld [vmem:[#allocation2 + $0x229] ss:$2 sm:$0xff] }
 0x348   :  { %vm1765_vm8 = vcmp.ge.f32.partialorder %v1701_v9, 0.0  ;;  %v1833_v18 = vmul.f32 %v5947_v49, %v1701_v9  ;;  %v1705_v60 = vadd.f32 %v5934_v37, %v1637_v41  ;;  %v2440_v16 = vmul.f32 %v5726_v3, %v2417_v52  ;;  %v2223_v8 = vld [vmem:[#allocation2 + $0x228] ss:$2 sm:$0xff] }
 0x349   :  { %vm2652_vm9 = vcmp.ge.f32.partialorder %v2636_v24, 0.0  ;;  %v2672_v13 = vmul.f32 %v6251_v15, %v2636_v24  ;;  %v1691_v43 = vadd.f32 %v5934_v37, %v1623_v6  ;;  %v2505_v19 = vadd.f32 %v2147_v21, %v2098_v56  ;;  %v2321_v12 = vld [vmem:[#allocation2 + $0x22a] ss:$2 sm:$0xff] }
 0x34a   :  { %v1897_v34 = vsel %vm1765_vm8, %v1701_v9, %v1833_v18  ;;  %vm1769_vm10 = vcmp.ge.f32.partialorder %v1705_v60, 0.0  ;;  %v1837_v31 = vmul.f32 %v5947_v49, %v1705_v60  ;;  %v2521_v50 = vadd.f32 %v2244_v54, %v2196_v51  ;;  %v7519_v21 = vld [vmem:[#allocation87_spill] sm:$0xff] }
 0x34b   :  { %v6256_v38 = vsel %vm2652_vm9, %v2636_v24, %v2672_v13  ;;  %2050 = vst.msk [vmem:[#allocation2 + $0x309] sm:$0xff] %vm1902_vm0, %v1897_v34  ;;  %vm1755_vm11 = vcmp.ge.f32.partialorder %v1691_v43, 0.0  ;;  %v1823_v62 = vmul.f32 %v5947_v49, %v1691_v43  ;;  %v2537_v7 = vadd.f32 %v2342_v32, %v2293_v14  ;;  %v2370_v41 = vld [vmem:[#allocation2 + $0x240] ss:$2 sm:$0xff]  ;;  %v2419_v54 = vld [vmem:[#allocation2 + $0x241] ss:$2 sm:$0xff] }
 0x34c   :  { %2739 = vperm.xlu1 %3646, %v6256_v38   ;;  %v1901_v37 = vsel %vm1769_vm10, %v1705_v60, %v1837_v31  ;;  %v2553_v55 = vadd.f32 %v2440_v16, %v2391_v0  ;;  %v2569_v30 = vadd.f32 %v2521_v50, %v2505_v19  ;;  %v1444_v36 = vmul.f32 %v5171_v48, %v1375_v61  ;;  %v7520_v14 = vld [vmem:[#allocation101_spill] sm:$0xff]  ;;  %v7521_v25 = vld [vmem:[#allocation91_spill] sm:$0xff]  ;;  %v7524_v61 = vld [vmem:[#allocation38_spill] sm:$0xff] }
 0x34d   :  { %2054 = vst.msk [vmem:[#allocation2 + $0x339] sm:$0xff] %vm1902_vm0, %v1901_v37  ;;  %v1887_v56 = vsel %vm1755_vm11, %v1691_v43, %v1823_v62  ;;  %v2489_v35 = vmul.f32 %v6177_v1, %v2466_v44  ;;  %v1434_v49 = vmul.f32 %v5171_v48, %v6213_v47  ;;  %v1437_v46 = vmul.f32 %v5171_v48, %v1347_v29  ;;  %v7522_v18 = vld [vmem:[#allocation83_spill] sm:$0xff]  ;;  %v7523_v43 = vld [vmem:[#allocation28_spill] sm:$0xff]  ;;  %v6285_v29 = vld [vmem:[%s7005_s2] ss:$0 sm:$0xff] }
 0x34e   :  { %2040 = vst.msk [vmem:[#allocation2 + $0x291] sm:$0xff] %vm1902_vm0, %v1887_v56  ;;  %v2585_v10 = vadd.f32 %v2553_v55, %v2537_v7  ;;  %v1572_v51 = vadd.f32 %v1444_v36, %v7519_v21  ;;  %v2099_v52 = vmul.f32 %v5655_v27, %v2077_v28  ;;  %v2148_v9 = vmul.f32 %v5658_v22, %v2126_v53  ;;  %v6294_v36 = vld [vmem:[%s7006_s3] ss:$0 sm:$0xff] }
 0x34f   :  { %v1562_v24 = vadd.f32 %v1434_v49, %v7520_v14  ;;  %v1565_v6 = vadd.f32 %v1437_v46, %v7521_v25  ;;  %v2197_v47 = vmul.f32 %v5661_v45, %v2175_v17  ;;  %v2245_v32 = vmul.f32 %v5664_v57, %v2223_v8  ;;  %v2468_v8 = vld [vmem:[#allocation2 + $0x242] ss:$2 sm:$0xff]  ;;  %v2128_v49 = vld [vmem:[#allocation2 + $0x241] ss:$2 sm:$0xff] }
 0x350   :  { %v2601_v0 = vadd.f32 %v2585_v10, %v2569_v30  ;;  %v1636_v60 = vadd.f32 %v1572_v51, %v7522_v18  ;;  %v2294_v16 = vmul.f32 %v5680_v5, %v2272_v20  ;;  %v2343_v13 = vmul.f32 %v5683_v26, %v2321_v12  ;;  %v2177_v12 = vld [vmem:[#allocation2 + $0x242] ss:$2 sm:$0xff] }
 0x351   :  { %v1626_v19 = vadd.f32 %v1562_v24, %v7523_v43  ;;  %v1629_v34 = vadd.f32 %v1565_v6, %v7524_v61  ;;  %v2392_v31 = vmul.f32 %v5723_v33, %v2370_v41  ;;  %v2441_v44 = vmul.f32 %v5726_v3, %v2419_v54  ;;  %v2225_v10 = vld [vmem:[#allocation2 + $0x258] ss:$2 sm:$0xff]  ;;  %v2421_v6 = vld [vmem:[#allocation2 + $0x271] ss:$2 sm:$0xff] }
 0x352   :  { %v2617_v50 = vadd.f32 %v2601_v0, %v2489_v35  ;;  %v1704_v62 = vadd.f32 %v6285_v29, %v1636_v60  ;;  %v2506_v7 = vadd.f32 %v2148_v9, %v2099_v52  ;;  %v2522_v37 = vadd.f32 %v2245_v32, %v2197_v47  ;;  %v2079_v35 = vld [vmem:[#allocation2 + $0x240] ss:$2 sm:$0xff]  ;;  %v2274_v52 = vld [vmem:[#allocation2 + $0x259] ss:$2 sm:$0xff]  ;;  %v2372_v25 = vld [vmem:[#allocation2 + $0x270] ss:$2 sm:$0xff] }
 0x353   :  { %v1694_v28 = vadd.f32 %v6285_v29, %v1626_v19  ;;  %v1697_v53 = vadd.f32 %v6285_v29, %v1629_v34  ;;  %v2538_v55 = vadd.f32 %v2343_v13, %v2294_v16  ;;  %v2554_v56 = vadd.f32 %v2441_v44, %v2392_v31  ;;  %v2323_v9 = vld [vmem:[#allocation2 + $0x25a] ss:$2 sm:$0xff]  ;;  %v2130_v44 = vld [vmem:[#allocation2 + $0x271] ss:$2 sm:$0xff] }
 0x354   :  { %v2637_v30 = vadd.f32 %v6239_v39, %v2617_v50  ;;  %vm1768_vm12 = vcmp.ge.f32.partialorder %v1704_v62, 0.0  ;;  %v1836_v17 = vmul.f32 %v6294_v36, %v1704_v62  ;;  %v2570_v14 = vadd.f32 %v2522_v37, %v2506_v7  ;;  %v2081_v43 = vld [vmem:[#allocation2 + $0x270] ss:$2 sm:$0xff] }
 0x355   :  { %vm1758_vm13 = vcmp.ge.f32.partialorder %v1694_v28, 0.0  ;;  %v1826_v46 = vmul.f32 %v6294_v36, %v1694_v28  ;;  %vm1761_vm14 = vcmp.ge.f32.partialorder %v1697_v53, 0.0  ;;  %v1829_v20 = vmul.f32 %v6294_v36, %v1697_v53  ;;  %v2276_v37 = vld [vmem:[#allocation2 + $0x289] ss:$2 sm:$0xff] }
 0x356   :  { %vm2653_vm15 = vcmp.ge.f32.partialorder %v2637_v30, 0.0  ;;  %v2673_v21 = vmul.f32 %v6251_v15, %v2637_v30  ;;  %v1900_v51 = vsel %vm1768_vm12, %v1704_v62, %v1836_v17  ;;  %v2586_v24 = vadd.f32 %v2554_v56, %v2538_v55  ;;  %v2374_v56 = vld [vmem:[#allocation2 + $0x2a0] ss:$2 sm:$0xff] }
 0x357   :  { %2053 = vst.msk [vmem:[#allocation2 + $0x331] sm:$0xff] %vm1902_vm0, %v1900_v51  ;;  %v1890_v41 = vsel %vm1758_vm13, %v1694_v28, %v1826_v46  ;;  %v1893_v54 = vsel %vm1761_vm14, %v1697_v53, %v1829_v20  ;;  %v2100_v32 = vmul.f32 %v5655_v27, %v2079_v35  ;;  %v2149_v0 = vmul.f32 %v5658_v22, %v2128_v49  ;;  %v2179_v28 = vld [vmem:[#allocation2 + $0x272] ss:$2 sm:$0xff] }
 0x358   :  { %v6301_v47 = vsel %vm2653_vm15, %v2637_v30, %v2673_v21  ;;  %2043 = vst.msk [vmem:[#allocation2 + $0x2b9] sm:$0xff] %vm1902_vm0, %v1890_v41  ;;  %v2198_v18 = vmul.f32 %v5661_v45, %v2177_v12  ;;  %v2490_v60 = vmul.f32 %v6177_v1, %v2468_v8  ;;  %v2602_v16 = vadd.f32 %v2586_v24, %v2570_v14  ;;  %v2227_v53 = vld [vmem:[#allocation2 + $0x288] ss:$2 sm:$0xff]  ;;  %v2423_v12 = vld [vmem:[#allocation2 + $0x2a1] ss:$2 sm:$0xff] }
 0x359   :  { %2744 = vperm.xlu2 %3647, %v6301_v47   ;;  %2046 = vst.msk [vmem:[#allocation2 + $0x2d9] sm:$0xff] %vm1902_vm0, %v1893_v54  ;;  %v2246_v13 = vmul.f32 %v5664_v57, %v2225_v10  ;;  %v2295_v19 = vmul.f32 %v5680_v5, %v2274_v52  ;;  %v2344_v61 = vmul.f32 %v5683_v26, %v2323_v9  ;;  %v2325_v8 = vld [vmem:[#allocation2 + $0x28a] ss:$2 sm:$0xff]  ;;  %v2132_v24 = vld [vmem:[#allocation2 + $0x2a1] ss:$2 sm:$0xff]  ;;  %vm3493_vm8 = vcmask 130048  }
 0x35a   :  { %v2393_v34 = vmul.f32 %v5723_v33, %v2372_v25  ;;  %v2442_v31 = vmul.f32 %v5726_v3, %v2421_v6  ;;  %v2618_v50 = vadd.f32 %v2602_v16, %v2490_v60  ;;  %v2507_v62 = vadd.f32 %v2149_v0, %v2100_v32  ;;  %v2470_v49 = vld [vmem:[#allocation2 + $0x272] ss:$2 sm:$0xff]  ;;  %v2181_v25 = vld [vmem:[#allocation2 + $0x2a2] ss:$2 sm:$0xff] }
 0x35b   :  { %v2523_v7 = vadd.f32 %v2246_v13, %v2198_v18  ;;  %v2539_v55 = vadd.f32 %v2344_v61, %v2295_v19  ;;  %v2101_v17 = vmul.f32 %v5655_v27, %v2081_v43  ;;  %v2150_v20 = vmul.f32 %v5658_v22, %v2130_v44  ;;  %v2083_v9 = vld [vmem:[#allocation2 + $0x2a0] ss:$2 sm:$0xff] }
 0x35c   :  { %v2555_v30 = vadd.f32 %v2442_v31, %v2393_v34  ;;  %v2638_v35 = vadd.f32 %v6239_v39, %v2618_v50  ;;  %v2199_v21 = vmul.f32 %v5661_v45, %v2179_v28  ;;  %v2247_v51 = vmul.f32 %v5664_v57, %v2227_v53 }
 0x35d   :  { %v2571_v46 = vadd.f32 %v2523_v7, %v2507_v62  ;;  %v2296_v52 = vmul.f32 %v5680_v5, %v2276_v37  ;;  %v2345_v54 = vmul.f32 %v5683_v26, %v2325_v8  ;;  %v2394_v14 = vmul.f32 %v5723_v33, %v2374_v56  ;;  %v2472_v62 = vld [vmem:[#allocation2 + $0x2a2] ss:$2 sm:$0xff] }
 0x35e   :  { %v2587_v10 = vadd.f32 %v2555_v30, %v2539_v55  ;;  %vm2654_vm2 = vcmp.ge.f32.partialorder %v2638_v35, 0.0  ;;  %v2674_v41 = vmul.f32 %v6251_v15, %v2638_v35  ;;  %v2491_v6 = vmul.f32 %v6177_v1, %v2470_v49 }
 0x35f   :  { %v2443_v0 = vmul.f32 %v5726_v3, %v2423_v12  ;;  %v2508_v18 = vadd.f32 %v2150_v20, %v2101_v17  ;;  %v2229_v60 = vld [vmem:[#allocation2 + $0x2b8] ss:$2 sm:$0xff]  ;;  %v2278_v16 = vld [vmem:[#allocation2 + $0x2b9] ss:$2 sm:$0xff]  ;;  %v2524_v19 = vadd.f32 %v2247_v51, %v2199_v21  ;;  %v2540_v61 = vadd.f32 %v2345_v54, %v2296_v52 }
 0x360   :  { %v2603_v32 = vadd.f32 %v2587_v10, %v2571_v46  ;;  %v2327_v13 = vld [vmem:[#allocation2 + $0x2ba] ss:$2 sm:$0xff]  ;;  %v6326_v43 = vsel %vm2654_vm2, %v2638_v35, %v2674_v41  ;;  %v2102_v34 = vmul.f32 %v5655_v27, %v2083_v9  ;;  %v2425_v44 = vld [vmem:[#allocation2 + $0x2d1] ss:$2 sm:$0xff]  ;;  %v2151_v28 = vmul.f32 %v5658_v22, %v2132_v24 }
 0x361   :  { %v2376_v31 = vld [vmem:[#allocation2 + $0x2d0] ss:$2 sm:$0xff]  ;;  %2749 = vperm.xlu0 %3645, %v6326_v43   ;;  %v2556_v7 = vadd.f32 %v2443_v0, %v2394_v14  ;;  %v2200_v53 = vmul.f32 %v5661_v45, %v2181_v25  ;;  %v2572_v37 = vadd.f32 %v2524_v19, %v2508_v18  ;;  %v2248_v55 = vmul.f32 %v5664_v57, %v2229_v60 }
 0x362   :  { %v2619_v50 = vadd.f32 %v2603_v32, %v2491_v6  ;;  %v2297_v30 = vmul.f32 %v5680_v5, %v2278_v16  ;;  %v2346_v17 = vmul.f32 %v5683_v26, %v2327_v13  ;;  %v2395_v35 = vmul.f32 %v5723_v33, %v2376_v31  ;;  %v2474_v9 = vld [vmem:[#allocation2 + $0x2d2] ss:$2 sm:$0xff]  ;;  %v3713_v31 = vld [vmem:[%s7003_s0 + $0x1e8] sm:$0xff] }
 0x363   :  { %v2588_v56 = vadd.f32 %v2556_v7, %v2540_v61  ;;  %v2444_v49 = vmul.f32 %v5726_v3, %v2425_v44  ;;  %v2492_v46 = vmul.f32 %v6177_v1, %v2472_v62  ;;  %v2509_v20 = vadd.f32 %v2151_v28, %v2102_v34  ;;  %v3712_v34 = vld [vmem:[%s7003_s0 + $0x1d0] sm:$0xff]  ;;  %v1359_v7 = vpop.permute.xlu1 %1358 }
 0x364   :  { %v2639_v8 = vadd.f32 %v6239_v39, %v2619_v50  ;;  %v2525_v12 = vadd.f32 %v2248_v55, %v2200_v53  ;;  %v2541_v10 = vadd.f32 %v2346_v17, %v2297_v30  ;;  %v2493_v6 = vmul.f32 %v6177_v1, %v2474_v9  ;;  %v7526_v30 = vld [vmem:[#allocation60_spill] sm:$0xff]  ;;  %v7530_v9 = vld [vmem:[#allocation63_spill] sm:$0xff] }
 0x365   :  { %v2604_v51 = vadd.f32 %v2588_v56, %v2572_v37  ;;  %v2557_v52 = vadd.f32 %v2444_v49, %v2395_v35  ;;  %v7525_v61 = vmov 1   ;;  %v1440_v37 = vmul.f32 %v5171_v48, %v1359_v7  ;;  %v7528_v56 = vld [vmem:[#allocation22_spill] sm:$0xff]  ;;  %v7529_v49 = vld [vmem:[#allocation155_spill] sm:$0xff] }
 0x366   :  { %vm2655_vm3 = vcmp.ge.f32.partialorder %v2639_v8, 0.0  ;;  %v2675_v21 = vmul.f32 %v6251_v15, %v2639_v8  ;;  %v2573_v14 = vadd.f32 %v2525_v12, %v2509_v20  ;;  %v477_v17 = vmul.f32 %v4692_v59, %v7526_v30  ;;  %v2183_v7 = vld [vmem:[#allocation2 + $0x2d2] ss:$2 sm:$0xff] }
 0x367   :  { %v2620_v54 = vadd.f32 %v2604_v51, %v2492_v46  ;;  %v2589_v24 = vadd.f32 %v2557_v52, %v2541_v10  ;;  %v2231_v30 = vld [vmem:[#allocation2 + $0x2e8] ss:$2 sm:$0xff] }
 0x368   :  { %v6340_v41 = vsel %vm2655_vm3, %v2639_v8, %v2675_v21  ;;  %v7527_v8 = vld [vmem:[#allocation44_spill] sm:$0xff] }
 0x369   :  { %2754 = vperm.xlu1 %3646, %v6340_v41   ;;  %v2640_v25 = vadd.f32 %v6239_v39, %v2620_v54  ;;  %v2605_v32 = vadd.f32 %v2589_v24, %v2573_v14  ;;  %v1119_v35 = vmul.f32 %v7528_v56, %v7527_v8  ;;  %v480_v54 = vmul.f32 %v4692_v59, %v7530_v9  ;;  %v7531_v24 = vld [vmem:[#allocation49_spill] sm:$0xff] }
 0x36a   :  { %v2085_v59 = vld [vmem:[#allocation2 + $0x2d0] ss:$2 sm:$0xff] }
 0x36b   :  { %vm2656_vm4 = vcmp.ge.f32.partialorder %v2640_v25, 0.0  ;;  %v2676_v0 = vmul.f32 %v6251_v15, %v2640_v25  ;;  %v2621_v18 = vadd.f32 %v2605_v32, %v2493_v6  ;;  %v1371_v53 = vpop.permute.xlu1 %1370  ;;  %v1568_v20 = vadd.f32 %v1440_v37, %v1119_v35  ;;  %v2329_v8 = vld [vmem:[#allocation2 + $0x2ea] ss:$2 sm:$0xff] }
 0x36c   :  { %v1443_v51 = vmul.f32 %v5171_v48, %v1371_v53  ;;  %v2103_v35 = vmul.f32 %v5655_v27, %v2085_v59  ;;  %v2429_v59 = vld [vmem:[#allocation2 + $0x331] ss:$2 sm:$0xff] }
 0x36d   :  { %v6346_v60 = vsel %vm2656_vm4, %v2640_v25, %v2676_v0  ;;  %v2641_v16 = vadd.f32 %v6239_v39, %v2621_v18  ;;  %v1122_v25 = vmul.f32 %v7528_v56, %v7531_v24  ;;  %v6390_v0 = vld [vmem:[%s7010_s7] sm:$0xff] }
 0x36e   :  { %2759 = vperm.xlu2 %3647, %v6346_v60   ;;  %v6397_v53 = vperm.slane %v6390_v0, 0 }
 0x36f   :  { %vm2657_vm1 = vcmp.ge.f32.partialorder %v2641_v16, 0.0  ;;  %v2677_v13 = vmul.f32 %v6251_v15, %v2641_v16  ;;  %v1571_v48 = vadd.f32 %v1443_v51, %v1122_v25  ;;  %v2249_v51 = vmul.f32 %v5664_v57, %v2231_v30 }
 0x371   :  { %v6351_v19 = vsel %vm2657_vm1, %v2641_v16, %v2677_v13  ;;  %v6365_v44 = vpop.permute.xlu0 %2709 }
 0x372   :  { %2764 = vperm.xlu0 %3645, %v6351_v19  }
 0x373   :  { %v2700_v21 = vpop.permute.xlu1 %2699 }
 0x37a   :  { %3648 = vset.pattern.permute.xlu0 %v7525_v61 }
 0x37b   :  { %716 = vperm.xlu0 %3648, %v3712_v34   ;;  %v6394_v34 = vperm.slane %v6390_v0, 1 }
 0x381   :  { %v6399_v37 = vpop.permute.xlu1 %2714 }
 0x383   :  { %728 = vperm.xlu0 %3648, %v3713_v31   ;;  %v2134_v31 = vld [vmem:[#allocation2 + $0x2d1] ss:$2 sm:$0xff] }
 0x38b   :  { %2795 = vperm.xlu0 %3648, %v5963_v40  }
 0x393   :  { %2815 = vperm.xlu0 %3648, %v6114_v63  }
 0x39b   :  { %2827 = vperm.xlu0 %3648, %v6256_v38  }
 0x3a3   :  { %2839 = vperm.xlu0 %3648, %v6340_v41  }
 0x3b6   :  { %v6367_v50 = vpop.permute.xlu0 %2734 }
 0x3d3   :  { %v6369_v62 = vpop.permute.xlu0 %2749 }
 0x3e4   :  { %v6371_v28 = vpop.permute.xlu0 %2764 }
 0x3ed   :  { %v717_v55 = vpop.permute.xlu0 %716 }
 0x3ee   :  { %v798_v46 = vmul.f32 %v7529_v49, %v717_v55 }
 0x3f0   :  { %v1504_v12 = vadd.f32 %v798_v46, %v477_v17  ;;  %v2280_v17 = vld [vmem:[#allocation2 + $0x2e9] ss:$2 sm:$0xff]  ;;  %v2201_v46 = vmul.f32 %v5661_v45, %v2183_v7 }
 0x3f2   :  { %v1632_v10 = vadd.f32 %v1568_v20, %v1504_v12  ;;  %v2778_v20 = vmul.f32 %v6397_v53, %v2700_v21 }
 0x3f4   :  { %v1700_v52 = vadd.f32 %v6285_v29, %v1632_v10 }
 0x3f5   :  { %v729_v14 = vpop.permute.xlu0 %728 }
 0x3f6   :  { %vm1764_vm5 = vcmp.ge.f32.partialorder %v1700_v52, 0.0  ;;  %v1832_v6 = vmul.f32 %v6294_v36, %v1700_v52  ;;  %v801_v32 = vmul.f32 %v7529_v49, %v729_v14  ;;  %v2152_v49 = vmul.f32 %v5658_v22, %v2134_v31 }
 0x3f8   :  { %v1896_v18 = vsel %vm1764_vm5, %v1700_v52, %v1832_v6  ;;  %v1507_v16 = vadd.f32 %v801_v32, %v480_v54  ;;  %v2347_v52 = vmul.f32 %v5683_v26, %v2329_v8  ;;  %v2526_v6 = vadd.f32 %v2249_v51, %v2201_v46  ;;  %v2725_v32 = vpop.permute.xlu1 %2724 }
 0x3f9   :  { %2049 = vst.msk [vmem:[#allocation2 + $0x301] sm:$0xff] %vm1902_vm0, %v1896_v18 }
 0x3fa   :  { %v1635_v13 = vadd.f32 %v1571_v48, %v1507_v16  ;;  %v2380_v16 = vld [vmem:[#allocation2 + $0x330] ss:$2 sm:$0xff] }
 0x3fc   :  { %v1703_v55 = vadd.f32 %v6285_v29, %v1635_v13  ;;  %v2298_v29 = vmul.f32 %v5680_v5, %v2280_v17 }
 0x3fd   :  { %v2796_v56 = vpop.permute.xlu0 %2795 }
 0x3fe   :  { %vm1767_vm6 = vcmp.ge.f32.partialorder %v1703_v55, 0.0  ;;  %v1835_v12 = vmul.f32 %v6294_v36, %v1703_v55  ;;  %v2859_v10 = vmul.f32 %v6394_v34, %v2796_v56  ;;  %v2510_v36 = vadd.f32 %v2152_v49, %v2103_v35 }
 0x3ff   :  { %v2542_v48 = vadd.f32 %v2347_v52, %v2298_v29  ;;  %v2783_v56 = vmul.f32 %v6397_v53, %v2725_v32  ;;  %v2446_v35 = vmul.f32 %v5726_v3, %v2429_v59 }
 0x400   :  { %v1899_v9 = vsel %vm1767_vm6, %v1703_v55, %v1835_v12  ;;  %v6411_v54 = vadd.f32 %v2859_v10, %v2778_v20  ;;  %v2378_v14 = vld [vmem:[#allocation2 + $0x300] ss:$2 sm:$0xff]  ;;  %v2427_v24 = vld [vmem:[#allocation2 + $0x301] ss:$2 sm:$0xff]  ;;  %v2574_v30 = vadd.f32 %v2526_v6, %v2510_v36  ;;  %v2397_v12 = vmul.f32 %v5723_v33, %v2380_v16  ;;  %v2740_v6 = vpop.permute.xlu1 %2739 }
 0x401   :  { %2052 = vst.msk [vmem:[#allocation2 + $0x321] sm:$0xff] %vm1902_vm0, %v1899_v9  ;;  %v2396_v21 = vmul.f32 %v5723_v33, %v2378_v14  ;;  %v2445_v25 = vmul.f32 %v5726_v3, %v2427_v24  ;;  %v2476_v13 = vld [vmem:[#allocation2 + $0x302] ss:$2 sm:$0xff]  ;;  %v2136_v7 = vld [vmem:[#allocation2 + $0x301] ss:$2 sm:$0xff] }
 0x402   :  { %v2087_v31 = vld [vmem:[#allocation2 + $0x300] ss:$2 sm:$0xff]  ;;  %v2494_v49 = vmul.f32 %v6177_v1, %v2476_v13  ;;  %v2153_v51 = vmul.f32 %v5658_v22, %v2136_v7  ;;  %v2559_v36 = vadd.f32 %v2446_v35, %v2397_v12  ;;  %v3745_v35 = vmov 4  }
 0x403   :  { %v2558_v18 = vadd.f32 %v2445_v25, %v2396_v21  ;;  %v2185_v8 = vld [vmem:[#allocation2 + $0x302] ss:$2 sm:$0xff]  ;;  %v2104_v10 = vmul.f32 %v5655_v27, %v2087_v31 }
 0x404   :  { %v2202_v52 = vmul.f32 %v5661_v45, %v2185_v8 }
 0x405   :  { %v2816_v55 = vpop.permute.xlu0 %2815  ;;  %v2590_v17 = vadd.f32 %v2558_v18, %v2542_v48  ;;  %v2511_v32 = vadd.f32 %v2153_v51, %v2104_v10  ;;  %v2478_v18 = vld [vmem:[#allocation2 + $0x332] ss:$2 sm:$0xff] }
 0x406   :  { %v2864_v20 = vmul.f32 %v6394_v34, %v2816_v55 }
 0x407   :  { %v2606_v46 = vadd.f32 %v2590_v17, %v2574_v30 }
 0x408   :  { %v6423_v29 = vadd.f32 %v2864_v20, %v2783_v56  ;;  %v2233_v9 = vld [vmem:[#allocation2 + $0x318] ss:$2 sm:$0xff]  ;;  %v2282_v14 = vld [vmem:[#allocation2 + $0x319] ss:$2 sm:$0xff]  ;;  %v7532_v20 = vmov 2   ;;  %v6496_v10 = vpop.permute.xlu1 %2754 }
 0x409   :  { %v2331_v24 = vld [vmem:[#allocation2 + $0x31a] ss:$2 sm:$0xff]  ;;  %v2622_v21 = vadd.f32 %v2606_v46, %v2494_v49  ;;  %v2250_v25 = vmul.f32 %v5664_v57, %v2233_v9  ;;  %v2299_v33 = vmul.f32 %v5680_v5, %v2282_v14  ;;  %v2786_v57 = vmul.f32 %v6397_v53, %v2740_v6 }
 0x40a   :  { %v2348_v3 = vmul.f32 %v5683_v26, %v2331_v24  ;;  %v2495_v26 = vmul.f32 %v6177_v1, %v2478_v18  ;;  %v7533_v1 = vmov 3   ;;  %v3746_v18 = vmov 5  }
 0x40b   :  { %v2642_v27 = vadd.f32 %v6239_v39, %v2622_v21  ;;  %v2527_v22 = vadd.f32 %v2250_v25, %v2202_v52 }
 0x40c   :  { %v2543_v48 = vadd.f32 %v2348_v3, %v2299_v33 }
 0x40d   :  { %v2828_v16 = vpop.permute.xlu0 %2827  ;;  %vm2658_vm0 = vcmp.ge.f32.partialorder %v2642_v27, 0.0  ;;  %v2678_v45 = vmul.f32 %v6251_v15, %v2642_v27  ;;  %v2575_v59 = vadd.f32 %v2527_v22, %v2511_v32  ;;  %v2785_v22 = vmul.f32 %v6397_v53, %v6367_v50 }
 0x40e   :  { %v2591_v13 = vadd.f32 %v2559_v36, %v2543_v48  ;;  %v2867_v5 = vmul.f32 %v6394_v34, %v2828_v16 }
 0x40f   :  { %v6433_v31 = vsel %vm2658_vm0, %v2642_v27, %v2678_v45 }
 0x410   :  { %v2607_v7 = vadd.f32 %v2591_v13, %v2575_v59  ;;  %v6436_v55 = vadd.f32 %v2867_v5, %v2786_v57  ;;  %2851 = vperm.xlu0 %3648, %v6433_v31   ;;  %2769 = vperm.xlu1 %3646, %v6433_v31  }
 0x412   :  { %v2623_v30 = vadd.f32 %v2607_v7, %v2495_v26  ;;  %v2788_v26 = vmul.f32 %v6397_v53, %v6369_v62  ;;  %v2791_v62 = vmul.f32 %v6397_v53, %v6371_v28 }
 0x414   :  { %v2643_v17 = vadd.f32 %v6239_v39, %v2623_v30  ;;  %v2705_v39 = vpop.permute.xlu2 %2704 }
 0x415   :  { %v6498_v51 = vpop.permute.xlu0 %2839  ;;  %v2779_v45 = vmul.f32 %v6397_v53, %v2705_v39 }
 0x416   :  { %vm2659_vm7 = vcmp.ge.f32.partialorder %v2643_v17, 0.0  ;;  %v2679_v8 = vmul.f32 %v6251_v15, %v2643_v17 }
 0x418   :  { %v6442_v56 = vsel %vm2659_vm7, %v2643_v17, %v2679_v8  ;;  %3652 = vset.pattern.permute.xlu0 %v7532_v20  ;;  %3649 = vset.pattern.permute.xlu1 %v7525_v61  ;;  %v2781_v17 = vmul.f32 %v6397_v53, %v6399_v37 }
 0x419   :  { %2774 = vperm.xlu2 %3647, %v6442_v56   ;;  %2880 = vperm.xlu0 %3652, %v5896_v58  }
 0x41a   :  { %2799 = vperm.xlu1 %3649, %v5896_v58  }
 0x41c   :  { %v2720_v15 = vpop.permute.xlu2 %2719 }
 0x41d   :  { %v2782_v33 = vmul.f32 %v6397_v53, %v2720_v15 }
 0x421   :  { %3650 = vset.pattern.permute.xlu2 %v7525_v61  ;;  %2900 = vperm.xlu0 %3652, %v6158_v11  }
 0x422   :  { %2803 = vperm.xlu2 %3650, %v5981_v23   ;;  %2807 = vperm.xlu1 %3649, %v6036_v4  }
 0x424   :  { %v6474_v61 = vpop.permute.xlu2 %2729 }
 0x429   :  { %2912 = vperm.xlu0 %3652, %v6301_v47  }
 0x42a   :  { %2811 = vperm.xlu2 %3650, %v6084_v42   ;;  %2819 = vperm.xlu1 %3649, %v6158_v11  }
 0x42c   :  { %v6479_v12 = vpop.permute.xlu2 %2744 }
 0x431   :  { %2924 = vperm.xlu0 %3652, %v6346_v60  }
 0x432   :  { %2823 = vperm.xlu2 %3650, %v6219_v2   ;;  %2831 = vperm.xlu1 %3649, %v6301_v47  }
 0x434   :  { %v6485_v49 = vpop.permute.xlu2 %2759 }
 0x439   :  { %2936 = vperm.xlu0 %3652, %v6442_v56  }
 0x43a   :  { %2835 = vperm.xlu2 %3650, %v6326_v43   ;;  %2843 = vperm.xlu1 %3649, %v6346_v60  }
 0x441   :  { %3656 = vset.pattern.permute.xlu0 %v7533_v1 }
 0x442   :  { %2847 = vperm.xlu2 %3650, %v6351_v19   ;;  %2855 = vperm.xlu1 %3649, %v6442_v56  }
 0x443   :  { %2965 = vperm.xlu0 %3656, %v5981_v23  }
 0x44a   :  { %3651 = vset.pattern.permute.xlu2 %v7532_v20  ;;  %3653 = vset.pattern.permute.xlu1 %v7532_v20 }
 0x44b   :  { %2876 = vperm.xlu2 %3651, %v5963_v40   ;;  %2985 = vperm.xlu0 %3656, %v6219_v2  }
 0x44c   :  { %2884 = vperm.xlu1 %3653, %v5981_v23  }
 0x453   :  { %2888 = vperm.xlu2 %3651, %v6036_v4   ;;  %2997 = vperm.xlu0 %3656, %v6326_v43  }
 0x454   :  { %2892 = vperm.xlu1 %3653, %v6084_v42  }
 0x45b   :  { %2896 = vperm.xlu2 %3651, %v6114_v63   ;;  %3009 = vperm.xlu0 %3656, %v6351_v19  }
 0x45c   :  { %2904 = vperm.xlu1 %3653, %v6219_v2  }
 0x463   :  { %2908 = vperm.xlu2 %3651, %v6256_v38   ;;  %3657 = vset.pattern.permute.xlu0 %v3745_v35 }
 0x464   :  { %2916 = vperm.xlu1 %3653, %v6326_v43   ;;  %3038 = vperm.xlu0 %3657, %v5963_v40  }
 0x46b   :  { %2920 = vperm.xlu2 %3651, %v6340_v41  }
 0x46c   :  { %2928 = vperm.xlu1 %3653, %v6351_v19   ;;  %3058 = vperm.xlu0 %3657, %v6114_v63  }
 0x473   :  { %v6490_v46 = vpop.permute.xlu2 %2774  ;;  %2932 = vperm.xlu2 %3651, %v6433_v31  }
 0x474   :  { %3654 = vset.pattern.permute.xlu1 %v7533_v1  ;;  %3070 = vperm.xlu0 %3657, %v6256_v38  }
 0x475   :  { %2957 = vperm.xlu1 %3654, %v5963_v40  }
 0x47b   :  { %3655 = vset.pattern.permute.xlu2 %v7533_v1 }
 0x47c   :  { %v6501_v52 = vpop.permute.xlu2 %2803  ;;  %2961 = vperm.xlu2 %3655, %v5896_v58   ;;  %3082 = vperm.xlu0 %3657, %v6340_v41  }
 0x47d   :  { %2969 = vperm.xlu1 %3654, %v6036_v4  }
 0x482   :  { %v2852_v9 = vpop.permute.xlu0 %2851  ;;  %v2770_v14 = vpop.permute.xlu1 %2769 }
 0x483   :  { %v2873_v24 = vmul.f32 %v6394_v34, %v2852_v9  ;;  %v2792_v21 = vmul.f32 %v6397_v53, %v2770_v14  ;;  %v2784_v14 = vmul.f32 %v6397_v53, %v6474_v61 }
 0x484   :  { %v2812_v25 = vpop.permute.xlu2 %2811  ;;  %2973 = vperm.xlu2 %3655, %v6084_v42   ;;  %3094 = vperm.xlu0 %3657, %v6433_v31  }
 0x485   :  { %v2863_v3 = vmul.f32 %v6394_v34, %v2812_v25  ;;  %2977 = vperm.xlu1 %3654, %v6114_v63   ;;  %v6513_v36 = vadd.f32 %v2873_v24, %v2792_v21 }
 0x487   :  { %v6515_v6 = vadd.f32 %v2863_v3, %v2782_v33  ;;  %v2787_v3 = vmul.f32 %v6397_v53, %v6479_v12 }
 0x48b   :  { %v6518_v32 = vpop.permute.xlu0 %2880 }
 0x48c   :  { %v2824_v27 = vpop.permute.xlu2 %2823  ;;  %2981 = vperm.xlu2 %3655, %v6158_v11   ;;  %3661 = vset.pattern.permute.xlu0 %v3746_v18  ;;  %v2800_v16 = vpop.permute.xlu1 %2799 }
 0x48d   :  { %v2866_v48 = vmul.f32 %v6394_v34, %v2824_v27  ;;  %2989 = vperm.xlu1 %3654, %v6256_v38   ;;  %v2860_v59 = vmul.f32 %v6394_v34, %v2800_v16  ;;  %3123 = vperm.xlu0 %3661, %v5896_v58  }
 0x48f   :  { %v6528_v13 = vadd.f32 %v2866_v48, %v2785_v22  ;;  %v6530_v57 = vadd.f32 %v2860_v59, %v2779_v45 }
 0x493   :  { %v6533_v50 = vpop.permute.xlu0 %2900 }
 0x494   :  { %v2836_v5 = vpop.permute.xlu2 %2835  ;;  %2993 = vperm.xlu2 %3655, %v6301_v47   ;;  %v2808_v30 = vpop.permute.xlu1 %2807 }
 0x495   :  { %v2869_v7 = vmul.f32 %v6394_v34, %v2836_v5  ;;  %3001 = vperm.xlu1 %3654, %v6340_v41   ;;  %v2862_v8 = vmul.f32 %v6394_v34, %v2808_v30  ;;  %3143 = vperm.xlu0 %3661, %v6158_v11   ;;  %v6597_v30 = vperm.slane %v6390_v0, 3 }
 0x497   :  { %v6543_v20 = vadd.f32 %v2869_v7, %v2788_v26  ;;  %v6545_v1 = vadd.f32 %v2862_v8, %v2781_v17  ;;  %v7035_v26 = vmov 6   ;;  %v2861_v8 = vmul.f32 %v6394_v34, %v6501_v52 }
 0x49b   :  { %v6551_v9 = vpop.permute.xlu0 %2912 }
 0x49c   :  { %v2848_v39 = vpop.permute.xlu2 %2847  ;;  %3005 = vperm.xlu2 %3655, %v6346_v60   ;;  %v2820_v37 = vpop.permute.xlu1 %2819 }
 0x49d   :  { %v2872_v15 = vmul.f32 %v6394_v34, %v2848_v39  ;;  %3013 = vperm.xlu1 %3654, %v6433_v31   ;;  %v2865_v24 = vmul.f32 %v6394_v34, %v2820_v37  ;;  %3155 = vperm.xlu0 %3661, %v6301_v47  }
 0x49f   :  { %v6558_v21 = vadd.f32 %v2872_v15, %v2791_v62  ;;  %v6560_v25 = vadd.f32 %v2865_v24, %v2784_v14  ;;  %v2780_v15 = vmul.f32 %v6397_v53, %v6365_v44 }
 0x4a1   :  { %v3363_v52 = vadd.f32 %v2861_v8, %v2780_v15 }
 0x4a3   :  { %v6571_v27 = vpop.permute.xlu0 %2924 }
 0x4a4   :  { %3017 = vperm.xlu2 %3655, %v6442_v56   ;;  %v2832_v28 = vpop.permute.xlu1 %2831 }
 0x4a5   :  { %3658 = vset.pattern.permute.xlu1 %v3745_v35  ;;  %v6564_v33 = vpop.permute.xlu2 %2876  ;;  %v2868_v61 = vmul.f32 %v6394_v34, %v2832_v28  ;;  %3167 = vperm.xlu0 %3661, %v6346_v60  }
 0x4a6   :  { %3042 = vperm.xlu1 %3658, %v5896_v58  }
 0x4a7   :  { %v6573_v22 = vadd.f32 %v2868_v61, %v2787_v3 }
 0x4ab   :  { %v6583_v12 = vpop.permute.xlu0 %2936 }
 0x4ac   :  { %3659 = vset.pattern.permute.xlu2 %v3745_v35  ;;  %v6576_v48 = vpop.permute.xlu1 %2843  ;;  %v2793_v35 = vmul.f32 %v6397_v53, %v6490_v46  ;;  %v6602_v46 = vperm.slane %v6390_v0, 2 }
 0x4ad   :  { %3046 = vperm.xlu2 %3659, %v5981_v23   ;;  %v6579_v16 = vpop.permute.xlu2 %2888  ;;  %3179 = vperm.xlu0 %3661, %v6442_v56  }
 0x4ae   :  { %3050 = vperm.xlu1 %3658, %v6036_v4  }
 0x4b4   :  { %v2856_v45 = vpop.permute.xlu1 %2855 }
 0x4b5   :  { %3054 = vperm.xlu2 %3659, %v6084_v42   ;;  %v6586_v59 = vpop.permute.xlu2 %2896  ;;  %v2874_v5 = vmul.f32 %v6394_v34, %v2856_v45  ;;  %3665 = vset.pattern.permute.xlu0 %v7035_v26  ;;  %v2966_v17 = vpop.permute.xlu0 %2965 }
 0x4b6   :  { %3062 = vperm.xlu1 %3658, %v6158_v11   ;;  %3208 = vperm.xlu0 %3665, %v5981_v23   ;;  %v3023_v37 = vmul.f32 %v6597_v30, %v2966_v17 }
 0x4b7   :  { %v6594_v7 = vadd.f32 %v2874_v5, %v2793_v35 }
 0x4bd   :  { %3066 = vperm.xlu2 %3659, %v6219_v2   ;;  %v6605_v39 = vpop.permute.xlu2 %2908  ;;  %v2986_v3 = vpop.permute.xlu0 %2985 }
 0x4be   :  { %3074 = vperm.xlu1 %3658, %v6301_v47   ;;  %v2885_v62 = vpop.permute.xlu1 %2884  ;;  %3228 = vperm.xlu0 %3665, %v6219_v2   ;;  %v3028_v5 = vmul.f32 %v6597_v30, %v2986_v3 }
 0x4bf   :  { %v2942_v14 = vmul.f32 %v6602_v46, %v2885_v62 }
 0x4c1   :  { %v3379_v24 = vadd.f32 %v3023_v37, %v2942_v14  ;;  %v2941_v37 = vmul.f32 %v6602_v46, %v6518_v32 }
 0x4c3   :  { %v6613_v28 = vadd.f32 %v3379_v24, %v3363_v52 }
 0x4c5   :  { %3078 = vperm.xlu2 %3659, %v6326_v43   ;;  %v6616_v61 = vpop.permute.xlu2 %2920  ;;  %v2998_v17 = vpop.permute.xlu0 %2997 }
 0x4c6   :  { %3086 = vperm.xlu1 %3658, %v6346_v60   ;;  %v2893_v45 = vpop.permute.xlu1 %2892  ;;  %3240 = vperm.xlu0 %3665, %v6326_v43   ;;  %v3031_v24 = vmul.f32 %v6597_v30, %v2998_v17 }
 0x4cd   :  { %3090 = vperm.xlu2 %3659, %v6351_v19   ;;  %v6621_v44 = vpop.permute.xlu2 %2932  ;;  %v3010_v32 = vpop.permute.xlu0 %3009 }
 0x4ce   :  { %3098 = vperm.xlu1 %3658, %v6442_v56   ;;  %v2905_v35 = vpop.permute.xlu1 %2904  ;;  %3252 = vperm.xlu0 %3665, %v6351_v19  }
 0x4cf   :  { %v2947_v8 = vmul.f32 %v6602_v46, %v2905_v35 }
 0x4d1   :  { %v3384_v62 = vadd.f32 %v3028_v5, %v2947_v8  ;;  %v7033_v5 = vmov 7  }
 0x4d3   :  { %v6628_v15 = vadd.f32 %v3384_v62, %v6528_v13 }
 0x4d5   :  { %7534 = vst [vmem:[#allocation107_spill] sm:$0xff] %v6628_v15  ;;  %3660 = vset.pattern.permute.xlu2 %v3746_v18 }
 0x4d6   :  { %3662 = vset.pattern.permute.xlu1 %v3746_v18  ;;  %v2917_v14 = vpop.permute.xlu1 %2916  ;;  %3119 = vperm.xlu2 %3660, %v5963_v40   ;;  %v2962_v52 = vpop.permute.xlu2 %2961 }
 0x4d7   :  { %v2950_v3 = vmul.f32 %v6602_v46, %v2917_v14  ;;  %v3022_v35 = vmul.f32 %v6597_v30, %v2962_v52  ;;  %3666 = vset.pattern.permute.xlu0 %v7033_v5  ;;  %3127 = vperm.xlu1 %3662, %v5981_v23   ;;  %v2944_v52 = vmul.f32 %v6602_v46, %v2893_v45 }
 0x4d8   :  { %3281 = vperm.xlu0 %3666, %v5963_v40   ;;  %v3034_v5 = vmul.f32 %v6597_v30, %v3010_v32 }
 0x4d9   :  { %v3387_v13 = vadd.f32 %v3031_v24, %v2950_v3  ;;  %v3378_v18 = vadd.f32 %v3022_v35, %v2941_v37  ;;  %v2946_v35 = vmul.f32 %v6602_v46, %v6533_v50 }
 0x4db   :  { %v6642_v8 = vadd.f32 %v3387_v13, %v6543_v20  ;;  %v6645_v62 = vadd.f32 %v3378_v18, %v6530_v57  ;;  %v6654_v57 = vpop.permute.xlu0 %3038 }
 0x4de   :  { %v2929_v17 = vpop.permute.xlu1 %2928  ;;  %3131 = vperm.xlu2 %3660, %v6036_v4   ;;  %v2974_v14 = vpop.permute.xlu2 %2973 }
 0x4df   :  { %v2953_v26 = vmul.f32 %v6602_v46, %v2929_v17  ;;  %v3025_v15 = vmul.f32 %v6597_v30, %v2974_v14  ;;  %3135 = vperm.xlu1 %3662, %v6084_v42  }
 0x4e0   :  { %3301 = vperm.xlu0 %3666, %v6114_v63  }
 0x4e1   :  { %v3390_v20 = vadd.f32 %v3034_v5, %v2953_v26  ;;  %v3381_v37 = vadd.f32 %v3025_v15, %v2944_v52  ;;  %v2940_v15 = vmul.f32 %v6602_v46, %v6564_v33  ;;  %v2949_v33 = vmul.f32 %v6602_v46, %v6551_v9 }
 0x4e2   :  { %v2871_v9 = vmul.f32 %v6394_v34, %v6576_v48 }
 0x4e3   :  { %v6657_v24 = vadd.f32 %v3390_v20, %v6558_v21  ;;  %v6660_v3 = vadd.f32 %v3381_v37, %v6515_v6  ;;  %v6677_v50 = vpop.permute.xlu0 %3058 }
 0x4e6   :  { %3139 = vperm.xlu2 %3660, %v6114_v63   ;;  %v2982_v45 = vpop.permute.xlu2 %2981 }
 0x4e7   :  { %v3027_v32 = vmul.f32 %v6597_v30, %v2982_v45  ;;  %3147 = vperm.xlu1 %3662, %v6219_v2   ;;  %v2958_v26 = vpop.permute.xlu1 %2957 }
 0x4e8   :  { %v3021_v21 = vmul.f32 %v6597_v30, %v2958_v26  ;;  %3313 = vperm.xlu0 %3666, %v6256_v38   ;;  %v2952_v26 = vmul.f32 %v6602_v46, %v6571_v27 }
 0x4e9   :  { %v3383_v6 = vadd.f32 %v3027_v32, %v2946_v35 }
 0x4ea   :  { %v3377_v5 = vadd.f32 %v3021_v21, %v2940_v15  ;;  %v2945_v21 = vmul.f32 %v6602_v46, %v6586_v59 }
 0x4eb   :  { %v6672_v13 = vadd.f32 %v3383_v6, %v6560_v25  ;;  %v2943_v25 = vmul.f32 %v6602_v46, %v6579_v16  ;;  %v2790_v16 = vmul.f32 %v6397_v53, %v6485_v49  ;;  %v6701_v15 = vpop.permute.xlu0 %3070 }
 0x4ec   :  { %v6675_v18 = vadd.f32 %v3377_v5, %v6411_v54 }
 0x4ed   :  { %v3373_v6 = vadd.f32 %v2871_v9, %v2790_v16 }
 0x4ee   :  { %3151 = vperm.xlu2 %3660, %v6256_v38   ;;  %v2994_v17 = vpop.permute.xlu2 %2993 }
 0x4ef   :  { %v3030_v14 = vmul.f32 %v6597_v30, %v2994_v17  ;;  %3159 = vperm.xlu1 %3662, %v6326_v43   ;;  %v2970_v52 = vpop.permute.xlu1 %2969 }
 0x4f0   :  { %v3024_v20 = vmul.f32 %v6597_v30, %v2970_v52  ;;  %3325 = vperm.xlu0 %3666, %v6340_v41   ;;  %v7535_v52 = vmov 6  }
 0x4f1   :  { %v3386_v54 = vadd.f32 %v3030_v14, %v2949_v33  ;;  %v2955_v14 = vmul.f32 %v6602_v46, %v6583_v12 }
 0x4f2   :  { %v3380_v37 = vadd.f32 %v3024_v20, %v2943_v25  ;;  %v2948_v20 = vmul.f32 %v6602_v46, %v6605_v39 }
 0x4f3   :  { %v6689_v45 = vadd.f32 %v3386_v54, %v6573_v22 }
 0x4f4   :  { %v6692_v35 = vadd.f32 %v3380_v37, %v6545_v1 }
 0x4f6   :  { %3163 = vperm.xlu2 %3660, %v6340_v41   ;;  %v3006_v32 = vpop.permute.xlu2 %3005 }
 0x4f7   :  { %v3033_v22 = vmul.f32 %v6597_v30, %v3006_v32  ;;  %3171 = vperm.xlu1 %3662, %v6351_v19   ;;  %v2978_v1 = vpop.permute.xlu1 %2977 }
 0x4f8   :  { %v3026_v48 = vmul.f32 %v6597_v30, %v2978_v1  ;;  %3337 = vperm.xlu0 %3666, %v6433_v31  }
 0x4f9   :  { %v3389_v5 = vadd.f32 %v3033_v22, %v2952_v26 }
 0x4fa   :  { %v3382_v49 = vadd.f32 %v3026_v48, %v2945_v21  ;;  %v2954_v21 = vmul.f32 %v6602_v46, %v6621_v44 }
 0x4fb   :  { %v6709_v17 = vadd.f32 %v3389_v5, %v3373_v6  ;;  %v6754_v5 = vperm.slane %v6390_v0, 5 }
 0x4fc   :  { %v6712_v27 = vadd.f32 %v3382_v49, %v6423_v29  ;;  %v6723_v29 = vpop.permute.xlu0 %3082 }
 0x4fe   :  { %3175 = vperm.xlu2 %3660, %v6433_v31   ;;  %v3018_v33 = vpop.permute.xlu2 %3017 }
 0x4ff   :  { %v3036_v59 = vmul.f32 %v6597_v30, %v3018_v33  ;;  %3663 = vset.pattern.permute.xlu1 %v7535_v52  ;;  %v2990_v25 = vpop.permute.xlu1 %2989  ;;  %v6757_v33 = vperm.slane %v6390_v0, 4 }
 0x500   :  { %v3029_v54 = vmul.f32 %v6597_v30, %v2990_v25  ;;  %3200 = vperm.xlu1 %3663, %v5963_v40   ;;  %v2951_v40 = vmul.f32 %v6602_v46, %v6616_v61 }
 0x501   :  { %v3392_v37 = vadd.f32 %v3036_v59, %v2955_v14 }
 0x502   :  { %v3385_v9 = vadd.f32 %v3029_v54, %v2948_v20 }
 0x503   :  { %v6726_v32 = vadd.f32 %v3392_v37, %v6594_v7 }
 0x504   :  { %v6729_v12 = vadd.f32 %v3385_v9, %v6436_v55  ;;  %v6741_v7 = vpop.permute.xlu0 %3094 }
 0x506   :  { %3664 = vset.pattern.permute.xlu2 %v7535_v52 }
 0x507   :  { %v3002_v16 = vpop.permute.xlu1 %3001  ;;  %3204 = vperm.xlu2 %3664, %v5896_v58   ;;  %v6733_v39 = vpop.permute.xlu2 %3046 }
 0x508   :  { %v3032_v26 = vmul.f32 %v6597_v30, %v3002_v16  ;;  %3212 = vperm.xlu1 %3663, %v6036_v4   ;;  %v7536_v16 = vmov 7  }
 0x50a   :  { %v6739_v22 = vadd.f32 %v3032_v26, %v2951_v40  ;;  %v3102_v26 = vmul.f32 %v6757_v33, %v6654_v57 }
 0x50c   :  { %v3124_v49 = vpop.permute.xlu0 %3123 }
 0x50f   :  { %v3014_v55 = vpop.permute.xlu1 %3013  ;;  %3216 = vperm.xlu2 %3664, %v6084_v42   ;;  %v6744_v1 = vpop.permute.xlu2 %3054 }
 0x510   :  { %v3035_v48 = vmul.f32 %v6597_v30, %v3014_v55  ;;  %3220 = vperm.xlu1 %3663, %v6114_v63   ;;  %v3184_v63 = vmul.f32 %v6754_v5, %v3124_v49 }
 0x512   :  { %v3391_v61 = vadd.f32 %v3035_v48, %v2954_v21 }
 0x514   :  { %v6751_v6 = vadd.f32 %v3391_v61, %v6513_v36  ;;  %v3144_v44 = vpop.permute.xlu0 %3143 }
 0x515   :  { %v3189_v20 = vmul.f32 %v6754_v5, %v3144_v44 }
 0x517   :  { %3224 = vperm.xlu2 %3664, %v6158_v11   ;;  %v6760_v14 = vpop.permute.xlu2 %3066 }
 0x518   :  { %3232 = vperm.xlu1 %3663, %v6256_v38   ;;  %v3043_v30 = vpop.permute.xlu1 %3042 }
 0x519   :  { %v3103_v46 = vmul.f32 %v6757_v33, %v3043_v30 }
 0x51b   :  { %v6765_v36 = vadd.f32 %v3184_v63, %v3103_v46 }
 0x51c   :  { %v3156_v54 = vpop.permute.xlu0 %3155 }
 0x51d   :  { %v3192_v55 = vmul.f32 %v6754_v5, %v3156_v54 }
 0x51f   :  { %3236 = vperm.xlu2 %3664, %v6301_v47   ;;  %v6768_v59 = vpop.permute.xlu2 %3078 }
 0x520   :  { %3244 = vperm.xlu1 %3663, %v6340_v41   ;;  %v3051_v52 = vpop.permute.xlu1 %3050 }
 0x521   :  { %v3105_v46 = vmul.f32 %v6757_v33, %v3051_v52 }
 0x524   :  { %v3168_v48 = vpop.permute.xlu0 %3167 }
 0x525   :  { %v3195_v57 = vmul.f32 %v6754_v5, %v3168_v48 }
 0x527   :  { %3248 = vperm.xlu2 %3664, %v6346_v60   ;;  %v6772_v25 = vpop.permute.xlu2 %3090 }
 0x528   :  { %3256 = vperm.xlu1 %3663, %v6433_v31   ;;  %v3063_v38 = vpop.permute.xlu1 %3062 }
 0x529   :  { %v3108_v37 = vmul.f32 %v6757_v33, %v3063_v38 }
 0x52b   :  { %v6777_v9 = vadd.f32 %v3189_v20, %v3108_v37 }
 0x52c   :  { %v3180_v54 = vpop.permute.xlu0 %3179 }
 0x52d   :  { %v3198_v52 = vmul.f32 %v6754_v5, %v3180_v54 }
 0x52f   :  { %3260 = vperm.xlu2 %3664, %v6442_v56  }
 0x530   :  { %3667 = vset.pattern.permute.xlu1 %v7536_v16  ;;  %v3075_v41 = vpop.permute.xlu1 %3074  ;;  %v3120_v40 = vpop.permute.xlu2 %3119 }
 0x531   :  { %v3111_v31 = vmul.f32 %v6757_v33, %v3075_v41  ;;  %v3183_v21 = vmul.f32 %v6754_v5, %v3120_v40  ;;  %3285 = vperm.xlu1 %3667, %v5896_v58  }
 0x533   :  { %v6787_v61 = vadd.f32 %v3192_v55, %v3111_v31  ;;  %v6789_v49 = vadd.f32 %v3183_v21, %v3102_v26 }
 0x534   :  { %v6813_v55 = vpop.permute.xlu0 %3208 }
 0x537   :  { %3668 = vset.pattern.permute.xlu2 %v7536_v16  ;;  %v3107_v16 = vmul.f32 %v6757_v33, %v6677_v50  ;;  %v3110_v50 = vmul.f32 %v6757_v33, %v6701_v15  ;;  %v3113_v15 = vmul.f32 %v6757_v33, %v6723_v29  ;;  %v3116_v29 = vmul.f32 %v6757_v33, %v6741_v7 }
 0x538   :  { %v3087_v30 = vpop.permute.xlu1 %3086  ;;  %3289 = vperm.xlu2 %3668, %v5981_v23   ;;  %v3132_v63 = vpop.permute.xlu2 %3131  ;;  %v3112_v7 = vmul.f32 %v6757_v33, %v6768_v59  ;;  %v6873_v59 = vperm.slane %v6390_v0, 6 }
 0x539   :  { %v3114_v44 = vmul.f32 %v6757_v33, %v3087_v30  ;;  %v3186_v38 = vmul.f32 %v6754_v5, %v3132_v63  ;;  %3293 = vperm.xlu1 %3667, %v6036_v4  }
 0x53b   :  { %v6798_v58 = vadd.f32 %v3195_v57, %v3114_v44  ;;  %v6800_v20 = vadd.f32 %v3186_v38, %v3105_v46 }
 0x53c   :  { %v6830_v57 = vpop.permute.xlu0 %3228 }
 0x540   :  { %v3099_v37 = vpop.permute.xlu1 %3098  ;;  %3297 = vperm.xlu2 %3668, %v6084_v42   ;;  %v3140_v23 = vpop.permute.xlu2 %3139 }
 0x541   :  { %v3117_v41 = vmul.f32 %v6757_v33, %v3099_v37  ;;  %v3188_v40 = vmul.f32 %v6754_v5, %v3140_v23  ;;  %3305 = vperm.xlu1 %3667, %v6158_v11   ;;  %v3104_v11 = vmul.f32 %v6757_v33, %v6733_v39  ;;  %v3106_v39 = vmul.f32 %v6757_v33, %v6744_v1 }
 0x542   :  { %v3109_v1 = vmul.f32 %v6757_v33, %v6760_v14 }
 0x543   :  { %v6809_v4 = vadd.f32 %v3198_v52, %v3117_v41  ;;  %v6811_v26 = vadd.f32 %v3188_v40, %v3107_v16 }
 0x544   :  { %v6849_v16 = vpop.permute.xlu0 %3240 }
 0x548   :  { %3309 = vperm.xlu2 %3668, %v6219_v2   ;;  %v3152_v42 = vpop.permute.xlu2 %3151 }
 0x549   :  { %v3191_v31 = vmul.f32 %v6754_v5, %v3152_v42  ;;  %3317 = vperm.xlu1 %3667, %v6301_v47   ;;  %v3128_v21 = vpop.permute.xlu1 %3127 }
 0x54a   :  { %v3185_v48 = vmul.f32 %v6754_v5, %v3128_v21  ;;  %v3115_v21 = vmul.f32 %v6757_v33, %v6772_v25 }
 0x54b   :  { %v6823_v30 = vadd.f32 %v3191_v31, %v3110_v50 }
 0x54c   :  { %v6825_v63 = vadd.f32 %v3185_v48, %v3104_v11  ;;  %v6862_v50 = vpop.permute.xlu0 %3252 }
 0x550   :  { %3321 = vperm.xlu2 %3668, %v6326_v43   ;;  %v3164_v2 = vpop.permute.xlu2 %3163 }
 0x551   :  { %v3194_v47 = vmul.f32 %v6754_v5, %v3164_v2  ;;  %3329 = vperm.xlu1 %3667, %v6346_v60   ;;  %v3136_v46 = vpop.permute.xlu1 %3135  ;;  %v6870_v2 = vperm.slane %v6390_v0, 7 }
 0x552   :  { %v3187_v44 = vmul.f32 %v6754_v5, %v3136_v46 }
 0x553   :  { %v6837_v38 = vadd.f32 %v3194_v47, %v3113_v15 }
 0x554   :  { %v6839_v54 = vadd.f32 %v3187_v44, %v3106_v39  ;;  %v3282_v15 = vpop.permute.xlu0 %3281 }
 0x555   :  { %v3345_v39 = vmul.f32 %v6870_v2, %v3282_v15 }
 0x558   :  { %3333 = vperm.xlu2 %3668, %v6351_v19   ;;  %v3176_v43 = vpop.permute.xlu2 %3175 }
 0x559   :  { %v3197_v37 = vmul.f32 %v6754_v5, %v3176_v43  ;;  %3341 = vperm.xlu1 %3667, %v6442_v56   ;;  %v3148_v60 = vpop.permute.xlu1 %3147 }
 0x55a   :  { %v3190_v23 = vmul.f32 %v6754_v5, %v3148_v60 }
 0x55b   :  { %v6851_v52 = vadd.f32 %v3197_v37, %v3116_v29 }
 0x55c   :  { %v6853_v41 = vadd.f32 %v3190_v23, %v3109_v1  ;;  %v3302_v25 = vpop.permute.xlu0 %3301 }
 0x561   :  { %v3160_v19 = vpop.permute.xlu1 %3159  ;;  %v6855_v40 = vpop.permute.xlu2 %3204 }
 0x562   :  { %v3193_v56 = vmul.f32 %v6754_v5, %v3160_v19  ;;  %v3350_v19 = vmul.f32 %v6870_v2, %v3302_v25  ;;  %v2789_v25 = vmul.f32 %v6397_v53, %v6496_v10 }
 0x564   :  { %v6860_v42 = vadd.f32 %v3193_v56, %v3112_v7  ;;  %v3314_v7 = vpop.permute.xlu0 %3313 }
 0x565   :  { %v3353_v15 = vmul.f32 %v6870_v2, %v3314_v7 }
 0x569   :  { %v3172_v14 = vpop.permute.xlu1 %3171  ;;  %v3217_v31 = vpop.permute.xlu2 %3216 }
 0x56a   :  { %v3196_v11 = vmul.f32 %v6754_v5, %v3172_v14  ;;  %v6882_v5 = vld [vmem:[%s7011_s8] ss:$0 sm:$0xff]  ;;  %s3749_s8 = smov [#allocation3]  }
 0x56b   :  { %s3514_s12 = sshll.u32 %s3749_s8, 4  ;;  %s3515_s12 = int_to_ptr.vmem [resolvable:$true] %s3514_s12 }
 0x56c   :  { %v6867_v48 = vadd.f32 %v3196_v11, %v3115_v21 }
 0x571   :  { %v6875_v47 = vpop.permute.xlu2 %3224 }
 0x572   :  { %v3201_v46 = vpop.permute.xlu1 %3200 }
 0x573   :  { %v3264_v44 = vmul.f32 %v6873_v59, %v3201_v46 }
 0x575   :  { %v3409_v43 = vadd.f32 %v3345_v39, %v3264_v44  ;;  %v3326_v44 = vpop.permute.xlu0 %3325 }
 0x577   :  { %v3441_v33 = vadd.f32 %v3409_v43, %v6789_v49 }
 0x579   :  { %v3457_v29 = vadd.f32 %v3441_v33, %v6675_v18  ;;  %v6886_v0 = vpop.permute.xlu2 %3236 }
 0x57a   :  { %v6888_v37 = vpop.permute.xlu1 %3212 }
 0x57b   :  { %v3477_v60 = vadd.f32 %v6882_v5, %v3457_v29  ;;  %v3266_v29 = vmul.f32 %v6873_v59, %v6813_v55 }
 0x57d   :  { %3494 = vst.msk [vmem:[#allocation3] sm:$0xff] %vm3493_vm8, %v3477_v60  ;;  %v3338_v10 = vpop.permute.xlu0 %3337 }
 0x581   :  { %v6892_v1 = vpop.permute.xlu2 %3248 }
 0x582   :  { %v3221_v23 = vpop.permute.xlu1 %3220 }
 0x583   :  { %v3269_v49 = vmul.f32 %v6873_v59, %v3221_v23 }
 0x585   :  { %v3414_v56 = vadd.f32 %v3350_v19, %v3269_v49  ;;  %v3356_v19 = vmul.f32 %v6870_v2, %v3326_v44 }
 0x587   :  { %v3446_v18 = vadd.f32 %v3414_v56, %v6811_v26  ;;  %v2870_v26 = vmul.f32 %v6394_v34, %v6498_v51 }
 0x589   :  { %v3462_v14 = vadd.f32 %v3446_v18, %v6712_v27  ;;  %v6898_v21 = vpop.permute.xlu2 %3260  ;;  %v3372_v56 = vadd.f32 %v2870_v26, %v2789_v25 }
 0x58a   :  { %v3233_v11 = vpop.permute.xlu1 %3232 }
 0x58b   :  { %v3482_v46 = vadd.f32 %v6882_v5, %v3462_v14  ;;  %v3272_v39 = vmul.f32 %v6873_v59, %v3233_v11  ;;  %v3436_v53 = vadd.f32 %v6739_v22, %v3372_v56  ;;  %v3268_v11 = vmul.f32 %v6873_v59, %v3217_v31 }
 0x58d   :  { %3499 = vst.msk [vmem:[#allocation3 + $0x28] sm:$0xff] %vm3493_vm8, %v3482_v46  ;;  %v3417_v43 = vadd.f32 %v3353_v15, %v3272_v39  ;;  %v3359_v15 = vmul.f32 %v6870_v2, %v3338_v10 }
 0x58f   :  { %v3449_v33 = vadd.f32 %v3417_v43, %v6823_v30 }
 0x591   :  { %v3465_v27 = vadd.f32 %v3449_v33, %v6729_v12 }
 0x592   :  { %v3245_v60 = vpop.permute.xlu1 %3244  ;;  %v3290_v23 = vpop.permute.xlu2 %3289 }
 0x593   :  { %v3485_v7 = vadd.f32 %v6882_v5, %v3465_v27  ;;  %v3275_v49 = vmul.f32 %v6873_v59, %v3245_v60  ;;  %v3347_v30 = vmul.f32 %v6870_v2, %v3290_v23 }
 0x595   :  { %3502 = vst.msk [vmem:[#allocation3 + $0x40] sm:$0xff] %vm3493_vm8, %v3485_v7  ;;  %v3420_v34 = vadd.f32 %v3356_v19, %v3275_v49  ;;  %v3411_v51 = vadd.f32 %v3347_v30, %v3266_v29  ;;  %v3271_v29 = vmul.f32 %v6873_v59, %v6830_v57  ;;  %v7537_v30 = vld [vmem:[#allocation107_spill] sm:$0xff] }
 0x597   :  { %v3452_v12 = vadd.f32 %v3420_v34, %v6837_v38  ;;  %v3443_v55 = vadd.f32 %v3411_v51, %v6825_v63 }
 0x599   :  { %v3468_v18 = vadd.f32 %v3452_v12, %v3436_v53  ;;  %v3459_v14 = vadd.f32 %v3443_v55, %v6613_v28  ;;  %v3267_v55 = vmul.f32 %v6873_v59, %v6888_v37  ;;  %v3277_v37 = vmul.f32 %v6873_v59, %v6862_v50 }
 0x59a   :  { %v3257_v46 = vpop.permute.xlu1 %3256  ;;  %v3298_v39 = vpop.permute.xlu2 %3297 }
 0x59b   :  { %v3488_v44 = vadd.f32 %v6882_v5, %v3468_v18  ;;  %v3479_v43 = vadd.f32 %v6882_v5, %v3459_v14  ;;  %v3278_v22 = vmul.f32 %v6873_v59, %v3257_v46  ;;  %v3349_v33 = vmul.f32 %v6870_v2, %v3298_v39 }
 0x59d   :  { %3505 = vst.msk [vmem:[#allocation3 + $0x58] sm:$0xff] %vm3493_vm8, %v3488_v44  ;;  %v3423_v63 = vadd.f32 %v3359_v15, %v3278_v22  ;;  %v3413_v38 = vadd.f32 %v3349_v33, %v3268_v11  ;;  %v3270_v22 = vmul.f32 %v6873_v59, %v6875_v47 }
 0x59e   :  { %3496 = vst.msk [vmem:[#allocation3 + $0x10] sm:$0xff] %vm3493_vm8, %v3479_v43 }
 0x59f   :  { %v3455_v28 = vadd.f32 %v3423_v63, %v6851_v52  ;;  %v3445_v31 = vadd.f32 %v3413_v38, %v6839_v54  ;;  %v3265_v52 = vmul.f32 %v6873_v59, %v6855_v40  ;;  %v3274_v40 = vmul.f32 %v6873_v59, %v6849_v16 }
 0x5a1   :  { %v3471_v26 = vadd.f32 %v3455_v28, %v6751_v6  ;;  %v3461_v27 = vadd.f32 %v3445_v31, %v6660_v3  ;;  %v3273_v31 = vmul.f32 %v6873_v59, %v6886_v0 }
 0x5a2   :  { %v3310_v25 = vpop.permute.xlu2 %3309 }
 0x5a3   :  { %v3491_v60 = vadd.f32 %v6882_v5, %v3471_v26  ;;  %v3481_v23 = vadd.f32 %v6882_v5, %v3461_v27  ;;  %v3352_v19 = vmul.f32 %v6870_v2, %v3310_v25  ;;  %v3286_v7 = vpop.permute.xlu1 %3285  ;;  %v3276_v25 = vmul.f32 %v6873_v59, %v6892_v1 }
 0x5a4   :  { %v3346_v54 = vmul.f32 %v6870_v2, %v3286_v7 }
 0x5a5   :  { %3508 = vst.msk [vmem:[#allocation3 + $0x70] sm:$0xff] %vm3493_vm8, %v3491_v60  ;;  %v3416_v6 = vadd.f32 %v3352_v19, %v3271_v29 }
 0x5a6   :  { %3498 = vst.msk [vmem:[#allocation3 + $0x20] sm:$0xff] %vm3493_vm8, %v3481_v23  ;;  %v3410_v3 = vadd.f32 %v3346_v54, %v3265_v52 }
 0x5a7   :  { %v3448_v57 = vadd.f32 %v3416_v6, %v6853_v41 }
 0x5a8   :  { %v3442_v49 = vadd.f32 %v3410_v3, %v6765_v36 }
 0x5a9   :  { %v3464_v56 = vadd.f32 %v3448_v57, %v7537_v30 }
 0x5aa   :  { %v3458_v34 = vadd.f32 %v3442_v49, %v6645_v62  ;;  %v3322_v51 = vpop.permute.xlu2 %3321 }
 0x5ab   :  { %v3484_v53 = vadd.f32 %v6882_v5, %v3464_v56  ;;  %v3355_v10 = vmul.f32 %v6870_v2, %v3322_v51  ;;  %v3294_v12 = vpop.permute.xlu1 %3293 }
 0x5ac   :  { %v3478_v41 = vadd.f32 %v6882_v5, %v3458_v34  ;;  %v3348_v36 = vmul.f32 %v6870_v2, %v3294_v12 }
 0x5ad   :  { %3501 = vst.msk [vmem:[#allocation3 + $0x38] sm:$0xff] %vm3493_vm8, %v3484_v53  ;;  %v3419_v18 = vadd.f32 %v3355_v10, %v3274_v40 }
 0x5ae   :  { %3495 = vst.msk [vmem:[#allocation3 + $0x8] sm:$0xff] %vm3493_vm8, %v3478_v41  ;;  %v3412_v62 = vadd.f32 %v3348_v36, %v3267_v55 }
 0x5af   :  { %v3451_v16 = vadd.f32 %v3419_v18, %v6860_v42 }
 0x5b0   :  { %v3444_v14 = vadd.f32 %v3412_v62, %v6800_v20 }
 0x5b1   :  { %v3467_v11 = vadd.f32 %v3451_v16, %v6642_v8 }
 0x5b2   :  { %v3460_v15 = vadd.f32 %v3444_v14, %v6692_v35  ;;  %v3334_v46 = vpop.permute.xlu2 %3333 }
 0x5b3   :  { %v3487_v39 = vadd.f32 %v6882_v5, %v3467_v11  ;;  %v3358_v44 = vmul.f32 %v6870_v2, %v3334_v46  ;;  %v3306_v43 = vpop.permute.xlu1 %3305 }
 0x5b4   :  { %v3480_v42 = vadd.f32 %v6882_v5, %v3460_v15  ;;  %v3351_v20 = vmul.f32 %v6870_v2, %v3306_v43 }
 0x5b5   :  { %3504 = vst.msk [vmem:[#allocation3 + $0x50] sm:$0xff] %vm3493_vm8, %v3487_v39  ;;  %v3422_v8 = vadd.f32 %v3358_v44, %v3277_v37 }
 0x5b6   :  { %3497 = vst.msk [vmem:[#allocation3 + $0x18] sm:$0xff] %vm3493_vm8, %v3480_v42  ;;  %v3415_v35 = vadd.f32 %v3351_v20, %v3270_v22 }
 0x5b7   :  { %v3454_v50 = vadd.f32 %v3422_v8, %v6867_v48 }
 0x5b8   :  { %v3447_v33 = vadd.f32 %v3415_v35, %v6777_v9 }
 0x5b9   :  { %v3470_v63 = vadd.f32 %v3454_v50, %v6657_v24 }
 0x5ba   :  { %v3463_v38 = vadd.f32 %v3447_v33, %v6672_v13 }
 0x5bb   :  { %v3490_v47 = vadd.f32 %v6882_v5, %v3470_v63  ;;  %v3318_v28 = vpop.permute.xlu1 %3317 }
 0x5bc   :  { %v3483_v26 = vadd.f32 %v6882_v5, %v3463_v38  ;;  %v3354_v27 = vmul.f32 %v6870_v2, %v3318_v28 }
 0x5bd   :  { %3507 = vst.msk [vmem:[#allocation3 + $0x68] sm:$0xff] %vm3493_vm8, %v3490_v47 }
 0x5be   :  { %3500 = vst.msk [vmem:[#allocation3 + $0x30] sm:$0xff] %vm3493_vm8, %v3483_v26  ;;  %v3418_v48 = vadd.f32 %v3354_v27, %v3273_v31 }
 0x5c0   :  { %v3450_v9 = vadd.f32 %v3418_v48, %v6787_v61  ;;  %v3279_v61 = vmul.f32 %v6873_v59, %v6898_v21 }
 0x5c2   :  { %v3466_v24 = vadd.f32 %v3450_v9, %v6689_v45 }
 0x5c3   :  { %v3330_v13 = vpop.permute.xlu1 %3329 }
 0x5c4   :  { %v3486_v29 = vadd.f32 %v6882_v5, %v3466_v24  ;;  %v3357_v0 = vmul.f32 %v6870_v2, %v3330_v13 }
 0x5c6   :  { %3503 = vst.msk [vmem:[#allocation3 + $0x48] sm:$0xff] %vm3493_vm8, %v3486_v29  ;;  %v3421_v60 = vadd.f32 %v3357_v0, %v3276_v25 }
 0x5c8   :  { %v3453_v23 = vadd.f32 %v3421_v60, %v6798_v58 }
 0x5ca   :  { %v3469_v19 = vadd.f32 %v3453_v23, %v6709_v17 }
 0x5cb   :  { %v3342_v7 = vpop.permute.xlu1 %3341 }
 0x5cc   :  { %v3489_v45 = vadd.f32 %v6882_v5, %v3469_v19  ;;  %v3360_v52 = vmul.f32 %v6870_v2, %v3342_v7 }
 0x5ce   :  { %3506 = vst.msk [vmem:[#allocation3 + $0x60] sm:$0xff] %vm3493_vm8, %v3489_v45  ;;  %v3424_v1 = vadd.f32 %v3360_v52, %v3279_v61 }
 0x5d0   :  { %v3456_v54 = vadd.f32 %v3424_v1, %v6809_v4 }
 0x5d2   :  { %v3472_v17 = vadd.f32 %v3456_v54, %v6726_v32 }
 0x5d4   :  { %v3492_v58 = vadd.f32 %v6882_v5, %v3472_v17 }
 0x5d6   :  { %3509 = vst.msk [vmem:[#allocation3 + $0x78] sm:$0xff] %vm3493_vm8, %v3492_v58 }
 0x5d7   :  { %3522 = dma.vmem_to_hbm [thread:$0]  %s3515_s12, 2048, %s3517_s14, [#allocation4], %s3750_s15, %s3750_s15, %s3751_s16  }
 0x5d8   :  { %3738 = dma.done.wait [#allocation4], 2048  }
 0x5d9   :  { %3739 = vsyncadd [#allocation4], 4294965248 }
 0x5da   :  { %3527 = vsyncpa [#allocation4], 1 }

</bundles_post_ra>
